<compile_context>
chip_gen: v5e
topology: v5e:2x2
jax: 0.10.0
libtpu: 0.0.40
codegen_flags: <defaults>
</compile_context>

<pallas_src>
import functools

import jax
import jax.numpy as jnp
import numpy as np
from jax import lax
from jax.experimental import pallas as pl
from jax.experimental.pallas import tpu as pltpu


def _round_up(x, m):
    return (x + m - 1) // m * m


def _bottleneck_kernel(
    x_ref,            # (1, H*W, Cinp)     f32
    w1_ref,           # (Cinp, Cmidp)      bf16  (BN1 scale folded in)
    b1_ref,           # (1, Cmidp)         f32   folded BN shift
    w2_ref,           # (9, Cmidp, Cmidp)  bf16  (tap t = ky*3 + kx, BN2 scale folded)
    b2_ref,           # (1, Cmidp)
    w3_ref,           # (Cmidp, Cinp)      bf16  (BN3 scale folded in)
    b3_ref,           # (1, Cinp)
    out_ref,          # (1, H*W, Cinp)     f32
    pad_ref,          # VMEM scratch (H+2d, Wp, Cmidp) f32
    acc_ref,          # VMEM scratch (H*W, Cmidp) f32
    *,
    H, W, Cinp, Cmidp, dilation,
):
    d = dilation
    HW = H * W
    Wp = pad_ref.shape[1]

    xf = x_ref[0]                                            # (HW, Cinp) f32

    # ---- stage 1: 1x1 conv (channel matmul, bf16 in / f32 acc) + BN + ReLU ----
    h1 = jnp.dot(xf.astype(jnp.bfloat16), w1_ref[...],
                 preferred_element_type=jnp.float32)
    h1 = jnp.maximum(h1 + b1_ref[...], 0.0)                  # (HW, Cmidp) f32

    # ---- stage 2: 3x3 (dilated) conv + BN + ReLU ----
    # Zero only the d-wide border strips of the persistent pad scratch (the
    # interior is fully overwritten every grid step, so no stale data leaks).
    pad_ref[0:d, :, :] = jnp.zeros((d, Wp, Cmidp), jnp.float32)
    pad_ref[d + H:, :, :] = jnp.zeros((d, Wp, Cmidp), jnp.float32)
    pad_ref[d:d + H, 0:d, :] = jnp.zeros((H, d, Cmidp), jnp.float32)
    pad_ref[d:d + H, d + W:d + W + d, :] = jnp.zeros((H, d, Cmidp), jnp.float32)
    pad_ref[d:d + H, d:d + W, :] = h1.reshape(H, W, Cmidp)

    # 9 shifted matmuls accumulated into a VMEM scratch accumulator.
    t = 0
    for ky in range(3):
        for kx in range(3):
            win = pad_ref[ky * d:ky * d + H, kx * d:kx * d + W, :]
            win = win.reshape(HW, Cmidp).astype(jnp.bfloat16)
            tap = jnp.dot(win, w2_ref[t], preferred_element_type=jnp.float32)
            if t == 0:
                acc_ref[...] = tap
            else:
                acc_ref[...] += tap
            t += 1
    h2 = jnp.maximum(acc_ref[...] + b2_ref[...], 0.0)        # (HW, Cmidp)

    # ---- stage 3: 1x1 conv + BN (no ReLU), residual add, final ReLU ----
    h3 = jnp.dot(h2.astype(jnp.bfloat16), w3_ref[...],
                 preferred_element_type=jnp.float32)
    h3 = h3 + b3_ref[...]                                    # (HW, Cinp)

    out_ref[0] = jnp.maximum(h3 + xf, 0.0)


def bottleneck_identify_psp_pallas(x_nchw, params, dilation=1):
    """x_nchw: (N, Cin, H, W) float32. Returns (N, Cin, H, W) float32."""
    N, Cin, H, W = x_nchw.shape
    Cmid = params["w1"].shape[1]
    d = int(dilation)

    LANE = 128
    Cinp = _round_up(Cin, LANE)          # lane-dense channel padding
    Cmidp = _round_up(Cmid, LANE)
    Wp = _round_up(W + 2 * d, 8)         # sublane-aligned pad-scratch width
    HW = H * W

    # --- fold BN scales into conv weights (f32), pad channels, cast bf16.
    #     Padded channels are zero so padded outputs stay exactly zero
    #     through all three stages (padded shifts are zero too). ---
    w1_sc = params["w1"] * params["s1"][None, :]                  # (Cin, Cmid)
    w3_sc = params["w3"] * params["s3"][None, :]                  # (Cmid, Cin)
    w2_sc = params["w2"] * params["s2"][None, None, None, :]      # (3,3,Cmid,Cmid)

    w1 = jnp.pad(w1_sc, ((0, Cinp - Cin), (0, Cmidp - Cmid))).astype(jnp.bfloat16)
    w3 = jnp.pad(w3_sc, ((0, Cmidp - Cmid), (0, Cinp - Cin))).astype(jnp.bfloat16)
    w2 = jnp.pad(w2_sc, ((0, 0), (0, 0), (0, Cmidp - Cmid), (0, Cmidp - Cmid)))
    w2 = w2.reshape(9, Cmidp, Cmidp).astype(jnp.bfloat16)

    def pad_row(v, c):
        return jnp.pad(v, (0, c - v.shape[0]))[None, :].astype(jnp.float32)

    b1 = pad_row(params["b1"], Cmidp)
    b2 = pad_row(params["b2"], Cmidp)
    b3 = pad_row(params["b3"], Cinp)

    # NCHW -> flattened NHWC with padded channels (lane-dense I/O).
    x_nhwc = jnp.transpose(x_nchw, (0, 2, 3, 1)).astype(jnp.float32)
    x_flat = jnp.pad(x_nhwc, ((0, 0), (0, 0), (0, 0), (0, Cinp - Cin)))
    x_flat = x_flat.reshape(N, HW, Cinp)

    kernel = functools.partial(
        _bottleneck_kernel, H=H, W=W, Cinp=Cinp, Cmidp=Cmidp, dilation=d
    )

    def full(shape):
        return pl.BlockSpec(shape, lambda n: (0,) * len(shape))

    out_flat = pl.pallas_call(
        kernel,
        out_shape=jax.ShapeDtypeStruct((N, HW, Cinp), jnp.float32),
        grid_spec=pltpu.PrefetchScalarGridSpec(
            num_scalar_prefetch=0,
            grid=(N,),
            in_specs=[
                pl.BlockSpec((1, HW, Cinp), lambda n: (n, 0, 0)),
                full((Cinp, Cmidp)),
                full((1, Cmidp)),
                full((9, Cmidp, Cmidp)),
                full((1, Cmidp)),
                full((Cmidp, Cinp)),
                full((1, Cinp)),
            ],
            out_specs=pl.BlockSpec((1, HW, Cinp), lambda n: (n, 0, 0)),
            scratch_shapes=[
                pltpu.VMEM((H + 2 * d, Wp, Cmidp), jnp.float32),  # padded h1
                pltpu.VMEM((HW, Cmidp), jnp.float32),             # 3x3 accumulator
            ],
        ),
        compiler_params=pltpu.CompilerParams(
            dimension_semantics=("parallel",),
            vmem_limit_bytes=48 * 1024 * 1024,
        ),
    )(x_flat, w1, b1, w2, b2, w3, b3)

    out = out_flat.reshape(N, H, W, Cinp)[..., :Cin]
    return jnp.transpose(out, (0, 3, 1, 2))   # back to NCHW


# ----------------- deterministic parameter construction -----------------

def _bn_fold(gamma, beta, mean, var, eps=1e-5):
    scale = gamma / jnp.sqrt(var + eps)
    shift = beta - mean * scale
    return scale, shift


def make_params(key, in_channels, mid_channels):
    ks = jax.random.split(key, 12)
    # conv weights in PyTorch OIHW convention, then re-laid-out for the kernel.
    w1_oihw = 0.1 * jax.random.normal(ks[0], (mid_channels, in_channels, 1, 1), jnp.float32)
    w2_oihw = 0.1 * jax.random.normal(ks[1], (mid_channels, mid_channels, 3, 3), jnp.float32)
    w3_oihw = 0.1 * jax.random.normal(ks[2], (in_channels, mid_channels, 1, 1), jnp.float32)

    def bn(kg, kb, km, kv, c):
        gamma = 1.0 + 0.1 * jax.random.normal(kg, (c,), jnp.float32)
        beta = 0.1 * jax.random.normal(kb, (c,), jnp.float32)
        mean = 0.1 * jax.random.normal(km, (c,), jnp.float32)
        var = jnp.abs(jax.random.normal(kv, (c,), jnp.float32)) + 0.5
        return gamma, beta, mean, var

    bn1 = bn(ks[3], ks[4], ks[5], ks[6], mid_channels)
    bn2 = bn(ks[7], ks[8], ks[9], ks[10], mid_channels)
    bn3 = bn(ks[11], ks[3], ks[7], ks[0], in_channels)

    s1, b1 = _bn_fold(*bn1)
    s2, b2 = _bn_fold(*bn2)
    s3, b3 = _bn_fold(*bn3)

    params = {
        # kernel layouts (true channel counts, f32; wrapper folds/pads/casts):
        "w1": jnp.transpose(w1_oihw[:, :, 0, 0], (1, 0)),   # (Cin, Cmid)
        "w2": jnp.transpose(w2_oihw, (2, 3, 1, 0)),         # (3,3,Cmid_in,Cmid_out)
        "w3": jnp.transpose(w3_oihw[:, :, 0, 0], (1, 0)),   # (Cmid, Cin)
        "s1": s1, "b1": b1,
        "s2": s2, "b2": b2,
        "s3": s3, "b3": b3,
    }
    ref_weights = {"w1": w1_oihw, "w2": w2_oihw, "w3": w3_oihw,
                   "bn1": bn1, "bn2": bn2, "bn3": bn3}
    return params, ref_weights


# ----------------- pure-JAX reference (NCHW, mirrors PyTorch) -----------------

def reference_forward(x, rw, dilation=1, eps=1e-5):
    def conv(inp, w, pad, dil):
        return lax.conv_general_dilated(
            inp, w, window_strides=(1, 1),
            padding=((pad, pad), (pad, pad)),
            rhs_dilation=(dil, dil),
            dimension_numbers=("NCHW", "OIHW", "NCHW"),
        )

    def bn(inp, stats):
        gamma, beta, mean, var = stats
        inv = gamma / jnp.sqrt(var + eps)
        return (inp - mean[None, :, None, None]) * inv[None, :, None, None] \
            + beta[None, :, None, None]

    h = jax.nn.relu(bn(conv(x, rw["w1"], 0, 1), rw["bn1"]))
    h = jax.nn.relu(bn(conv(h, rw["w2"], dilation, dilation), rw["bn2"]))
    h = bn(conv(h, rw["w3"], 0, 1), rw["bn3"])
    return jax.nn.relu(h + x)


if __name__ == "__main__":
    key = jax.random.PRNGKey(0)
    k_x, k_p = jax.random.split(key)

    N, Cin, Cmid, H, W = 2, 8, 4, 16, 16
    dilation = 1

    x = jax.random.normal(k_x, (N, Cin, H, W), jnp.float32)
    params, ref_w = make_params(k_p, Cin, Cmid)

    out = bottleneck_identify_psp_pallas(x, params, dilation=dilation)
    out = jax.block_until_ready(out)

    ref = jax.block_until_ready(reference_forward(x, ref_w, dilation=dilation))
    # bf16 MXU inputs (f32 accumulation) => slightly looser tolerance vs f32 ref.
    np.testing.assert_allclose(np.asarray(out), np.asarray(ref), rtol=3e-2, atol=3e-2)

    print("KERNEL_OK")
</pallas_src>

<mosaic_0001>
module attributes {stable_mosaic.version = 11 : i64} {
  func.func @_bottleneck_kernel(%arg0: i32, %arg1: memref<1x256x128xf32, #tpu.memory_space<vmem>>, %arg2: memref<128x128xbf16, #tpu.memory_space<vmem>>, %arg3: memref<1x128xf32, #tpu.memory_space<vmem>>, %arg4: memref<9x128x128xbf16, #tpu.memory_space<vmem>>, %arg5: memref<1x128xf32, #tpu.memory_space<vmem>>, %arg6: memref<128x128xbf16, #tpu.memory_space<vmem>>, %arg7: memref<1x128xf32, #tpu.memory_space<vmem>>, %arg8: memref<1x256x128xf32, #tpu.memory_space<vmem>>, %arg9: memref<18x24x128xf32, #tpu.memory_space<vmem>>, %arg10: memref<256x128xf32, #tpu.memory_space<vmem>>) attributes {dimension_semantics = [#tpu.dimension_semantics<parallel>], iteration_bounds = array<i64: 2>, scalar_prefetch = 0 : i64, scratch_operands = 2 : i64, tpu.core_type = #tpu.core_type<tc>, window_params = [{transform_indices = @transform_0, window_bounds = array<i64: 1, 256, 128>}, {pipeline_mode = #tpu.pipeline_mode<synchronous>, transform_indices = @transform_1, window_bounds = array<i64: 128, 128>}, {pipeline_mode = #tpu.pipeline_mode<synchronous>, transform_indices = @transform_2, window_bounds = array<i64: 1, 128>}, {pipeline_mode = #tpu.pipeline_mode<synchronous>, transform_indices = @transform_3, window_bounds = array<i64: 9, 128, 128>}, {pipeline_mode = #tpu.pipeline_mode<synchronous>, transform_indices = @transform_4, window_bounds = array<i64: 1, 128>}, {pipeline_mode = #tpu.pipeline_mode<synchronous>, transform_indices = @transform_5, window_bounds = array<i64: 128, 128>}, {pipeline_mode = #tpu.pipeline_mode<synchronous>, transform_indices = @transform_6, window_bounds = array<i64: 1, 128>}, {transform_indices = @transform_7, window_bounds = array<i64: 1, 256, 128>}]} {
    %c0 = arith.constant 0 : index
    %c0_0 = arith.constant 0 : index
    %c0_1 = arith.constant 0 : index
    %0 = vector.load %arg1[%c0, %c0_0, %c0_1] : memref<1x256x128xf32, #tpu.memory_space<vmem>>, vector<1x256x128xf32>
    %1 = vector.shape_cast %0 : vector<1x256x128xf32> to vector<256x128xf32>
    %2 = arith.truncf %1 : vector<256x128xf32> to vector<256x128xbf16>
    %c0_2 = arith.constant 0 : index
    %c0_3 = arith.constant 0 : index
    %3 = vector.load %arg2[%c0_2, %c0_3] : memref<128x128xbf16, #tpu.memory_space<vmem>>, vector<128x128xbf16>
    %cst = arith.constant dense<0.000000e+00> : vector<256x128xf32>
    %4 = tpu.matmul %2, %3, %cst {dimension_numbers = #tpu.dot_dimension_numbers<[1], [0], [0], [1], [0, 0, 1, 1], [], []>} : vector<256x128xbf16>, vector<128x128xbf16>, vector<256x128xf32> -> vector<256x128xf32>
    %c0_4 = arith.constant 0 : index
    %c0_5 = arith.constant 0 : index
    %5 = vector.load %arg3[%c0_4, %c0_5] : memref<1x128xf32, #tpu.memory_space<vmem>>, vector<1x128xf32>
    %6 = vector.broadcast %5 : vector<1x128xf32> to vector<256x128xf32>
    %7 = arith.addf %4, %6 : vector<256x128xf32>
    %cst_6 = arith.constant 0.000000e+00 : f32
    %8 = vector.broadcast %cst_6 : f32 to vector<256x128xf32>
    %9 = arith.maximumf %7, %8 : vector<256x128xf32>
    %cst_7 = arith.constant 0.000000e+00 : f32
    %10 = vector.broadcast %cst_7 : f32 to vector<1x24x128xf32>
    %c0_8 = arith.constant 0 : index
    %c0_9 = arith.constant 0 : index
    %c0_10 = arith.constant 0 : index
    %11 = vector.load %arg9[%c0_8, %c0_9, %c0_10] : memref<18x24x128xf32, #tpu.memory_space<vmem>>, vector<1x24x128xf32>
    tpu.vector_store %arg9[%c0_8, %c0_9, %c0_10], %10 {strides = array<i32>} : memref<18x24x128xf32, #tpu.memory_space<vmem>>, vector<1x24x128xf32>,
    %cst_11 = arith.constant 0.000000e+00 : f32
    %12 = vector.broadcast %cst_11 : f32 to vector<1x24x128xf32>
    %c17 = arith.constant 17 : index
    %c0_12 = arith.constant 0 : index
    %c0_13 = arith.constant 0 : index
    %13 = vector.load %arg9[%c17, %c0_12, %c0_13] : memref<18x24x128xf32, #tpu.memory_space<vmem>>, vector<1x24x128xf32>
    tpu.vector_store %arg9[%c17, %c0_12, %c0_13], %12 {strides = array<i32>} : memref<18x24x128xf32, #tpu.memory_space<vmem>>, vector<1x24x128xf32>,
    %cst_14 = arith.constant 0.000000e+00 : f32
    %14 = vector.broadcast %cst_14 : f32 to vector<16x1x128xf32>
    %c1 = arith.constant 1 : index
    %c0_15 = arith.constant 0 : index
    %c0_16 = arith.constant 0 : index
    %15 = vector.load %arg9[%c1, %c0_15, %c0_16] : memref<18x24x128xf32, #tpu.memory_space<vmem>>, vector<16x1x128xf32>
    tpu.vector_store %arg9[%c1, %c0_15, %c0_16], %14 {strides = array<i32>} : memref<18x24x128xf32, #tpu.memory_space<vmem>>, vector<16x1x128xf32>,
    %cst_17 = arith.constant 0.000000e+00 : f32
    %16 = vector.broadcast %cst_17 : f32 to vector<16x1x128xf32>
    %c1_18 = arith.constant 1 : index
    %c17_19 = arith.constant 17 : index
    %c0_20 = arith.constant 0 : index
    %17 = vector.load %arg9[%c1_18, %c17_19, %c0_20] : memref<18x24x128xf32, #tpu.memory_space<vmem>>, vector<16x1x128xf32>
    tpu.vector_store %arg9[%c1_18, %c17_19, %c0_20], %16 {strides = array<i32>} : memref<18x24x128xf32, #tpu.memory_space<vmem>>, vector<16x1x128xf32>,
    %18 = vector.shape_cast %9 : vector<256x128xf32> to vector<16x16x128xf32>
    %c1_21 = arith.constant 1 : index
    %c1_22 = arith.constant 1 : index
    %c0_23 = arith.constant 0 : index
    %19 = vector.load %arg9[%c1_21, %c1_22, %c0_23] : memref<18x24x128xf32, #tpu.memory_space<vmem>>, vector<16x16x128xf32>
    tpu.vector_store %arg9[%c1_21, %c1_22, %c0_23], %18 {strides = array<i32>} : memref<18x24x128xf32, #tpu.memory_space<vmem>>, vector<16x16x128xf32>,
    %c0_24 = arith.constant 0 : index
    %c0_25 = arith.constant 0 : index
    %c0_26 = arith.constant 0 : index
    %20 = vector.load %arg9[%c0_24, %c0_25, %c0_26] : memref<18x24x128xf32, #tpu.memory_space<vmem>>, vector<16x16x128xf32>
    %21 = vector.shape_cast %20 : vector<16x16x128xf32> to vector<256x128xf32>
    %22 = arith.truncf %21 : vector<256x128xf32> to vector<256x128xbf16>
    %c0_27 = arith.constant 0 : index
    %c0_28 = arith.constant 0 : index
    %c0_29 = arith.constant 0 : index
    %23 = vector.load %arg4[%c0_27, %c0_28, %c0_29] : memref<9x128x128xbf16, #tpu.memory_space<vmem>>, vector<1x128x128xbf16>
    %24 = vector.shape_cast %23 : vector<1x128x128xbf16> to vector<128x128xbf16>
    %cst_30 = arith.constant dense<0.000000e+00> : vector<256x128xf32>
    %25 = tpu.matmul %22, %24, %cst_30 {dimension_numbers = #tpu.dot_dimension_numbers<[1], [0], [0], [1], [0, 0, 1, 1], [], []>} : vector<256x128xbf16>, vector<128x128xbf16>, vector<256x128xf32> -> vector<256x128xf32>
    %c0_31 = arith.constant 0 : index
    %c0_32 = arith.constant 0 : index
    %26 = vector.load %arg10[%c0_31, %c0_32] : memref<256x128xf32, #tpu.memory_space<vmem>>, vector<256x128xf32>
    tpu.vector_store %arg10[%c0_31, %c0_32], %25 {strides = array<i32>} : memref<256x128xf32, #tpu.memory_space<vmem>>, vector<256x128xf32>,
    %c0_33 = arith.constant 0 : index
    %c1_34 = arith.constant 1 : index
    %c0_35 = arith.constant 0 : index
    %27 = vector.load %arg9[%c0_33, %c1_34, %c0_35] : memref<18x24x128xf32, #tpu.memory_space<vmem>>, vector<16x16x128xf32>
    %28 = vector.shape_cast %27 : vector<16x16x128xf32> to vector<256x128xf32>
    %29 = arith.truncf %28 : vector<256x128xf32> to vector<256x128xbf16>
    %c1_36 = arith.constant 1 : index
    %c0_37 = arith.constant 0 : index
    %c0_38 = arith.constant 0 : index
    %30 = vector.load %arg4[%c1_36, %c0_37, %c0_38] : memref<9x128x128xbf16, #tpu.memory_space<vmem>>, vector<1x128x128xbf16>
    %31 = vector.shape_cast %30 : vector<1x128x128xbf16> to vector<128x128xbf16>
    %cst_39 = arith.constant dense<0.000000e+00> : vector<256x128xf32>
    %32 = tpu.matmul %29, %31, %cst_39 {dimension_numbers = #tpu.dot_dimension_numbers<[1], [0], [0], [1], [0, 0, 1, 1], [], []>} : vector<256x128xbf16>, vector<128x128xbf16>, vector<256x128xf32> -> vector<256x128xf32>
    %c0_40 = arith.constant 0 : index
    %c0_41 = arith.constant 0 : index
    %33 = vector.load %arg10[%c0_40, %c0_41] : memref<256x128xf32, #tpu.memory_space<vmem>>, vector<256x128xf32>
    %34 = arith.addf %33, %32 : vector<256x128xf32>
    %c0_42 = arith.constant 0 : index
    %c0_43 = arith.constant 0 : index
    %35 = vector.load %arg10[%c0_42, %c0_43] : memref<256x128xf32, #tpu.memory_space<vmem>>, vector<256x128xf32>
    tpu.vector_store %arg10[%c0_42, %c0_43], %34 {strides = array<i32>} : memref<256x128xf32, #tpu.memory_space<vmem>>, vector<256x128xf32>,
    %c0_44 = arith.constant 0 : index
    %c2 = arith.constant 2 : index
    %c0_45 = arith.constant 0 : index
    %36 = vector.load %arg9[%c0_44, %c2, %c0_45] : memref<18x24x128xf32, #tpu.memory_space<vmem>>, vector<16x16x128xf32>
    %37 = vector.shape_cast %36 : vector<16x16x128xf32> to vector<256x128xf32>
    %38 = arith.truncf %37 : vector<256x128xf32> to vector<256x128xbf16>
    %c2_46 = arith.constant 2 : index
    %c0_47 = arith.constant 0 : index
    %c0_48 = arith.constant 0 : index
    %39 = vector.load %arg4[%c2_46, %c0_47, %c0_48] : memref<9x128x128xbf16, #tpu.memory_space<vmem>>, vector<1x128x128xbf16>
    %40 = vector.shape_cast %39 : vector<1x128x128xbf16> to vector<128x128xbf16>
    %cst_49 = arith.constant dense<0.000000e+00> : vector<256x128xf32>
    %41 = tpu.matmul %38, %40, %cst_49 {dimension_numbers = #tpu.dot_dimension_numbers<[1], [0], [0], [1], [0, 0, 1, 1], [], []>} : vector<256x128xbf16>, vector<128x128xbf16>, vector<256x128xf32> -> vector<256x128xf32>
    %c0_50 = arith.constant 0 : index
    %c0_51 = arith.constant 0 : index
    %42 = vector.load %arg10[%c0_50, %c0_51] : memref<256x128xf32, #tpu.memory_space<vmem>>, vector<256x128xf32>
    %43 = arith.addf %42, %41 : vector<256x128xf32>
    %c0_52 = arith.constant 0 : index
    %c0_53 = arith.constant 0 : index
    %44 = vector.load %arg10[%c0_52, %c0_53] : memref<256x128xf32, #tpu.memory_space<vmem>>, vector<256x128xf32>
    tpu.vector_store %arg10[%c0_52, %c0_53], %43 {strides = array<i32>} : memref<256x128xf32, #tpu.memory_space<vmem>>, vector<256x128xf32>,
    %c1_54 = arith.constant 1 : index
    %c0_55 = arith.constant 0 : index
    %c0_56 = arith.constant 0 : index
    %45 = vector.load %arg9[%c1_54, %c0_55, %c0_56] : memref<18x24x128xf32, #tpu.memory_space<vmem>>, vector<16x16x128xf32>
    %46 = vector.shape_cast %45 : vector<16x16x128xf32> to vector<256x128xf32>
    %47 = arith.truncf %46 : vector<256x128xf32> to vector<256x128xbf16>
    %c3 = arith.constant 3 : index
    %c0_57 = arith.constant 0 : index
    %c0_58 = arith.constant 0 : index
    %48 = vector.load %arg4[%c3, %c0_57, %c0_58] : memref<9x128x128xbf16, #tpu.memory_space<vmem>>, vector<1x128x128xbf16>
    %49 = vector.shape_cast %48 : vector<1x128x128xbf16> to vector<128x128xbf16>
    %cst_59 = arith.constant dense<0.000000e+00> : vector<256x128xf32>
    %50 = tpu.matmul %47, %49, %cst_59 {dimension_numbers = #tpu.dot_dimension_numbers<[1], [0], [0], [1], [0, 0, 1, 1], [], []>} : vector<256x128xbf16>, vector<128x128xbf16>, vector<256x128xf32> -> vector<256x128xf32>
    %c0_60 = arith.constant 0 : index
    %c0_61 = arith.constant 0 : index
    %51 = vector.load %arg10[%c0_60, %c0_61] : memref<256x128xf32, #tpu.memory_space<vmem>>, vector<256x128xf32>
    %52 = arith.addf %51, %50 : vector<256x128xf32>
    %c0_62 = arith.constant 0 : index
    %c0_63 = arith.constant 0 : index
    %53 = vector.load %arg10[%c0_62, %c0_63] : memref<256x128xf32, #tpu.memory_space<vmem>>, vector<256x128xf32>
    tpu.vector_store %arg10[%c0_62, %c0_63], %52 {strides = array<i32>} : memref<256x128xf32, #tpu.memory_space<vmem>>, vector<256x128xf32>,
    %c1_64 = arith.constant 1 : index
    %c1_65 = arith.constant 1 : index
    %c0_66 = arith.constant 0 : index
    %54 = vector.load %arg9[%c1_64, %c1_65, %c0_66] : memref<18x24x128xf32, #tpu.memory_space<vmem>>, vector<16x16x128xf32>
    %55 = vector.shape_cast %54 : vector<16x16x128xf32> to vector<256x128xf32>
    %56 = arith.truncf %55 : vector<256x128xf32> to vector<256x128xbf16>
    %c4 = arith.constant 4 : index
    %c0_67 = arith.constant 0 : index
    %c0_68 = arith.constant 0 : index
    %57 = vector.load %arg4[%c4, %c0_67, %c0_68] : memref<9x128x128xbf16, #tpu.memory_space<vmem>>, vector<1x128x128xbf16>
    %58 = vector.shape_cast %57 : vector<1x128x128xbf16> to vector<128x128xbf16>
    %cst_69 = arith.constant dense<0.000000e+00> : vector<256x128xf32>
    %59 = tpu.matmul %56, %58, %cst_69 {dimension_numbers = #tpu.dot_dimension_numbers<[1], [0], [0], [1], [0, 0, 1, 1], [], []>} : vector<256x128xbf16>, vector<128x128xbf16>, vector<256x128xf32> -> vector<256x128xf32>
    %c0_70 = arith.constant 0 : index
    %c0_71 = arith.constant 0 : index
    %60 = vector.load %arg10[%c0_70, %c0_71] : memref<256x128xf32, #tpu.memory_space<vmem>>, vector<256x128xf32>
    %61 = arith.addf %60, %59 : vector<256x128xf32>
    %c0_72 = arith.constant 0 : index
    %c0_73 = arith.constant 0 : index
    %62 = vector.load %arg10[%c0_72, %c0_73] : memref<256x128xf32, #tpu.memory_space<vmem>>, vector<256x128xf32>
    tpu.vector_store %arg10[%c0_72, %c0_73], %61 {strides = array<i32>} : memref<256x128xf32, #tpu.memory_space<vmem>>, vector<256x128xf32>,
    %c1_74 = arith.constant 1 : index
    %c2_75 = arith.constant 2 : index
    %c0_76 = arith.constant 0 : index
    %63 = vector.load %arg9[%c1_74, %c2_75, %c0_76] : memref<18x24x128xf32, #tpu.memory_space<vmem>>, vector<16x16x128xf32>
    %64 = vector.shape_cast %63 : vector<16x16x128xf32> to vector<256x128xf32>
    %65 = arith.truncf %64 : vector<256x128xf32> to vector<256x128xbf16>
    %c5 = arith.constant 5 : index
    %c0_77 = arith.constant 0 : index
    %c0_78 = arith.constant 0 : index
    %66 = vector.load %arg4[%c5, %c0_77, %c0_78] : memref<9x128x128xbf16, #tpu.memory_space<vmem>>, vector<1x128x128xbf16>
    %67 = vector.shape_cast %66 : vector<1x128x128xbf16> to vector<128x128xbf16>
    %cst_79 = arith.constant dense<0.000000e+00> : vector<256x128xf32>
    %68 = tpu.matmul %65, %67, %cst_79 {dimension_numbers = #tpu.dot_dimension_numbers<[1], [0], [0], [1], [0, 0, 1, 1], [], []>} : vector<256x128xbf16>, vector<128x128xbf16>, vector<256x128xf32> -> vector<256x128xf32>
    %c0_80 = arith.constant 0 : index
    %c0_81 = arith.constant 0 : index
    %69 = vector.load %arg10[%c0_80, %c0_81] : memref<256x128xf32, #tpu.memory_space<vmem>>, vector<256x128xf32>
    %70 = arith.addf %69, %68 : vector<256x128xf32>
    %c0_82 = arith.constant 0 : index
    %c0_83 = arith.constant 0 : index
    %71 = vector.load %arg10[%c0_82, %c0_83] : memref<256x128xf32, #tpu.memory_space<vmem>>, vector<256x128xf32>
    tpu.vector_store %arg10[%c0_82, %c0_83], %70 {strides = array<i32>} : memref<256x128xf32, #tpu.memory_space<vmem>>, vector<256x128xf32>,
    %c2_84 = arith.constant 2 : index
    %c0_85 = arith.constant 0 : index
    %c0_86 = arith.constant 0 : index
    %72 = vector.load %arg9[%c2_84, %c0_85, %c0_86] : memref<18x24x128xf32, #tpu.memory_space<vmem>>, vector<16x16x128xf32>
    %73 = vector.shape_cast %72 : vector<16x16x128xf32> to vector<256x128xf32>
    %74 = arith.truncf %73 : vector<256x128xf32> to vector<256x128xbf16>
    %c6 = arith.constant 6 : index
    %c0_87 = arith.constant 0 : index
    %c0_88 = arith.constant 0 : index
    %75 = vector.load %arg4[%c6, %c0_87, %c0_88] : memref<9x128x128xbf16, #tpu.memory_space<vmem>>, vector<1x128x128xbf16>
    %76 = vector.shape_cast %75 : vector<1x128x128xbf16> to vector<128x128xbf16>
    %cst_89 = arith.constant dense<0.000000e+00> : vector<256x128xf32>
    %77 = tpu.matmul %74, %76, %cst_89 {dimension_numbers = #tpu.dot_dimension_numbers<[1], [0], [0], [1], [0, 0, 1, 1], [], []>} : vector<256x128xbf16>, vector<128x128xbf16>, vector<256x128xf32> -> vector<256x128xf32>
    %c0_90 = arith.constant 0 : index
    %c0_91 = arith.constant 0 : index
    %78 = vector.load %arg10[%c0_90, %c0_91] : memref<256x128xf32, #tpu.memory_space<vmem>>, vector<256x128xf32>
    %79 = arith.addf %78, %77 : vector<256x128xf32>
    %c0_92 = arith.constant 0 : index
    %c0_93 = arith.constant 0 : index
    %80 = vector.load %arg10[%c0_92, %c0_93] : memref<256x128xf32, #tpu.memory_space<vmem>>, vector<256x128xf32>
    tpu.vector_store %arg10[%c0_92, %c0_93], %79 {strides = array<i32>} : memref<256x128xf32, #tpu.memory_space<vmem>>, vector<256x128xf32>,
    %c2_94 = arith.constant 2 : index
    %c1_95 = arith.constant 1 : index
    %c0_96 = arith.constant 0 : index
    %81 = vector.load %arg9[%c2_94, %c1_95, %c0_96] : memref<18x24x128xf32, #tpu.memory_space<vmem>>, vector<16x16x128xf32>
    %82 = vector.shape_cast %81 : vector<16x16x128xf32> to vector<256x128xf32>
    %83 = arith.truncf %82 : vector<256x128xf32> to vector<256x128xbf16>
    %c7 = arith.constant 7 : index
    %c0_97 = arith.constant 0 : index
    %c0_98 = arith.constant 0 : index
    %84 = vector.load %arg4[%c7, %c0_97, %c0_98] : memref<9x128x128xbf16, #tpu.memory_space<vmem>>, vector<1x128x128xbf16>
    %85 = vector.shape_cast %84 : vector<1x128x128xbf16> to vector<128x128xbf16>
    %cst_99 = arith.constant dense<0.000000e+00> : vector<256x128xf32>
    %86 = tpu.matmul %83, %85, %cst_99 {dimension_numbers = #tpu.dot_dimension_numbers<[1], [0], [0], [1], [0, 0, 1, 1], [], []>} : vector<256x128xbf16>, vector<128x128xbf16>, vector<256x128xf32> -> vector<256x128xf32>
    %c0_100 = arith.constant 0 : index
    %c0_101 = arith.constant 0 : index
    %87 = vector.load %arg10[%c0_100, %c0_101] : memref<256x128xf32, #tpu.memory_space<vmem>>, vector<256x128xf32>
    %88 = arith.addf %87, %86 : vector<256x128xf32>
    %c0_102 = arith.constant 0 : index
    %c0_103 = arith.constant 0 : index
    %89 = vector.load %arg10[%c0_102, %c0_103] : memref<256x128xf32, #tpu.memory_space<vmem>>, vector<256x128xf32>
    tpu.vector_store %arg10[%c0_102, %c0_103], %88 {strides = array<i32>} : memref<256x128xf32, #tpu.memory_space<vmem>>, vector<256x128xf32>,
    %c2_104 = arith.constant 2 : index
    %c2_105 = arith.constant 2 : index
    %c0_106 = arith.constant 0 : index
    %90 = vector.load %arg9[%c2_104, %c2_105, %c0_106] : memref<18x24x128xf32, #tpu.memory_space<vmem>>, vector<16x16x128xf32>
    %91 = vector.shape_cast %90 : vector<16x16x128xf32> to vector<256x128xf32>
    %92 = arith.truncf %91 : vector<256x128xf32> to vector<256x128xbf16>
    %c8 = arith.constant 8 : index
    %c0_107 = arith.constant 0 : index
    %c0_108 = arith.constant 0 : index
    %93 = vector.load %arg4[%c8, %c0_107, %c0_108] : memref<9x128x128xbf16, #tpu.memory_space<vmem>>, vector<1x128x128xbf16>
    %94 = vector.shape_cast %93 : vector<1x128x128xbf16> to vector<128x128xbf16>
    %cst_109 = arith.constant dense<0.000000e+00> : vector<256x128xf32>
    %95 = tpu.matmul %92, %94, %cst_109 {dimension_numbers = #tpu.dot_dimension_numbers<[1], [0], [0], [1], [0, 0, 1, 1], [], []>} : vector<256x128xbf16>, vector<128x128xbf16>, vector<256x128xf32> -> vector<256x128xf32>
    %c0_110 = arith.constant 0 : index
    %c0_111 = arith.constant 0 : index
    %96 = vector.load %arg10[%c0_110, %c0_111] : memref<256x128xf32, #tpu.memory_space<vmem>>, vector<256x128xf32>
    %97 = arith.addf %96, %95 : vector<256x128xf32>
    %c0_112 = arith.constant 0 : index
    %c0_113 = arith.constant 0 : index
    %98 = vector.load %arg10[%c0_112, %c0_113] : memref<256x128xf32, #tpu.memory_space<vmem>>, vector<256x128xf32>
    tpu.vector_store %arg10[%c0_112, %c0_113], %97 {strides = array<i32>} : memref<256x128xf32, #tpu.memory_space<vmem>>, vector<256x128xf32>,
    %c0_114 = arith.constant 0 : index
    %c0_115 = arith.constant 0 : index
    %99 = vector.load %arg10[%c0_114, %c0_115] : memref<256x128xf32, #tpu.memory_space<vmem>>, vector<256x128xf32>
    %c0_116 = arith.constant 0 : index
    %c0_117 = arith.constant 0 : index
    %100 = vector.load %arg5[%c0_116, %c0_117] : memref<1x128xf32, #tpu.memory_space<vmem>>, vector<1x128xf32>
    %101 = vector.broadcast %100 : vector<1x128xf32> to vector<256x128xf32>
    %102 = arith.addf %99, %101 : vector<256x128xf32>
    %cst_118 = arith.constant 0.000000e+00 : f32
    %103 = vector.broadcast %cst_118 : f32 to vector<256x128xf32>
    %104 = arith.maximumf %102, %103 : vector<256x128xf32>
    %105 = arith.truncf %104 : vector<256x128xf32> to vector<256x128xbf16>
    %c0_119 = arith.constant 0 : index
    %c0_120 = arith.constant 0 : index
    %106 = vector.load %arg6[%c0_119, %c0_120] : memref<128x128xbf16, #tpu.memory_space<vmem>>, vector<128x128xbf16>
    %cst_121 = arith.constant dense<0.000000e+00> : vector<256x128xf32>
    %107 = tpu.matmul %105, %106, %cst_121 {dimension_numbers = #tpu.dot_dimension_numbers<[1], [0], [0], [1], [0, 0, 1, 1], [], []>} : vector<256x128xbf16>, vector<128x128xbf16>, vector<256x128xf32> -> vector<256x128xf32>
    %c0_122 = arith.constant 0 : index
    %c0_123 = arith.constant 0 : index
    %108 = vector.load %arg7[%c0_122, %c0_123] : memref<1x128xf32, #tpu.memory_space<vmem>>, vector<1x128xf32>
    %109 = vector.broadcast %108 : vector<1x128xf32> to vector<256x128xf32>
    %110 = arith.addf %107, %109 : vector<256x128xf32>
    %111 = arith.addf %110, %1 : vector<256x128xf32>
    %cst_124 = arith.constant 0.000000e+00 : f32
    %112 = vector.broadcast %cst_124 : f32 to vector<256x128xf32>
    %113 = arith.maximumf %111, %112 : vector<256x128xf32>
    %c0_125 = arith.constant 0 : index
    %c0_126 = arith.constant 0 : index
    %c0_127 = arith.constant 0 : index
    %114 = vector.load %arg8[%c0_125, %c0_126, %c0_127] : memref<1x256x128xf32, #tpu.memory_space<vmem>>, vector<1x256x128xf32>
    %115 = vector.shape_cast %114 : vector<1x256x128xf32> to vector<256x128xf32>
    %116 = vector.shape_cast %113 : vector<256x128xf32> to vector<1x256x128xf32>
    tpu.vector_store %arg8[%c0_125, %c0_126, %c0_127], %116 {strides = array<i32>} : memref<1x256x128xf32, #tpu.memory_space<vmem>>, vector<1x256x128xf32>,
    return
  }
  func.func @transform_0(%arg0: i32) -> (i32, i32, i32) {
    %c0_i32 = arith.constant 0 : i32
    %c0_i32_0 = arith.constant 0 : i32
    %c0_i32_1 = arith.constant 0 : i32
    return %arg0, %c0_i32, %c0_i32_0 : i32, i32, i32
  }
  func.func @transform_1(%arg0: i32) -> (i32, i32) {
    %c0_i32 = arith.constant 0 : i32
    %c0_i32_0 = arith.constant 0 : i32
    %c0_i32_1 = arith.constant 0 : i32
    return %c0_i32, %c0_i32_0 : i32, i32
  }
  func.func @transform_2(%arg0: i32) -> (i32, i32) {
    %c0_i32 = arith.constant 0 : i32
    %c0_i32_0 = arith.constant 0 : i32
    %c0_i32_1 = arith.constant 0 : i32
    return %c0_i32, %c0_i32_0 : i32, i32
  }
  func.func @transform_3(%arg0: i32) -> (i32, i32, i32) {
    %c0_i32 = arith.constant 0 : i32
    %c0_i32_0 = arith.constant 0 : i32
    %c0_i32_1 = arith.constant 0 : i32
    %c0_i32_2 = arith.constant 0 : i32
    return %c0_i32, %c0_i32_0, %c0_i32_1 : i32, i32, i32
  }
  func.func @transform_4(%arg0: i32) -> (i32, i32) {
    %c0_i32 = arith.constant 0 : i32
    %c0_i32_0 = arith.constant 0 : i32
    %c0_i32_1 = arith.constant 0 : i32
    return %c0_i32, %c0_i32_0 : i32, i32
  }
  func.func @transform_5(%arg0: i32) -> (i32, i32) {
    %c0_i32 = arith.constant 0 : i32
    %c0_i32_0 = arith.constant 0 : i32
    %c0_i32_1 = arith.constant 0 : i32
    return %c0_i32, %c0_i32_0 : i32, i32
  }
  func.func @transform_6(%arg0: i32) -> (i32, i32) {
    %c0_i32 = arith.constant 0 : i32
    %c0_i32_0 = arith.constant 0 : i32
    %c0_i32_1 = arith.constant 0 : i32
    return %c0_i32, %c0_i32_0 : i32, i32
  }
  func.func @transform_7(%arg0: i32) -> (i32, i32, i32) {
    %c0_i32 = arith.constant 0 : i32
    %c0_i32_0 = arith.constant 0 : i32
    %c0_i32_1 = arith.constant 0 : i32
    return %arg0, %c0_i32, %c0_i32_0 : i32, i32, i32
  }
}

</mosaic_0001>

<bundles_post_ra>
// kernel: tpu_custom_call.1
= control target key start
LH: loop header
LB: loop body
LE: loop exit
PB: predicated region body
PF: predicated region fallthrough
CT: control target
= control target key end

     0   :  { %s5844_s0 = inlined_call_operand.hbm [shape: f32[2,256,128], index: 0, kind: input, shape index: {}]   ;;  %s5845_s1 = inlined_call_operand.hbm [shape: bf16[128,128], index: 1, kind: input, shape index: {}]   ;;  %s5846_s2 = inlined_call_operand.vmem [shape: f32[1,128], index: 2, kind: input, shape index: {}]   ;;  %s5847_s3 = inlined_call_operand.hbm [shape: bf16[9,128,128], index: 3, kind: input, shape index: {}]   ;;  %s5848_s4 = inlined_call_operand.vmem [shape: f32[1,128], index: 4, kind: input, shape index: {}]   ;;  %s5849_s5 = inlined_call_operand.hbm [shape: bf16[128,128], index: 5, kind: input, shape index: {}]   ;;  %s5850_s6 = inlined_call_operand.vmem [shape: f32[1,128], index: 6, kind: input, shape index: {}]   ;;  %s5851_s7 = inlined_call_operand.hbm [shape: f32[2,256,128], index: 7, kind: output, shape index: {}]  }
   0x1   :  { %5852 = sst [smem:[#allocation96_spill]] %s5845_s1 }
   0x2   :  { %12 = vsyncpa [#allocation5], 0 }
   0x3   :  { %14 = vsyncpa [#allocation5 + $0x1], 0 }
   0x4   :  { %15 = vsyncpa [#allocation8], 0 }
   0x5   :  { %16 = vsyncpa [#allocation11], 0 }
   0x6   :  { %17 = vsyncpa [#allocation6], 0 }
   0x7   :  { %19 = vsyncpa [#allocation6 + $0x1], 0  ;;  %s4616_s24 = smov 0   ;;  %s4618_s25 = smov 0  }
   0x8   :  { %s4620_s26 = smov 0   ;;  %s4622_s27 = smov 0  }
   0x9 LB: > { %s4637_s28 = sadd.s32 4294967295, %s4563_s27   ;;  %s3763_s29 = sadd.s32 4294967294, %s4563_s27   ;;  %s4563_s27 = sphi %s4622_s27, %s6022_s27   ;;  %s4559_s26 = sphi %s4620_s26, %s6021_s26   ;;  %s4555_s25 = sphi %s4618_s25, %s6020_s25   ;;  %s4551_s24 = sphi %s4616_s24, %s6019_s24  }
   0xa   : > { %p45_p0 = scmp.ne.s32.totalorder %s4555_s25, %s4551_s24  ;;  %p46_p1 = scmp.eq.s32.totalorder %s4637_s28, 0 }
   0xb   : > { %p195_p2 = scmp.eq.s32.totalorder %s4637_s28, 1  ;;  %p201_p3 = scmp.eq.s32.totalorder %s3763_s29, 1 }
   0xc   : > { %p4646_p4 = por %p46_p1, %p45_p0  ;;  %p3764_p5 = scmp.ge.s32.totalorder %s4563_s27, 1 }
   0xd   : > { %p4651_p6 = por %p201_p3, %p45_p0  ;;  %p208_p7 = scmp.lt.s32.totalorder %s4563_s27, 3 }
   0xe   : > { %s5855_s1 = sld [smem:[#allocation96_spill]]  ;;  %s4565_s13 = smov [#allocation7]  }
   0xf   : > { %p4659_p8 = pnand %p3764_p5, %p208_p7  ;;  %s221_s14 = sshll.u32 %s4565_s13, 4  ;;  %s222_s14 = int_to_ptr.vmem [resolvable:$true] %s221_s14 }
  0x10   : > { %s236_s18 = sshll.u32 %s5847_s3, 4  ;;  %s4566_s19 = smov 64   ;;  %s237_s18 = int_to_ptr.hbm [resolvable:$true] %s236_s18 }
  0x11   : > { %p4265_p9 = pneg %p4659_p8  ;;  %s4567_s20 = smov 4  }
  0x12   : > { %s4568_s21 = smov [#allocation9]   ;;  %s253_s9 = sshll.u32 %s5849_s5, 4  ;;  %s254_s9 = int_to_ptr.hbm [resolvable:$true] %s253_s9 }
  0x13   : > { %p4667_p10 = pnand %p4265_p9, %p46_p1  ;;  %s238_s22 = sshll.u32 %s4568_s21, 4  ;;  %s239_s22 = int_to_ptr.vmem [resolvable:$true] %s238_s22 }
  0x14   : > { %s219_s11 = sshll.u32 %s5855_s1, 4  ;;  %s4569_s10 = smov [#allocation10]   ;;  %s220_s11 = int_to_ptr.hbm [resolvable:$true] %s219_s11 }
  0x15   : > { %4268 = dma.hbm_to_vmem [thread:$0]  (!%p4667_p10), %s220_s11, 1024, %s222_s14, [#allocation8], %s4566_s19, %s4566_s19, %s4567_s20  }
  0x16   : > { %4271 = dma.hbm_to_vmem [thread:$0]  (!%p4667_p10), %s237_s18, 9216, %s239_s22, [#allocation8], %s4566_s19, %s4566_s19, %s4567_s20  }
  0x17   : > { %s255_s13 = sshll.u32 %s4569_s10, 4  ;;  %s4683_s11 = sadd.s32 1, %s4563_s27   ;;  %s256_s13 = int_to_ptr.vmem [resolvable:$true] %s255_s13 }
  0x18   : > { %4274 = dma.hbm_to_vmem [thread:$0]  (!%p4667_p10), %s254_s9, 1024, %s256_s13, [#allocation11], %s4566_s19, %s4566_s19, %s4567_s20  }
  0x19   : > { %s29_s14 = ssub.s32 %s4563_s27, %s4683_s11  ;;  %s32_s16 = sadd.s32 1, %s4559_s26 }
  0x1a   : > { %p30_p12 = scmp.eq.s32.totalorder %s29_s14, 0  ;;  %p39_p13 = scmp.ne.s32.totalorder %s4559_s26, %s4555_s25 }
  0x1b   : > { %p40_p0 = scmp.eq.s32.totalorder %s4563_s27, 0  ;;  %p4286_p3 = scmp.lt.s32.totalorder %s4563_s27, 2 }
  0x1c   : > { %s4695_s17 = scalar_select %p30_p12, %s4559_s26, %s32_s16  }
  0x1d   : > { %p41_p5 = por %p40_p0, %p39_p13  ;;  %p4699_p7 = por %p195_p2, %p39_p13 }
  0x1e   : > { %s272_s21 = sand.u32 1, %s4559_s26   ;;  %s4135_s22 = sshll.u32 %s4563_s27, 8 }
  0x1f   : > { %s3769_s15 = sshll.u32 %s272_s21, 8  ;;  %s281_s20 = scalar_lea.hbm %s5844_s0, %s4135_s22 }
  0x20   : > { %s282_s29 = sshll.u32 %s281_s20, 4  ;;  %s276_s9 = scalar_lea.vmem [#allocation4], %s3769_s15  ;;  %s283_s29 = int_to_ptr.hbm [resolvable:$true] %s282_s29 }
  0x21   : > { %s284_s10 = sshll.u32 %s276_s9, 4  ;;  %p4710_p9 = pnand %p4286_p3, %p41_p5  ;;  %s285_s10 = int_to_ptr.vmem [resolvable:$true] %s284_s10 }
  0x22   : > { %s273_s14 = scalar_lea.sflag [#allocation5], %s272_s21  ;;  %s4459_s16 = sshra.s32 %s283_s29, 4  ;;  %s4460_s16 = int_to_ptr.hbm [resolvable:$true] %s4459_s16 }
  0x23   : > { %s4461_s1 = scalar_lea.hbm %s4460_s16, 256  ;;  %p4463_p10 = pneg %p4710_p9 }
  0x24   : > { %p4462_p2 = scmp.ne.s32.totalorder %s4460_s16, %s4461_s1  ;;  %s4466_s23 = scalar_lea.hbm %s5844_s0, 512 }
  0x25   : > { %p4467_p0 = scmp.lt.s32.totalorder %s4460_s16, %s5844_s0  ;;  %p4468_p3 = scmp.lt.s32.totalorder %s4466_s23, %s4461_s1 }
  0x26   : > { %p4464_p12 = pnand %p4463_p10, %p4462_p2 }
  0x27   : > { %p4469_p5 = por %p4468_p3, %p4467_p0 }
  0x28   : > { %p4465_p13 = pneg %p4464_p12 }
  0x2a   : > { %p4470_p11 = pnand %p4469_p5, %p4465_p13 }
  0x2c   : > { %4473 = shalt.err (!%p4470_p11)
}
  0x2d   : > { %s4570_s21 = smov 128   ;;  %s4571_s9 = smov 8  }
  0x2e   : > { %4278 = dma.hbm_to_vmem [thread:$0]  (!%p4710_p9), %s283_s29, 4096, %s285_s10, %s273_s14, %s4570_s21, %s4570_s21, %s4571_s9  }
  0x2f   : > { %296 = sbr.rel (%p4659_p8) target bundleno = 1342 (0x53e), region = 48 }
  0x34   : > { %s4727_s22 = sand.u32 1, %s4555_s25  }
  0x35   : > { %s3773_s16 = sshll.u32 %s4727_s22, 8  ;;  %s299_s1 = scalar_lea.sflag [#allocation5], %s4727_s22 }
  0x36   : > { %s4733_s15 = scalar_lea.vmem [#allocation4], %s3773_s16 }
  0x37   : > { %4534 = dma.done.wait (%p4646_p4), %s299_s1, 4096  }
  0x38   : > { %4536 = vsyncadd (%p4646_p4), %s299_s1, 4294963200 }
  0x39   : > { %4538 = dma.done.wait (%p46_p1), [#allocation8], 10240  }
  0x3a   : > { %4540 = vsyncadd (%p46_p1), [#allocation8], 4294957056 }
  0x3b   : > { %4542 = dma.done.wait (%p46_p1), [#allocation11], 1024  }
  0x3c   : > { %4544 = vsyncadd (%p46_p1), [#allocation11], 4294966272  ;;  %v4143_v0 = vld [vmem:[#allocation7 + $0x38] sm:$0xff]  ;;  %v4142_v1 = vld [vmem:[#allocation7 + $0x30] sm:$0xff]  ;;  %v4572_v37 = vmov 0.0   ;;  %v4573_v49 = vmov 0.0|0.0  }
  0x3d   : > { %465 = vmatpush.bf16.msra.mxu0 %v4143_v0  ;;  %4225 = vmatpush.bf16.msra.mxu3 %v4143_v0  ;;  %v4141_v2 = vld [vmem:[#allocation7 + $0x28] sm:$0xff]  ;;  %v4140_v3 = vld [vmem:[#allocation7 + $0x20] sm:$0xff]  ;;  %v4139_v4 = vld [vmem:[#allocation7 + $0x18] sm:$0xff]  ;;  %586 = vst [vmem:[#allocation2] sm:$0xff] %v4572_v37  ;;  %s5658_s23 = scalar_lea.vmem [#allocation12], %s3773_s16  ;;  %s4224_s19 = sshll.u32 %s4637_s28, 8 }
  0x3e   : > { %v4138_v5 = vld [vmem:[#allocation7 + $0x10] sm:$0xff]  ;;  %v4137_v6 = vld [vmem:[#allocation7 + $0x8] sm:$0xff]  ;;  %v4136_v7 = vld [vmem:[#allocation7] sm:$0xff]  ;;  %587 = vst [vmem:[#allocation2 + $0x8] sm:$0xff] %v4572_v37  ;;  %s3657_s9 = scalar_lea.hbm %s5851_s7, %s4224_s19  ;;  %s3658_s16 = sshll.u32 %s5658_s23, 4  ;;  %s3659_s16 = int_to_ptr.vmem [resolvable:$true] %s3658_s16 }
  0x3f   : > { %v349_v8 = vld [vmem:[%s4733_s15] sm:$0xff]  ;;  %v350_v9 = vld [vmem:[%s4733_s15 + $0x8] sm:$0xff]  ;;  %v351_v11 = vld [vmem:[%s4733_s15 + $0x10] sm:$0xff]  ;;  %588 = vst [vmem:[#allocation2 + $0x10] sm:$0xff] %v4572_v37  ;;  %s3660_s1 = sshll.u32 %s3657_s9, 4  ;;  %s3646_s30 = scalar_lea.sflag [#allocation6], %s4727_s22  ;;  %s3661_s1 = int_to_ptr.hbm [resolvable:$true] %s3660_s1 }
  0x40   : > { %v381_v10 = vpack.c.bf16 %v350_v9, %v349_v8  ;;  %v352_v12 = vld [vmem:[%s4733_s15 + $0x18] sm:$0xff]  ;;  %v353_v14 = vld [vmem:[%s4733_s15 + $0x20] sm:$0xff]  ;;  %v354_v15 = vld [vmem:[%s4733_s15 + $0x28] sm:$0xff]  ;;  %590 = vst [vmem:[#allocation2 + $0x198] sm:$0xff] %v4572_v37  ;;  %s4503_s28 = sshra.s32 %s3661_s1, 4  ;;  %s4509_s13 = scalar_lea.hbm %s5851_s7, 512  ;;  %s4504_s28 = int_to_ptr.hbm [resolvable:$true] %s4503_s28 }
  0x41   : > { %466 = vmatpush.bf16.msra.mxu0 %v4142_v1  ;;  %4226 = vmatpush.bf16.msra.mxu3 %v4142_v1  ;;  %v382_v13 = vpack.c.bf16 %v352_v12, %v351_v11  ;;  %v383_v16 = vpack.c.bf16 %v354_v15, %v353_v14  ;;  %v355_v17 = vld [vmem:[%s4733_s15 + $0x30] sm:$0xff]  ;;  %v356_v18 = vld [vmem:[%s4733_s15 + $0x38] sm:$0xff]  ;;  %v357_v20 = vld [vmem:[%s4733_s15 + $0x40] sm:$0xff]  ;;  %591 = vst [vmem:[#allocation2 + $0x1a0] sm:$0xff] %v4572_v37  ;;  %s4505_s12 = scalar_lea.hbm %s4504_s28, 256  ;;  %p4510_p11 = scmp.lt.s32.totalorder %s4504_s28, %s5851_s7 }
  0x42   : > { %v384_v19 = vpack.c.bf16 %v356_v18, %v355_v17  ;;  %v358_v21 = vld [vmem:[%s4733_s15 + $0x48] sm:$0xff]  ;;  %v4757_v22 = vld [vmem:[#allocation9 + $0x78] sm:$0xff]  ;;  %v4760_v24 = vld [vmem:[#allocation9 + $0x70] sm:$0xff]  ;;  %592 = vst [vmem:[#allocation2 + $0x1a8] sm:$0xff] %v4572_v37  ;;  %p4506_p1 = scmp.ne.s32.totalorder %s4504_s28, %s4505_s12  ;;  %p4511_p9 = scmp.lt.s32.totalorder %s4509_s13, %s4505_s12 }
  0x43   : > { %v385_v23 = vpack.c.bf16 %v358_v21, %v357_v20  ;;  %1004 = vmatpush.bf16.msra.mxu2 %v4757_v22  ;;  %v4151_v25 = vld [vmem:[#allocation9 + $0x38] sm:$0xff]  ;;  %v4763_v26 = vld [vmem:[#allocation9 + $0x68] sm:$0xff]  ;;  %v4150_v27 = vld [vmem:[#allocation9 + $0x30] sm:$0xff]  ;;  %594 = vst [vmem:[#allocation2 + $0x18] sm:$0x1] %v4572_v37 }
  0x44   : > { %770 = vmatpush.bf16.msra.mxu1 %v4151_v25  ;;  %v4149_v28 = vld [vmem:[#allocation9 + $0x28] sm:$0xff]  ;;  %v4766_v29 = vld [vmem:[#allocation9 + $0x60] sm:$0xff]  ;;  %v359_v30 = vld [vmem:[%s4733_s15 + $0x50] sm:$0xff]  ;;  %595 = vst [vmem:[#allocation2 + $0x30] sm:$0x1] %v4572_v37  ;;  %p4507_p4 = pnand %p4506_p1, %p4699_p7  ;;  %p4512_p2 = por %p4511_p9, %p4510_p11 }
  0x45   : > { %467 = vmatpush.bf16.msra.mxu0 %v4141_v2  ;;  %4227 = vmatpush.bf16.msra.mxu3 %v4141_v2  ;;  %v360_v31 = vld [vmem:[%s4733_s15 + $0x58] sm:$0xff]  ;;  %v4148_v34 = vld [vmem:[#allocation9 + $0x20] sm:$0xff]  ;;  %v4774_v35 = vld [vmem:[#allocation9 + $0x50] sm:$0xff]  ;;  %596 = vst [vmem:[#allocation2 + $0x48] sm:$0x1] %v4572_v37 }
  0x46   : > { %v4771_v32 = vld [vmem:[#allocation9 + $0x58] sm:$0xff]  ;;  %v386_v33 = vpack.c.bf16 %v360_v31, %v359_v30  ;;  %v4778_v38 = vld [vmem:[#allocation9 + $0x48] sm:$0xff]  ;;  %v4146_v39 = vld [vmem:[#allocation9 + $0x10] sm:$0xff]  ;;  %597 = vst [vmem:[#allocation2 + $0x60] sm:$0x1] %v4572_v37  ;;  %p4508_p8 = pneg %p4507_p4 }
  0x47   : > { %1005 = vmatpush.bf16.msra.mxu2 %v4760_v24  ;;  %v4147_v36 = vld [vmem:[#allocation9 + $0x18] sm:$0xff]  ;;  %v4785_v40 = vld [vmem:[#allocation9 + $0x40] sm:$0xff]  ;;  %v362_v42 = vld [vmem:[%s4733_s15 + $0x68] sm:$0xff]  ;;  %598 = vst [vmem:[#allocation2 + $0x78] sm:$0x1] %v4572_v37 }
  0x48   : > { %771 = vmatpush.bf16.msra.mxu1 %v4150_v27  ;;  %v361_v41 = vld [vmem:[%s4733_s15 + $0x60] sm:$0xff]  ;;  %v891_v43 = vld [vmem:[#allocation2 + $0x1] sm:$0xff]  ;;  %v4145_v44 = vld [vmem:[#allocation9 + $0x8] sm:$0xff]  ;;  %599 = vst [vmem:[#allocation2 + $0x90] sm:$0x1] %v4572_v37  ;;  %p4513_p10 = pnand %p4512_p2, %p4508_p8 }
  0x49   : > { %468 = vmatpush.bf16.msra.mxu0 %v4140_v3  ;;  %4228 = vmatpush.bf16.msra.mxu3 %v4140_v3  ;;  %v892_v45 = vld [vmem:[#allocation2 + $0x9] sm:$0xff]  ;;  %v387_v46 = vpack.c.bf16 %v362_v42, %v361_v41  ;;  %600 = vst [vmem:[#allocation2 + $0xa8] sm:$0x1] %v4572_v37  ;;  %v363_v50 = vld [vmem:[%s4733_s15 + $0x70] sm:$0xff]  ;;  %v366_v54 = vld [vmem:[%s4733_s15 + $0x88] sm:$0xff] }
  0x4a   : > { %v923_v47 = vpack.c.bf16 %v892_v45, %v891_v43  ;;  %v4144_v48 = vld [vmem:[#allocation9] sm:$0xff]  ;;  %601 = vst [vmem:[#allocation2 + $0xc0] sm:$0x1] %v4572_v37  ;;  %v364_v51 = vld [vmem:[%s4733_s15 + $0x78] sm:$0xff]  ;;  %v4830_v55 = vld [vmem:[%s5846_s2] ss:$0 sm:$0xff] }
  0x4b   : > { %1006 = vmatpush.bf16.msra.mxu2 %v4763_v26  ;;  %602 = vst [vmem:[#allocation2 + $0xd8] sm:$0x1] %v4572_v37  ;;  %v388_v52 = vpack.c.bf16 %v364_v51, %v363_v50  ;;  %v365_v53 = vld [vmem:[%s4733_s15 + $0x80] sm:$0xff]  ;;  %v4175_v59 = vld [vmem:[#allocation9 + $0xf8] sm:$0xff]  ;;  %v4174_v61 = vld [vmem:[#allocation9 + $0xf0] sm:$0xff] }
  0x4c   : > { %772 = vmatpush.bf16.msra.mxu1 %v4149_v28  ;;  %603 = vst [vmem:[#allocation2 + $0xf0] sm:$0x1] %v4572_v37  ;;  %v389_v56 = vpack.c.bf16 %v366_v54, %v365_v53  ;;  %v4173_v0 = vld [vmem:[#allocation9 + $0xe8] sm:$0xff]  ;;  %v367_v2 = vld [vmem:[%s4733_s15 + $0x90] sm:$0xff]  ;;  %v368_v3 = vld [vmem:[%s4733_s15 + $0x98] sm:$0xff] }
  0x4d   : > { %469 = vmatpush.bf16.msra.mxu0 %v4139_v4  ;;  %4229 = vmatpush.bf16.msra.mxu3 %v4139_v4  ;;  %604 = vst [vmem:[#allocation2 + $0x108] sm:$0x1] %v4572_v37  ;;  %v4171_v9 = vld [vmem:[#allocation9 + $0xd8] sm:$0xff]  ;;  %v374_v11 = vld [vmem:[%s4733_s15 + $0xc8] sm:$0xff]  ;;  %v4170_v17 = vld [vmem:[#allocation9 + $0xd0] sm:$0xff] }
  0x4e   : > { %605 = vst [vmem:[#allocation2 + $0x120] sm:$0x1] %v4572_v37  ;;  %v4169_v20 = vld [vmem:[#allocation9 + $0xc8] sm:$0xff]  ;;  %v371_v43 = vld [vmem:[%s4733_s15 + $0xb0] sm:$0xff] }
  0x4f   : > { %1007 = vmatpush.bf16.msra.mxu2 %v4766_v29  ;;  %606 = vst [vmem:[#allocation2 + $0x138] sm:$0x1] %v4572_v37 }
  0x50   : > { %773 = vmatpush.bf16.msra.mxu1 %v4148_v34  ;;  %607 = vst [vmem:[#allocation2 + $0x150] sm:$0x1] %v4572_v37 }
  0x51   : > { %470 = vmatpush.bf16.msra.mxu0 %v4138_v5  ;;  %4230 = vmatpush.bf16.msra.mxu3 %v4138_v5  ;;  %608 = vst [vmem:[#allocation2 + $0x168] sm:$0x1] %v4572_v37  ;;  %v4172_v5 = vld [vmem:[#allocation9 + $0xe0] sm:$0xff] }
  0x52   : > { %609 = vst [vmem:[#allocation2 + $0x180] sm:$0x1] %v4572_v37 }
  0x53   : > { %1008 = vmatpush.bf16.msra.mxu2 %v4771_v32  ;;  %610 = vst [vmem:[#allocation2 + $0x29] sm:$0x1] %v4572_v37 }
  0x54   : > { %774 = vmatpush.bf16.msra.mxu1 %v4147_v36  ;;  %611 = vst [vmem:[#allocation2 + $0x41] sm:$0x1] %v4572_v37 }
  0x55   : > { %471 = vmatpush.bf16.msra.mxu0 %v4137_v6  ;;  %4231 = vmatpush.bf16.msra.mxu3 %v4137_v6  ;;  %612 = vst [vmem:[#allocation2 + $0x59] sm:$0x1] %v4572_v37  ;;  %v390_v6 = vpack.c.bf16 %v368_v3, %v367_v2 }
  0x56   : > { %613 = vst [vmem:[#allocation2 + $0x71] sm:$0x1] %v4572_v37 }
  0x57   : > { %1009 = vmatpush.bf16.msra.mxu2 %v4774_v35  ;;  %614 = vst [vmem:[#allocation2 + $0x89] sm:$0x1] %v4572_v37 }
  0x58   : > { %775 = vmatpush.bf16.msra.mxu1 %v4146_v39  ;;  %615 = vst [vmem:[#allocation2 + $0xa1] sm:$0x1] %v4572_v37 }
  0x59   : > { %472 = vmatpush.bf16.msra.mxu0 %v4136_v7  ;;  %4232 = vmatpush.bf16.msra.mxu3 %v4136_v7  ;;  %616 = vst [vmem:[#allocation2 + $0xb9] sm:$0x1] %v4572_v37 }
  0x5a   : > { %617 = vst [vmem:[#allocation2 + $0xd1] sm:$0x1] %v4572_v37 }
  0x5b   : > { %1010 = vmatpush.bf16.msra.mxu2 %v4778_v38  ;;  %618 = vst [vmem:[#allocation2 + $0xe9] sm:$0x1] %v4572_v37 }
  0x5c   : > { %473 = vmatmul.bf16.vlgmr.msra.gmra.mxu0 %v381_v10  ;;  %776 = vmatpush.bf16.msra.mxu1 %v4145_v44  ;;  %619 = vst [vmem:[#allocation2 + $0x101] sm:$0x1] %v4572_v37  ;;  %v373_v10 = vld [vmem:[%s4733_s15 + $0xc0] sm:$0xff] }
  0x5d   : > { %4233 = vmatpush.bf16.msrb.mxu3 %v4151_v25  ;;  %620 = vst [vmem:[#allocation2 + $0x119] sm:$0x1] %v4572_v37  ;;  %1600 = vmatpush.bf16.msrb.mxu0 %v4175_v59  ;;  %v370_v25 = vld [vmem:[%s4733_s15 + $0xa8] sm:$0xff] }
  0x5e   : > { %621 = vst [vmem:[#allocation2 + $0x131] sm:$0x1] %v4572_v37 }
  0x5f   : > { %1011 = vmatpush.bf16.msra.mxu2 %v4785_v40  ;;  %622 = vst [vmem:[#allocation2 + $0x149] sm:$0x1] %v4572_v37 }
  0x60   : > { %777 = vmatpush.bf16.msra.mxu1 %v4144_v48  ;;  %623 = vst [vmem:[#allocation2 + $0x161] sm:$0x1] %v4572_v37 }
  0x61   : > { %4234 = vmatpush.bf16.msrb.mxu3 %v4150_v27  ;;  %624 = vst [vmem:[#allocation2 + $0x179] sm:$0x1] %v4572_v37  ;;  %1601 = vmatpush.bf16.msrb.mxu0 %v4174_v61 }
  0x62   : > { %1012 = vmatmul.bf16.vlgmr.msra.gmra.mxu2 %v923_v47  ;;  %625 = vst [vmem:[#allocation2 + $0x191] sm:$0x1] %v4572_v37 }
  0x63   : > { %778 = vmatmul.bf16.vlgmr.msra.gmra.mxu1 %v4573_v49  ;;  %v378_v49 = vld [vmem:[%s4733_s15 + $0xe8] sm:$0xff] }
  0x65   : > { %4235 = vmatpush.bf16.msrb.mxu3 %v4149_v28  ;;  %1602 = vmatpush.bf16.msrb.mxu0 %v4173_v0  ;;  %v4168_v28 = vld [vmem:[#allocation9 + $0xc0] sm:$0xff] }
  0x69   : > { %4236 = vmatpush.bf16.msrb.mxu3 %v4148_v34  ;;  %1603 = vmatpush.bf16.msrb.mxu0 %v4172_v5  ;;  %v376_v34 = vld [vmem:[%s4733_s15 + $0xd8] sm:$0xff] }
  0x6c   : > { %478 = vmatmul.bf16.gmra.mxu0 %v382_v13  ;;  %v393_v13 = vpack.c.bf16 %v374_v11, %v373_v10 }
  0x6d   : > { %4237 = vmatpush.bf16.msrb.mxu3 %v4147_v36  ;;  %1604 = vmatpush.bf16.msrb.mxu0 %v4171_v9 }
  0x6e   : > { %533 = vmatmul.bf16.vlgmr.msra.gmra.mxu3 %v393_v13 }
  0x71   : > { %4238 = vmatpush.bf16.msrb.mxu3 %v4146_v39  ;;  %1605 = vmatpush.bf16.msrb.mxu0 %v4170_v17 }
  0x75   : > { %4239 = vmatpush.bf16.msrb.mxu3 %v4145_v44  ;;  %1606 = vmatpush.bf16.msrb.mxu0 %v4169_v20  ;;  %v372_v44 = vld [vmem:[%s4733_s15 + $0xb8] sm:$0xff] }
  0x79   : > { %4240 = vmatpush.bf16.msrb.mxu3 %v4144_v48  ;;  %1607 = vmatpush.bf16.msrb.mxu0 %v4168_v28  ;;  %v377_v48 = vld [vmem:[%s4733_s15 + $0xe0] sm:$0xff] }
  0x7c   : > { %483 = vmatmul.bf16.gmra.mxu0 %v383_v16 }
  0x7d   : > { %4241 = vmatpush.bf16.msra.mxu3 %v4757_v22 }
  0x81   : > { %4242 = vmatpush.bf16.msra.mxu3 %v4760_v24 }
  0x85   : > { %4243 = vmatpush.bf16.msra.mxu3 %v4763_v26 }
  0x89   : > { %4244 = vmatpush.bf16.msra.mxu3 %v4766_v29 }
  0x8c   : > { %488 = vmatmul.bf16.gmra.mxu0 %v384_v19 }
  0x8d   : > { %4245 = vmatpush.bf16.msra.mxu3 %v4771_v32 }
  0x91   : > { %4246 = vmatpush.bf16.msra.mxu3 %v4774_v35  ;;  %v395_v35 = vpack.c.bf16 %v378_v49, %v377_v48  ;;  %v4190_v49 = vld [vmem:[#allocation9 + $0x170] sm:$0xff] }
  0x95   : > { %4247 = vmatpush.bf16.msra.mxu3 %v4778_v38 }
  0x99   : > { %4248 = vmatpush.bf16.msra.mxu3 %v4785_v40 }
  0x9c   : > { %493 = vmatmul.bf16.gmra.mxu0 %v385_v23  ;;  %v369_v23 = vld [vmem:[%s4733_s15 + $0xa0] sm:$0xff] }
  0x9d   : > { %v391_v22 = vpack.c.bf16 %v370_v25, %v369_v23 }
  0xac   : > { %498 = vmatmul.bf16.gmra.mxu0 %v386_v33  ;;  %v375_v33 = vld [vmem:[%s4733_s15 + $0xd0] sm:$0xff] }
  0xad   : > { %v394_v36 = vpack.c.bf16 %v376_v34, %v375_v33 }
  0xaf   : > { %538 = vmatmul.bf16.gmra.mxu3 %v394_v36 }
  0xbc   : > { %503 = vmatmul.bf16.gmra.mxu0 %v387_v46  ;;  %v392_v46 = vpack.c.bf16 %v372_v44, %v371_v43 }
  0xbf   : > { %543 = vmatmul.bf16.gmra.mxu3 %v395_v35 }
  0xcc   : > { %508 = vmatmul.bf16.gmra.mxu0 %v388_v52 }
  0xd9   : > { %v474_v57 = vpop.f32.mrf.mxu0 }
  0xda   : > { %v475_v58 = vadd.f32 %v4830_v55, %v474_v57 }
  0xdc   : > { %v554_v60 = vmax.f32 %v475_v58, 0.0  ;;  %513 = vmatmul.bf16.gmra.mxu0 %v389_v56 }
  0xde   : > { %626 = vst [vmem:[#allocation2 + $0x19] sm:$0xff] %v554_v60 }
  0xe0   : > { %v779_v25 = vpop.f32.mrf.mxu1 }
  0xe1   : > { %v476_v62 = vpop.f32.mrf.mxu0 }
  0xe2   : > { %v477_v63 = vadd.f32 %v4830_v55, %v476_v62 }
  0xe4   : > { %v555_v1 = vmax.f32 %v477_v63, 0.0 }
  0xe5   : > { %v660_v14 = vld [vmem:[#allocation2 + $0x18] sm:$0xff]  ;;  %v1013_v28 = vpop.f32.mrf.mxu2 }
  0xe6   : > { %627 = vst [vmem:[#allocation2 + $0x21] sm:$0xff] %v555_v1  ;;  %v4836_v4 = vpack.c.bf16 %v555_v1, %v554_v60 }
  0xe8   : > { %1017 = vmatmul.bf16.gmra.mxu2 %v4836_v4 }
  0xe9   : > { %v479_v7 = vpop.f32.mrf.mxu0 }
  0xea   : > { %v480_v8 = vadd.f32 %v4830_v55, %v479_v7 }
  0xec   : > { %v556_v12 = vmax.f32 %v480_v8, 0.0  ;;  %518 = vmatmul.bf16.gmra.mxu0 %v390_v6 }
  0xed   : > { %v661_v15 = vld [vmem:[#allocation2 + $0x20] sm:$0xff] }
  0xee   : > { %628 = vst [vmem:[#allocation2 + $0x31] sm:$0xff] %v556_v12  ;;  %v4842_v16 = vpack.c.bf16 %v661_v15, %v660_v14 }
  0xf0   : > { %783 = vmatmul.bf16.gmra.mxu1 %v4842_v16 }
  0xf1   : > { %v481_v18 = vpop.f32.mrf.mxu0 }
  0xf2   : > { %v482_v19 = vadd.f32 %v4830_v55, %v481_v18 }
  0xf4   : > { %v557_v21 = vmax.f32 %v482_v19, 0.0 }
  0xf5   : > { %v662_v37 = vld [vmem:[#allocation2 + $0x30] sm:$0xff] }
  0xf6   : > { %629 = vst [vmem:[#allocation2 + $0x39] sm:$0xff] %v557_v21  ;;  %v4850_v27 = vpack.c.bf16 %v557_v21, %v556_v12 }
  0xf8   : > { %1022 = vmatmul.bf16.gmra.mxu2 %v4850_v27 }
  0xf9   : > { %v484_v30 = vpop.f32.mrf.mxu0 }
  0xfa   : > { %v485_v31 = vadd.f32 %v4830_v55, %v484_v30  ;;  %v4893_v30 = vadd.f32 %v1013_v28, %v779_v25 }
  0xfc   : > { %v558_v24 = vmax.f32 %v485_v31, 0.0  ;;  %523 = vmatmul.bf16.gmra.mxu0 %v391_v22 }
  0xfd   : > { %v663_v39 = vld [vmem:[#allocation2 + $0x38] sm:$0xff] }
  0xfe   : > { %630 = vst [vmem:[#allocation2 + $0x49] sm:$0xff] %v558_v24  ;;  %v692_v26 = vpack.c.bf16 %v663_v39, %v662_v37  ;;  %v4183_v39 = vld [vmem:[#allocation9 + $0x138] sm:$0xff] }
  0xff   : > { %1898 = vmatpush.bf16.msrb.mxu1 %v4183_v39 }
 0x100   : > { %788 = vmatmul.bf16.gmra.mxu1 %v692_v26 }
 0x101   : > { %v486_v41 = vpop.f32.mrf.mxu0 }
 0x102   : > { %v487_v42 = vadd.f32 %v4830_v55, %v486_v41  ;;  %v380_v41 = vld [vmem:[%s4733_s15 + $0xf8] sm:$0xff] }
 0x104   : > { %v559_v29 = vmax.f32 %v487_v42, 0.0 }
 0x105   : > { %v664_v51 = vld [vmem:[#allocation2 + $0x48] sm:$0xff] }
 0x106   : > { %631 = vst [vmem:[#allocation2 + $0x51] sm:$0xff] %v559_v29  ;;  %v4863_v45 = vpack.c.bf16 %v559_v29, %v558_v24 }
 0x108   : > { %1027 = vmatmul.bf16.gmra.mxu2 %v4863_v45 }
 0x109   : > { %v489_v47 = vpop.f32.mrf.mxu0 }
 0x10a   : > { %v490_v32 = vadd.f32 %v4830_v55, %v489_v47  ;;  %v4191_v47 = vld [vmem:[#allocation9 + $0x178] sm:$0xff] }
 0x10b   : > { %2196 = vmatpush.bf16.msrb.mxu2 %v4191_v47 }
 0x10c   : > { %v560_v50 = vmax.f32 %v490_v32, 0.0  ;;  %528 = vmatmul.bf16.gmra.mxu0 %v392_v46 }
 0x10d   : > { %v665_v52 = vld [vmem:[#allocation2 + $0x50] sm:$0xff] }
 0x10e   : > { %632 = vst [vmem:[#allocation2 + $0x61] sm:$0xff] %v560_v50  ;;  %v693_v53 = vpack.c.bf16 %v665_v52, %v664_v51 }
 0x10f   : > { %2197 = vmatpush.bf16.msrb.mxu2 %v4190_v49 }
 0x110   : > { %793 = vmatmul.bf16.gmra.mxu1 %v693_v53 }
 0x111   : > { %v491_v38 = vpop.f32.mrf.mxu0 }
 0x112   : > { %v492_v54 = vadd.f32 %v4830_v55, %v491_v38 }
 0x114   : > { %v561_v56 = vmax.f32 %v492_v54, 0.0  ;;  %v4910_v54 = vpop.f32.mrf.mxu2 }
 0x115   : > { %v666_v60 = vld [vmem:[#allocation2 + $0x60] sm:$0xff] }
 0x116   : > { %633 = vst [vmem:[#allocation2 + $0x69] sm:$0xff] %v561_v56  ;;  %v4872_v57 = vpack.c.bf16 %v561_v56, %v560_v50 }
 0x118   : > { %1032 = vmatmul.bf16.gmra.mxu2 %v4872_v57 }
 0x119   : > { %v494_v58 = vpop.f32.mrf.mxu0 }
 0x11a   : > { %v495_v40 = vadd.f32 %v4830_v55, %v494_v58  ;;  %v4913_v58 = vpop.f32.mrf.mxu1 }
 0x11c   : > { %v562_v59 = vmax.f32 %v495_v40, 0.0  ;;  %1608 = vmatmul.bf16.vlgmr.msrb.gmra.mxu0 %v4842_v16  ;;  %v4182_v40 = vld [vmem:[#allocation9 + $0x130] sm:$0xff] }
 0x11d   : > { %v667_v61 = vld [vmem:[#allocation2 + $0x68] sm:$0xff]  ;;  %1899 = vmatpush.bf16.msrb.mxu1 %v4182_v40 }
 0x11e   : > { %634 = vst [vmem:[#allocation2 + $0x79] sm:$0xff] %v562_v59  ;;  %v694_v62 = vpack.c.bf16 %v667_v61, %v666_v60 }
 0x120   : > { %798 = vmatmul.bf16.gmra.mxu1 %v694_v62 }
 0x121   : > { %v496_v63 = vpop.f32.mrf.mxu0 }
 0x122   : > { %v497_v0 = vadd.f32 %v4830_v55, %v496_v63  ;;  %v4187_v63 = vld [vmem:[#allocation9 + $0x158] sm:$0xff] }
 0x124   : > { %v563_v1 = vmax.f32 %v497_v0, 0.0 }
 0x125   : > { %v668_v7 = vld [vmem:[#allocation2 + $0x78] sm:$0xff] }
 0x126   : > { %635 = vst [vmem:[#allocation2 + $0x81] sm:$0xff] %v563_v1  ;;  %v4878_v2 = vpack.c.bf16 %v563_v1, %v562_v59  ;;  %v4188_v59 = vld [vmem:[#allocation9 + $0x160] sm:$0xff] }
 0x128   : > { %1037 = vmatmul.bf16.gmra.mxu2 %v4878_v2 }
 0x129   : > { %v499_v3 = vpop.f32.mrf.mxu0 }
 0x12a   : > { %v500_v5 = vadd.f32 %v4830_v55, %v499_v3 }
 0x12c   : > { %v564_v6 = vmax.f32 %v500_v5, 0.0  ;;  %1613 = vmatmul.bf16.gmra.mxu0 %v692_v26  ;;  %v379_v26 = vld [vmem:[%s4733_s15 + $0xf0] sm:$0xff]  ;;  %v4180_v5 = vld [vmem:[#allocation9 + $0x120] sm:$0xff] }
 0x12d   : > { %v669_v8 = vld [vmem:[#allocation2 + $0x80] sm:$0xff]  ;;  %v396_v42 = vpack.c.bf16 %v380_v41, %v379_v26 }
 0x12e   : > { %636 = vst [vmem:[#allocation2 + $0x91] sm:$0xff] %v564_v6  ;;  %v695_v9 = vpack.c.bf16 %v669_v8, %v668_v7 }
 0x12f   : > { %548 = vmatmul.bf16.gmra.mxu3 %v396_v42 }
 0x130   : > { %803 = vmatmul.bf16.gmra.mxu1 %v695_v9 }
 0x131   : > { %v501_v10 = vpop.f32.mrf.mxu0 }
 0x132   : > { %v502_v11 = vadd.f32 %v4830_v55, %v501_v10 }
 0x134   : > { %v565_v12 = vmax.f32 %v502_v11, 0.0 }
 0x135   : > { %v670_v17 = vld [vmem:[#allocation2 + $0x90] sm:$0xff] }
 0x136   : > { %637 = vst [vmem:[#allocation2 + $0x99] sm:$0xff] %v565_v12  ;;  %v4883_v13 = vpack.c.bf16 %v565_v12, %v564_v6  ;;  %v4186_v6 = vld [vmem:[#allocation9 + $0x150] sm:$0xff] }
 0x138   : > { %1042 = vmatmul.bf16.gmra.mxu2 %v4883_v13 }
 0x139   : > { %v504_v14 = vpop.f32.mrf.mxu0 }
 0x13a   : > { %v505_v15 = vadd.f32 %v4830_v55, %v504_v14  ;;  %v4179_v14 = vld [vmem:[#allocation9 + $0x118] sm:$0xff] }
 0x13c   : > { %v566_v16 = vmax.f32 %v505_v15, 0.0  ;;  %1618 = vmatmul.bf16.gmra.mxu0 %v693_v53  ;;  %v4189_v53 = vld [vmem:[#allocation9 + $0x168] sm:$0xff] }
 0x13d   : > { %v671_v18 = vld [vmem:[#allocation2 + $0x98] sm:$0xff]  ;;  %2198 = vmatpush.bf16.msrb.mxu2 %v4189_v53 }
 0x13e   : > { %638 = vst [vmem:[#allocation2 + $0xa9] sm:$0xff] %v566_v16  ;;  %v4887_v19 = vpack.c.bf16 %v671_v18, %v670_v17  ;;  %v4185_v15 = vld [vmem:[#allocation9 + $0x148] sm:$0xff]  ;;  %v534_v17 = vpop.f32.mrf.mxu3 }
 0x140   : > { %808 = vmatmul.bf16.gmra.mxu1 %v4887_v19 }
 0x141   : > { %v506_v20 = vpop.f32.mrf.mxu0  ;;  %2199 = vmatpush.bf16.msrb.mxu2 %v4188_v59 }
 0x142   : > { %v507_v21 = vadd.f32 %v4830_v55, %v506_v20  ;;  %v4178_v20 = vld [vmem:[#allocation9 + $0x110] sm:$0xff] }
 0x144   : > { %v567_v23 = vmax.f32 %v507_v21, 0.0  ;;  %v4184_v21 = vld [vmem:[#allocation9 + $0x140] sm:$0xff] }
 0x145   : > { %v672_v24 = vld [vmem:[#allocation2 + $0xa8] sm:$0xff]  ;;  %2200 = vmatpush.bf16.msrb.mxu2 %v4187_v63 }
 0x146   : > { %639 = vst [vmem:[#allocation2 + $0xb1] sm:$0xff] %v567_v23  ;;  %v4891_v22 = vpack.c.bf16 %v567_v23, %v566_v16  ;;  %v536_v39 = vpop.f32.mrf.mxu3 }
 0x147   : > { %v537_v41 = vadd.f32 %v4830_v55, %v536_v39 }
 0x148   : > { %1047 = vmatmul.bf16.gmra.mxu2 %v4891_v22 }
 0x149   : > { %v509_v31 = vpop.f32.mrf.mxu0  ;;  %2201 = vmatpush.bf16.msrb.mxu2 %v4186_v6 }
 0x14a   : > { %v510_v33 = vadd.f32 %v4830_v55, %v509_v31 }
 0x14c   : > { %v568_v34 = vmax.f32 %v510_v33, 0.0  ;;  %1623 = vmatmul.bf16.gmra.mxu0 %v694_v62  ;;  %v4181_v62 = vld [vmem:[#allocation9 + $0x128] sm:$0xff]  ;;  %v535_v33 = vadd.f32 %v4830_v55, %v534_v17 }
 0x14d   : > { %v673_v36 = vld [vmem:[#allocation2 + $0xb0] sm:$0xff]  ;;  %1900 = vmatpush.bf16.msrb.mxu1 %v4181_v62  ;;  %2202 = vmatpush.bf16.msrb.mxu2 %v4185_v15 }
 0x14e   : > { %640 = vst [vmem:[#allocation2 + $0xc1] sm:$0xff] %v568_v34  ;;  %v4897_v37 = vpack.c.bf16 %v673_v36, %v672_v24  ;;  %v578_v24 = vmax.f32 %v535_v33, 0.0  ;;  %v539_v53 = vpop.f32.mrf.mxu3 }
 0x150   : > { %813 = vmatmul.bf16.gmra.mxu1 %v4897_v37  ;;  %650 = vst [vmem:[#allocation2 + $0x139] sm:$0xff] %v578_v24 }
 0x151   : > { %v511_v29 = vpop.f32.mrf.mxu0  ;;  %1901 = vmatpush.bf16.msrb.mxu1 %v4180_v5  ;;  %2203 = vmatpush.bf16.msrb.mxu2 %v4184_v21 }
 0x152   : > { %v512_v43 = vadd.f32 %v4830_v55, %v511_v29  ;;  %v4176_v29 = vld [vmem:[#allocation9 + $0x100] sm:$0xff] }
 0x154   : > { %v569_v44 = vmax.f32 %v512_v43, 0.0 }
 0x155   : > { %v674_v35 = vld [vmem:[#allocation2 + $0xc0] sm:$0xff]  ;;  %1902 = vmatpush.bf16.msrb.mxu1 %v4179_v14 }
 0x156   : > { %641 = vst [vmem:[#allocation2 + $0xc9] sm:$0xff] %v569_v44  ;;  %v4903_v46 = vpack.c.bf16 %v569_v44, %v568_v34  ;;  %v4177_v34 = vld [vmem:[#allocation9 + $0x108] sm:$0xff]  ;;  %v579_v44 = vmax.f32 %v537_v41, 0.0 }
 0x158   : > { %1052 = vmatmul.bf16.gmra.mxu2 %v4903_v46  ;;  %651 = vst [vmem:[#allocation2 + $0x141] sm:$0xff] %v579_v44 }
 0x159   : > { %v514_v32 = vpop.f32.mrf.mxu0  ;;  %1903 = vmatpush.bf16.msrb.mxu1 %v4178_v20 }
 0x15a   : > { %v515_v48 = vadd.f32 %v4830_v55, %v514_v32 }
 0x15c   : > { %v570_v50 = vmax.f32 %v515_v48, 0.0  ;;  %1628 = vmatmul.bf16.gmra.mxu0 %v695_v9 }
 0x15d   : > { %v675_v51 = vld [vmem:[#allocation2 + $0xc8] sm:$0xff]  ;;  %1904 = vmatpush.bf16.msrb.mxu1 %v4177_v34 }
 0x15e   : > { %642 = vst [vmem:[#allocation2 + $0xd9] sm:$0xff] %v570_v50  ;;  %v4907_v52 = vpack.c.bf16 %v675_v51, %v674_v35  ;;  %v4939_v35 = vpack.c.bf16 %v579_v44, %v578_v24 }
 0x160   : > { %818 = vmatmul.bf16.gmra.mxu1 %v4907_v52 }
 0x161   : > { %v516_v38 = vpop.f32.mrf.mxu0  ;;  %1905 = vmatpush.bf16.msrb.mxu1 %v4176_v29 }
 0x162   : > { %v517_v56 = vadd.f32 %v4830_v55, %v516_v38 }
 0x164   : > { %v571_v60 = vmax.f32 %v517_v56, 0.0 }
 0x165   : > { %v676_v9 = vld [vmem:[#allocation2 + $0xd8] sm:$0xff] }
 0x166   : > { %643 = vst [vmem:[#allocation2 + $0xe1] sm:$0xff] %v571_v60  ;;  %v4915_v61 = vpack.c.bf16 %v571_v60, %v570_v50 }
 0x168   : > { %1057 = vmatmul.bf16.gmra.mxu2 %v4915_v61 }
 0x169   : > { %v519_v0 = vpop.f32.mrf.mxu0 }
 0x16a   : > { %v520_v1 = vadd.f32 %v4830_v55, %v519_v0 }
 0x16b   : > { %v1018_v3 = vpop.f32.mrf.mxu2 }
 0x16c   : > { %v572_v7 = vmax.f32 %v520_v1, 0.0  ;;  %1633 = vmatmul.bf16.gmra.mxu0 %v4887_v19  ;;  %v541_v1 = vpop.f32.mrf.mxu3 }
 0x16d   : > { %v784_v8 = vpop.f32.mrf.mxu1  ;;  %v677_v10 = vld [vmem:[#allocation2 + $0xe0] sm:$0xff]  ;;  %v542_v5 = vadd.f32 %v4830_v55, %v541_v1 }
 0x16e   : > { %644 = vst [vmem:[#allocation2 + $0xf1] sm:$0xff] %v572_v7  ;;  %v4920_v11 = vpack.c.bf16 %v677_v10, %v676_v9  ;;  %v4922_v12 = vadd.f32 %v1018_v3, %v784_v8 }
 0x16f   : > { %v581_v8 = vmax.f32 %v542_v5, 0.0  ;;  %v685_v5 = vld [vmem:[#allocation2 + $0x140] sm:$0xff] }
 0x170   : > { %823 = vmatmul.bf16.gmra.mxu1 %v4920_v11 }
 0x171   : > { %v521_v16 = vpop.f32.mrf.mxu0  ;;  %653 = vst [vmem:[#allocation2 + $0x159] sm:$0xff] %v581_v8 }
 0x172   : > { %v522_v18 = vadd.f32 %v4830_v55, %v521_v16 }
 0x173   : > { %v1020_v19 = vpop.f32.mrf.mxu2 }
 0x174   : > { %v573_v23 = vmax.f32 %v522_v18, 0.0 }
 0x175   : > { %v786_v25 = vpop.f32.mrf.mxu1  ;;  %v678_v32 = vld [vmem:[#allocation2 + $0xf0] sm:$0xff] }
 0x176   : > { %645 = vst [vmem:[#allocation2 + $0xf9] sm:$0xff] %v573_v23  ;;  %v4926_v28 = vadd.f32 %v1020_v19, %v786_v25  ;;  %v4928_v31 = vpack.c.bf16 %v573_v23, %v572_v7  ;;  %v544_v19 = vpop.f32.mrf.mxu3  ;;  %v2083_v23 = vld [vmem:[#allocation2 + $0x1a] sm:$0xff]  ;;  %v2084_v25 = vld [vmem:[#allocation2 + $0x22] sm:$0xff] }
 0x177   : > { %v4963_v39 = vpack.c.bf16 %v2084_v25, %v2083_v23 }
 0x178   : > { %1062 = vmatmul.bf16.gmra.mxu2 %v4928_v31 }
 0x179   : > { %v524_v36 = vpop.f32.mrf.mxu0 }
 0x17a   : > { %v525_v26 = vadd.f32 %v4830_v55, %v524_v36 }
 0x17b   : > { %v1023_v42 = vpop.f32.mrf.mxu2 }
 0x17c   : > { %v574_v43 = vmax.f32 %v525_v26, 0.0  ;;  %1638 = vmatmul.bf16.gmra.mxu0 %v4897_v37  ;;  %v540_v37 = vadd.f32 %v4830_v55, %v539_v53 }
 0x17d   : > { %v789_v47 = vpop.f32.mrf.mxu1  ;;  %v679_v48 = vld [vmem:[#allocation2 + $0xf8] sm:$0xff] }
 0x17e   : > { %646 = vst [vmem:[#allocation2 + $0x109] sm:$0xff] %v574_v43  ;;  %v4935_v49 = vpack.c.bf16 %v679_v48, %v678_v32  ;;  %v4937_v50 = vadd.f32 %v1023_v42, %v789_v47  ;;  %v580_v59 = vmax.f32 %v540_v37, 0.0  ;;  %v546_v42 = vpop.f32.mrf.mxu3 }
 0x17f   : > { %v547_v29 = vadd.f32 %v4830_v55, %v546_v42 }
 0x180   : > { %828 = vmatmul.bf16.gmra.mxu1 %v4935_v49  ;;  %652 = vst [vmem:[#allocation2 + $0x151] sm:$0xff] %v580_v59  ;;  %v4956_v17 = vpack.c.bf16 %v581_v8, %v580_v59  ;;  %v2086_v59 = vld [vmem:[#allocation2 + $0x3a] sm:$0xff] }
 0x181   : > { %v526_v51 = vpop.f32.mrf.mxu0  ;;  %v583_v44 = vmax.f32 %v547_v29, 0.0 }
 0x182   : > { %v527_v38 = vadd.f32 %v4830_v55, %v526_v51 }
 0x183   : > { %v1025_v56 = vpop.f32.mrf.mxu2  ;;  %655 = vst [vmem:[#allocation2 + $0x171] sm:$0xff] %v583_v44 }
 0x184   : > { %v575_v40 = vmax.f32 %v527_v38, 0.0 }
 0x185   : > { %v791_v60 = vpop.f32.mrf.mxu1  ;;  %v680_v10 = vld [vmem:[#allocation2 + $0x108] sm:$0xff] }
 0x186   : > { %647 = vst [vmem:[#allocation2 + $0x111] sm:$0xff] %v575_v40  ;;  %v4944_v62 = vadd.f32 %v1025_v56, %v791_v60  ;;  %v4946_v63 = vpack.c.bf16 %v575_v40, %v574_v43  ;;  %v2085_v40 = vld [vmem:[#allocation2 + $0x32] sm:$0xff] }
 0x187   : > { %v687_v23 = vld [vmem:[#allocation2 + $0x158] sm:$0xff] }
 0x188   : > { %1067 = vmatmul.bf16.gmra.mxu2 %v4946_v63 }
 0x189   : > { %v529_v0 = vpop.f32.mrf.mxu0 }
 0x18a   : > { %v530_v3 = vadd.f32 %v4830_v55, %v529_v0  ;;  %v4981_v0 = vpack.c.bf16 %v2086_v59, %v2085_v40 }
 0x18b   : > { %v1028_v6 = vpop.f32.mrf.mxu2 }
 0x18c   : > { %v576_v7 = vmax.f32 %v530_v3, 0.0  ;;  %1643 = vmatmul.bf16.gmra.mxu0 %v4907_v52  ;;  %v545_v52 = vadd.f32 %v4830_v55, %v544_v19  ;;  %v684_v3 = vld [vmem:[#allocation2 + $0x138] sm:$0xff] }
 0x18d   : > { %v794_v9 = vpop.f32.mrf.mxu1  ;;  %v681_v14 = vld [vmem:[#allocation2 + $0x110] sm:$0xff] }
 0x18e   : > { %648 = vst [vmem:[#allocation2 + $0x121] sm:$0xff] %v576_v7  ;;  %v4952_v15 = vpack.c.bf16 %v681_v14, %v680_v10  ;;  %v4954_v16 = vadd.f32 %v1028_v6, %v794_v9  ;;  %v582_v34 = vmax.f32 %v545_v52, 0.0  ;;  %v2087_v14 = vld [vmem:[#allocation2 + $0x4a] sm:$0xff] }
 0x190   : > { %833 = vmatmul.bf16.gmra.mxu1 %v4952_v15  ;;  %654 = vst [vmem:[#allocation2 + $0x169] sm:$0xff] %v582_v34  ;;  %v4974_v38 = vpack.c.bf16 %v583_v44, %v582_v34  ;;  %v2090_v44 = vld [vmem:[#allocation2 + $0x6a] sm:$0xff] }
 0x191   : > { %v531_v18 = vpop.f32.mrf.mxu0 }
 0x192   : > { %v532_v20 = vadd.f32 %v4830_v55, %v531_v18  ;;  %v2088_v18 = vld [vmem:[#allocation2 + $0x52] sm:$0xff] }
 0x193   : > { %v1030_v21 = vpop.f32.mrf.mxu2  ;;  %v4994_v52 = vpack.c.bf16 %v2088_v18, %v2087_v14  ;;  %v2091_v14 = vld [vmem:[#allocation2 + $0x7a] sm:$0xff]  ;;  %v2092_v18 = vld [vmem:[#allocation2 + $0x82] sm:$0xff] }
 0x194   : > { %v577_v33 = vmax.f32 %v532_v20, 0.0 }
 0x195   : > { %v796_v24 = vpop.f32.mrf.mxu1  ;;  %v682_v32 = vld [vmem:[#allocation2 + $0x120] sm:$0xff] }
 0x196   : > { %649 = vst [vmem:[#allocation2 + $0x129] sm:$0xff] %v577_v33  ;;  %v4961_v36 = vadd.f32 %v1030_v21, %v796_v24  ;;  %v4965_v26 = vpack.c.bf16 %v577_v33, %v576_v7  ;;  %v703_v7 = vpack.c.bf16 %v685_v5, %v684_v3  ;;  %v686_v21 = vld [vmem:[#allocation2 + $0x150] sm:$0xff]  ;;  %v4167_v24 = vld [vmem:[#allocation9 + $0xb8] sm:$0xff] }
 0x197   : > { %v5000_v33 = vpack.c.bf16 %v687_v23, %v686_v21  ;;  %v688_v40 = vld [vmem:[#allocation2 + $0x168] sm:$0xff]  ;;  %v4164_v23 = vld [vmem:[#allocation9 + $0xa0] sm:$0xff] }
 0x198   : > { %2204 = vmatmul.bf16.vlgmr.msrb.gmra.mxu2 %v4963_v39 }
 0x199   : > { %v4968_v41 = vpop.f32.mrf.mxu0 }
 0x19b   : > { %v1033_v43 = vpop.f32.mrf.mxu2 }
 0x19c   : > { %1648 = vmatmul.bf16.gmra.mxu0 %v4920_v11 }
 0x19d   : > { %v799_v47 = vpop.f32.mrf.mxu1  ;;  %v683_v48 = vld [vmem:[#allocation2 + $0x128] sm:$0xff] }
 0x19e   : > { %v702_v51 = vpack.c.bf16 %v683_v48, %v682_v32  ;;  %v4972_v53 = vadd.f32 %v1033_v43, %v799_v47  ;;  %v2089_v43 = vld [vmem:[#allocation2 + $0x62] sm:$0xff] }
 0x19f   : > { %v4166_v32 = vld [vmem:[#allocation9 + $0xb0] sm:$0xff] }
 0x1a0   : > { %838 = vmatmul.bf16.vlgmr.msrb.gmra.mxu3 %v702_v51  ;;  %1906 = vmatmul.bf16.vlgmr.msrb.gmra.mxu1 %v4836_v4 }
 0x1a1   : > { %v4977_v37 = vpop.f32.mrf.mxu0  ;;  %1302 = vmatpush.bf16.msrb.mxu3 %v4167_v24 }
 0x1a2   : > { %5860 = vst [vmem:[#allocation17_spill] sm:$0xff] %v4977_v37 }
 0x1a3   : > { %v1035_v56 = vpop.f32.mrf.mxu2 }
 0x1a5   : > { %v801_v60 = vpop.f32.mrf.mxu1  ;;  %1303 = vmatpush.bf16.msrb.mxu3 %v4166_v32 }
 0x1a6   : > { %v4979_v11 = vadd.f32 %v1035_v56, %v801_v60 }
 0x1a8   : > { %2209 = vmatmul.bf16.gmra.mxu2 %v4981_v0 }
 0x1a9   : > { %v4984_v1 = vpop.f32.mrf.mxu0 }
 0x1aa   : > { %5861 = vst [vmem:[#allocation18_spill] sm:$0xff] %v4984_v1 }
 0x1ab   : > { %v1038_v6 = vpop.f32.mrf.mxu2 }
 0x1ac   : > { %1653 = vmatmul.bf16.gmra.mxu0 %v4935_v49 }
 0x1ad   : > { %v804_v4 = vpop.f32.mrf.mxu1 }
 0x1ae   : > { %v4987_v8 = vadd.f32 %v1038_v6, %v804_v4  ;;  %v4165_v6 = vld [vmem:[#allocation9 + $0xa8] sm:$0xff] }
 0x1af   : > { %1304 = vmatpush.bf16.msrb.mxu3 %v4165_v6  ;;  %v2093_v6 = vld [vmem:[#allocation2 + $0x92] sm:$0xff] }
 0x1b0   : > { %843 = vmatmul.bf16.gmra.mxu3 %v703_v7  ;;  %1911 = vmatmul.bf16.gmra.mxu1 %v4850_v27 }
 0x1b1   : > { %v4990_v9 = vpop.f32.mrf.mxu0 }
 0x1b2   : > { %5862 = vst [vmem:[#allocation19_spill] sm:$0xff] %v4990_v9  ;;  %v549_v21 = vpop.f32.mrf.mxu3 }
 0x1b3   : > { %v1040_v10 = vpop.f32.mrf.mxu2  ;;  %1305 = vmatpush.bf16.msrb.mxu3 %v4164_v23 }
 0x1b5   : > { %v806_v19 = vpop.f32.mrf.mxu1 }
 0x1b6   : > { %v4992_v20 = vadd.f32 %v1040_v10, %v806_v19 }
 0x1b8   : > { %2214 = vmatmul.bf16.gmra.mxu2 %v4994_v52 }
 0x1b9   : > { %v4997_v49 = vpop.f32.mrf.mxu0 }
 0x1ba   : > { %5863 = vst [vmem:[#allocation20_spill] sm:$0xff] %v4997_v49  ;;  %v2106_v49 = vld [vmem:[#allocation2 + $0x12a] sm:$0xff] }
 0x1bb   : > { %v1043_v25 = vpop.f32.mrf.mxu2 }
 0x1bc   : > { %1658 = vmatmul.bf16.gmra.mxu0 %v4952_v15  ;;  %v5010_v15 = vpack.c.bf16 %v2090_v44, %v2089_v43  ;;  %v4207_v43 = vld [vmem:[#allocation9 + $0x1f8] sm:$0xff] }
 0x1bd   : > { %v809_v27 = vpop.f32.mrf.mxu1  ;;  %2793 = vmatpush.bf16.msra.mxu0 %v4207_v43 }
 0x1be   : > { %v5002_v34 = vadd.f32 %v1043_v25, %v809_v27  ;;  %v5025_v25 = vpack.c.bf16 %v2092_v18, %v2091_v14  ;;  %v5028_v27 = vadd.f32 %v4830_v55, %v549_v21  ;;  %v4205_v14 = vld [vmem:[#allocation9 + $0x1e8] sm:$0xff] }
 0x1c0   : > { %848 = vmatmul.bf16.gmra.mxu3 %v5000_v33  ;;  %1916 = vmatmul.bf16.gmra.mxu1 %v4863_v45  ;;  %v689_v45 = vld [vmem:[#allocation2 + $0x170] sm:$0xff] }
 0x1c1   : > { %v5006_v42 = vpop.f32.mrf.mxu0  ;;  %v5015_v3 = vpack.c.bf16 %v689_v45, %v688_v40  ;;  %v4206_v45 = vld [vmem:[#allocation9 + $0x1f0] sm:$0xff] }
 0x1c2   : > { %5864 = vst [vmem:[#allocation21_spill] sm:$0xff] %v5006_v42  ;;  %2794 = vmatpush.bf16.msra.mxu0 %v4206_v45  ;;  %v4161_v45 = vld [vmem:[#allocation9 + $0x88] sm:$0xff] }
 0x1c3   : > { %v1045_v29 = vpop.f32.mrf.mxu2 }
 0x1c5   : > { %v811_v47 = vpop.f32.mrf.mxu1 }
 0x1c6   : > { %v5008_v48 = vadd.f32 %v1045_v29, %v811_v47  ;;  %v551_v47 = vpop.f32.mrf.mxu3  ;;  %2795 = vmatpush.bf16.msra.mxu0 %v4205_v14 }
 0x1c7   : > { %v552_v40 = vadd.f32 %v4830_v55, %v551_v47  ;;  %v4162_v55 = vld [vmem:[#allocation9 + $0x90] sm:$0xff] }
 0x1c8   : > { %2219 = vmatmul.bf16.gmra.mxu2 %v5010_v15 }
 0x1c9   : > { %v5013_v56 = vpop.f32.mrf.mxu0 }
 0x1ca   : > { %5865 = vst [vmem:[#allocation22_spill] sm:$0xff] %v5013_v56 }
 0x1cb   : > { %v1048_v59 = vpop.f32.mrf.mxu2 }
 0x1cc   : > { %1663 = vmatmul.bf16.gmra.mxu0 %v702_v51 }
 0x1cd   : > { %v814_v60 = vpop.f32.mrf.mxu1 }
 0x1ce   : > { %v5017_v5 = vadd.f32 %v1048_v59, %v814_v60  ;;  %v5039_v59 = vmax.f32 %v552_v40, 0.0  ;;  %v4163_v60 = vld [vmem:[#allocation9 + $0x98] sm:$0xff]  ;;  %v4202_v40 = vld [vmem:[#allocation9 + $0x1d0] sm:$0xff] }
 0x1cf   : > { %1306 = vmatpush.bf16.msrb.mxu3 %v4163_v60 }
 0x1d0   : > { %853 = vmatmul.bf16.gmra.mxu3 %v5015_v3  ;;  %1921 = vmatmul.bf16.gmra.mxu1 %v4872_v57  ;;  %v584_v57 = vmax.f32 %v5028_v27, 0.0  ;;  %657 = vst [vmem:[#allocation2 + $0x189] sm:$0xff] %v5039_v59 }
 0x1d1   : > { %v5021_v4 = vpop.f32.mrf.mxu0 }
 0x1d2   : > { %5866 = vst [vmem:[#allocation23_spill] sm:$0xff] %v5021_v4 }
 0x1d3   : > { %v1050_v10 = vpop.f32.mrf.mxu2  ;;  %656 = vst [vmem:[#allocation2 + $0x181] sm:$0xff] %v584_v57  ;;  %1307 = vmatpush.bf16.msrb.mxu3 %v4162_v55 }
 0x1d5   : > { %v816_v19 = vpop.f32.mrf.mxu1 }
 0x1d6   : > { %v5023_v51 = vadd.f32 %v1050_v10, %v816_v19  ;;  %v2094_v10 = vld [vmem:[#allocation2 + $0x9a] sm:$0xff] }
 0x1d7   : > { %v5046_v23 = vpack.c.bf16 %v2094_v10, %v2093_v6  ;;  %1308 = vmatpush.bf16.msrb.mxu3 %v4161_v45  ;;  %v2096_v6 = vld [vmem:[#allocation2 + $0xb2] sm:$0xff]  ;;  %v4199_v45 = vld [vmem:[#allocation9 + $0x1b8] sm:$0xff] }
 0x1d8   : > { %2224 = vmatmul.bf16.gmra.mxu2 %v5025_v25  ;;  %v4201_v10 = vld [vmem:[#allocation9 + $0x1c8] sm:$0xff] }
 0x1d9   : > { %v5032_v24 = vpop.f32.mrf.mxu0 }
 0x1da   : > { %5867 = vst [vmem:[#allocation24_spill] sm:$0xff] %v5032_v24 }
 0x1db   : > { %v1053_v29 = vpop.f32.mrf.mxu2 }
 0x1dc   : > { %1668 = vmatmul.bf16.gmra.mxu0 %v703_v7 }
 0x1dd   : > { %v819_v44 = vpop.f32.mrf.mxu1 }
 0x1de   : > { %v5034_v32 = vadd.f32 %v1053_v29, %v819_v44  ;;  %v4203_v29 = vld [vmem:[#allocation9 + $0x1d8] sm:$0xff] }
 0x1e0   : > { %1072 = vmatmul.bf16.vlgmr.msra.gmra.mxu3 %v4965_v26  ;;  %1926 = vmatmul.bf16.gmra.mxu1 %v4878_v2  ;;  %v4204_v2 = vld [vmem:[#allocation9 + $0x1e0] sm:$0xff] }
 0x1e1   : > { %v5042_v18 = vpop.f32.mrf.mxu0  ;;  %2796 = vmatpush.bf16.msra.mxu0 %v4204_v2  ;;  %v4200_v2 = vld [vmem:[#allocation9 + $0x1c0] sm:$0xff] }
 0x1e2   : > { %5868 = vst [vmem:[#allocation25_spill] sm:$0xff] %v5042_v18 }
 0x1e3   : > { %v1055_v7 = vpop.f32.mrf.mxu2 }
 0x1e5   : > { %v821_v19 = vpop.f32.mrf.mxu1  ;;  %2797 = vmatpush.bf16.msra.mxu0 %v4203_v29 }
 0x1e6   : > { %v5044_v21 = vadd.f32 %v1055_v7, %v821_v19  ;;  %v2095_v7 = vld [vmem:[#allocation2 + $0xaa] sm:$0xff] }
 0x1e7   : > { %v5058_v55 = vpack.c.bf16 %v2096_v6, %v2095_v7  ;;  %v2097_v6 = vld [vmem:[#allocation2 + $0xc2] sm:$0xff] }
 0x1e8   : > { %2229 = vmatmul.bf16.gmra.mxu2 %v5046_v23 }
 0x1e9   : > { %v5050_v44 = vpop.f32.mrf.mxu0  ;;  %2798 = vmatpush.bf16.msra.mxu0 %v4202_v40 }
 0x1ea   : > { %5869 = vst [vmem:[#allocation26_spill] sm:$0xff] %v5050_v44 }
 0x1eb   : > { %v1058_v27 = vpop.f32.mrf.mxu2 }
 0x1ec   : > { %1673 = vmatmul.bf16.gmra.mxu0 %v5000_v33  ;;  %v4160_v33 = vld [vmem:[#allocation9 + $0x80] sm:$0xff] }
 0x1ed   : > { %v824_v43 = vpop.f32.mrf.mxu1  ;;  %2799 = vmatpush.bf16.msra.mxu0 %v4201_v10  ;;  %1309 = vmatpush.bf16.msrb.mxu3 %v4160_v33  ;;  %v2098_v10 = vld [vmem:[#allocation2 + $0xca] sm:$0xff] }
 0x1ee   : > { %v5052_v47 = vadd.f32 %v1058_v27, %v824_v43  ;;  %v1518_v33 = vld [vmem:[#allocation2 + $0x188] sm:$0xff] }
 0x1f0   : > { %1077 = vmatmul.bf16.gmra.mxu3 %v4939_v35  ;;  %1931 = vmatmul.bf16.gmra.mxu1 %v4883_v13  ;;  %v5064_v13 = vpack.c.bf16 %v5039_v59, %v584_v57  ;;  %v1517_v57 = vld [vmem:[#allocation2 + $0x180] sm:$0xff] }
 0x1f1   : > { %v5060_v27 = vpop.f32.mrf.mxu0  ;;  %2800 = vmatpush.bf16.msra.mxu0 %v4200_v2  ;;  %2495 = vmatpush.bf16.msra.mxu3 %v4199_v45 }
 0x1f2   : > { %5870 = vst [vmem:[#allocation27_spill] sm:$0xff] %v5060_v27 }
 0x1f3   : > { %v1060_v60 = vpop.f32.mrf.mxu2 }
 0x1f5   : > { %v826_v14 = vpop.f32.mrf.mxu1 }
 0x1f6   : > { %v5056_v19 = vadd.f32 %v1060_v60, %v826_v14 }
 0x1f8   : > { %2234 = vmatmul.bf16.gmra.mxu2 %v5058_v55 }
 0x1f9   : > { %v5071_v60 = vpop.f32.mrf.mxu0 }
 0x1fa   : > { %5871 = vst [vmem:[#allocation28_spill] sm:$0xff] %v5071_v60 }
 0x1fb   : > { %v1063_v29 = vpop.f32.mrf.mxu2 }
 0x1fc   : > { %1678 = vmatmul.bf16.gmra.mxu0 %v5015_v3  ;;  %v5075_v3 = vpack.c.bf16 %v2098_v10, %v2097_v6 }
 0x1fd   : > { %v829_v43 = vpop.f32.mrf.mxu1 }
 0x1fe   : > { %v5067_v40 = vadd.f32 %v1063_v29, %v829_v43  ;;  %v1534_v29 = vpack.c.bf16 %v1518_v33, %v1517_v57  ;;  %v4215_v43 = vld [vmem:[#allocation9 + $0x238] sm:$0xff] }
 0x1ff   : > { %3091 = vmatpush.bf16.msra.mxu1 %v4215_v43  ;;  %v2681_v43 = vld [vmem:[#allocation2 + $0x39] sm:$0xff] }
 0x200   : > { %1082 = vmatmul.bf16.gmra.mxu3 %v4956_v17  ;;  %1936 = vmatmul.bf16.gmra.mxu1 %v4891_v22 }
 0x201   : > { %v5078_v22 = vpop.f32.mrf.mxu0 }
 0x202   : > { %5872 = vst [vmem:[#allocation29_spill] sm:$0xff] %v5078_v22 }
 0x203   : > { %v1065_v7 = vpop.f32.mrf.mxu2 }
 0x205   : > { %v831_v14 = vpop.f32.mrf.mxu1 }
 0x206   : > { %v5073_v2 = vadd.f32 %v1065_v7, %v831_v14  ;;  %v2099_v7 = vld [vmem:[#allocation2 + $0xda] sm:$0xff]  ;;  %v2100_v14 = vld [vmem:[#allocation2 + $0xe2] sm:$0xff] }
 0x207   : > { %v5088_v44 = vpack.c.bf16 %v2100_v14, %v2099_v7  ;;  %v2101_v14 = vld [vmem:[#allocation2 + $0xf2] sm:$0xff] }
 0x208   : > { %2239 = vmatmul.bf16.gmra.mxu2 %v5075_v3 }
 0x209   : > { %v5084_v57 = vpop.f32.mrf.mxu0 }
 0x20a   : > { %5873 = vst [vmem:[#allocation30_spill] sm:$0xff] %v5084_v57 }
 0x20b   : > { %v1068_v27 = vpop.f32.mrf.mxu2 }
 0x20c   : > { %1683 = vmatmul.bf16.gmra.mxu0 %v1534_v29  ;;  %v2680_v29 = vld [vmem:[#allocation2 + $0x31] sm:$0xff] }
 0x20d   : > { %v834_v45 = vpop.f32.mrf.mxu1  ;;  %v2712_v22 = vpack.c.bf16 %v2681_v43, %v2680_v29  ;;  %v2683_v43 = vld [vmem:[#allocation2 + $0x51] sm:$0xff]  ;;  %v4214_v29 = vld [vmem:[#allocation9 + $0x230] sm:$0xff] }
 0x20e   : > { %v5080_v60 = vadd.f32 %v1068_v27, %v834_v45  ;;  %v1189_v27 = vld [vmem:[#allocation2 + $0x2] sm:$0xff]  ;;  %v1190_v45 = vld [vmem:[#allocation2 + $0xa] sm:$0xff]  ;;  %3092 = vmatpush.bf16.msra.mxu1 %v4214_v29 }
 0x20f   : > { %v1221_v18 = vpack.c.bf16 %v1190_v45, %v1189_v27 }
 0x210   : > { %1087 = vmatmul.bf16.gmra.mxu3 %v4974_v38  ;;  %1941 = vmatmul.bf16.gmra.mxu1 %v4903_v46 }
 0x211   : > { %v5093_v24 = vpop.f32.mrf.mxu0 }
 0x212   : > { %5875 = vst [vmem:[#allocation32_spill] sm:$0xff] %v5093_v24 }
 0x213   : > { %v1070_v10 = vpop.f32.mrf.mxu2 }
 0x215   : > { %v836_v6 = vpop.f32.mrf.mxu1 }
 0x216   : > { %v5086_v33 = vadd.f32 %v1070_v10, %v836_v6  ;;  %v4198_v6 = vld [vmem:[#allocation9 + $0x1b0] sm:$0xff] }
 0x217   : > { %2496 = vmatpush.bf16.msra.mxu3 %v4198_v6  ;;  %v2102_v10 = vld [vmem:[#allocation2 + $0xfa] sm:$0xff] }
 0x218   : > { %2244 = vmatmul.bf16.gmra.mxu2 %v5088_v44  ;;  %v5100_v4 = vpack.c.bf16 %v2102_v10, %v2101_v14  ;;  %v2103_v14 = vld [vmem:[#allocation2 + $0x10a] sm:$0xff]  ;;  %v2104_v10 = vld [vmem:[#allocation2 + $0x112] sm:$0xff] }
 0x219   : > { %v5103_v27 = vpop.f32.mrf.mxu0 }
 0x21a   : > { %5877 = vst [vmem:[#allocation34_spill] sm:$0xff] %v5103_v27  ;;  %v5117_v27 = vpack.c.bf16 %v2104_v10, %v2103_v14  ;;  %v2105_v10 = vld [vmem:[#allocation2 + $0x122] sm:$0xff] }
 0x21b   : > { %v5128_v42 = vpop.f32.mrf.mxu2 }
 0x21c   : > { %2801 = vmatmul.bf16.vlgmr.msra.gmra.mxu0 %v2712_v22  ;;  %v2682_v22 = vld [vmem:[#allocation2 + $0x49] sm:$0xff]  ;;  %5883 = vst [vmem:[#allocation40_spill] sm:$0xff] %v5128_v42 }
 0x21d   : > { %v5091_v46 = vpop.f32.mrf.mxu1  ;;  %v4212_v42 = vld [vmem:[#allocation9 + $0x220] sm:$0xff] }
 0x21e   : > { %5874 = vst [vmem:[#allocation31_spill] sm:$0xff] %v5091_v46 }
 0x220   : > { %1310 = vmatmul.bf16.vlgmr.msrb.gmra.mxu3 %v1221_v18  ;;  %1946 = vmatmul.bf16.gmra.mxu1 %v4915_v61  ;;  %v2713_v18 = vpack.c.bf16 %v2683_v43, %v2682_v22  ;;  %v2685_v43 = vld [vmem:[#allocation2 + $0x69] sm:$0xff]  ;;  %v2684_v22 = vld [vmem:[#allocation2 + $0x61] sm:$0xff] }
 0x221   : > { %v5113_v24 = vpop.f32.mrf.mxu0  ;;  %v2714_v29 = vpack.c.bf16 %v2685_v43, %v2684_v22  ;;  %v5134_v22 = vpack.c.bf16 %v2106_v49, %v2105_v10 }
 0x222   : > { %5879 = vst [vmem:[#allocation36_spill] sm:$0xff] %v5113_v24  ;;  %v4197_v24 = vld [vmem:[#allocation9 + $0x1a8] sm:$0xff] }
 0x223   : > { %v5096_v7 = vpop.f32.mrf.mxu3  ;;  %2497 = vmatpush.bf16.msra.mxu3 %v4197_v24  ;;  %v5141_v24 = vpop.f32.mrf.mxu2 }
 0x224   : > { %5886 = vst [vmem:[#allocation43_spill] sm:$0xff] %v5141_v24 }
 0x225   : > { %v5098_v57 = vpop.f32.mrf.mxu1 }
 0x226   : > { %5876 = vst [vmem:[#allocation33_spill] sm:$0xff] %v5098_v57 }
 0x228   : > { %2249 = vmatmul.bf16.gmra.mxu2 %v5100_v4 }
 0x22b   : > { %v5105_v45 = vpop.f32.mrf.mxu3 }
 0x22c   : > { %2806 = vmatmul.bf16.gmra.mxu0 %v2713_v18 }
 0x22d   : > { %v5107_v61 = vpop.f32.mrf.mxu1 }
 0x22e   : > { %5878 = vst [vmem:[#allocation35_spill] sm:$0xff] %v5107_v61 }
 0x230   : > { %1315 = vmatmul.bf16.gmra.mxu3 %v4963_v39  ;;  %1951 = vmatmul.bf16.gmra.mxu1 %v4928_v31  ;;  %v5124_v31 = vpop.f32.mrf.mxu0 }
 0x231   : > { %5882 = vst [vmem:[#allocation39_spill] sm:$0xff] %v5124_v31  ;;  %v2686_v31 = vld [vmem:[#allocation2 + $0x79] sm:$0xff] }
 0x233   : > { %v5111_v6 = vpop.f32.mrf.mxu3 }
 0x235   : > { %v5115_v56 = vpop.f32.mrf.mxu1 }
 0x236   : > { %5880 = vst [vmem:[#allocation37_spill] sm:$0xff] %v5115_v56  ;;  %v4213_v56 = vld [vmem:[#allocation9 + $0x228] sm:$0xff] }
 0x237   : > { %3093 = vmatpush.bf16.msra.mxu1 %v4213_v56 }
 0x238   : > { %2254 = vmatmul.bf16.gmra.mxu2 %v5117_v27 }
 0x23b   : > { %v5120_v18 = vpop.f32.mrf.mxu3  ;;  %3094 = vmatpush.bf16.msra.mxu1 %v4212_v42 }
 0x23c   : > { %2811 = vmatmul.bf16.gmra.mxu0 %v2714_v29  ;;  %v2687_v29 = vld [vmem:[#allocation2 + $0x81] sm:$0xff] }
 0x23d   : > { %v5122_v39 = vpop.f32.mrf.mxu1 }
 0x23e   : > { %5881 = vst [vmem:[#allocation38_spill] sm:$0xff] %v5122_v39  ;;  %v5136_v39 = vpop.f32.mrf.mxu0 }
 0x23f   : > { %5885 = vst [vmem:[#allocation42_spill] sm:$0xff] %v5136_v39  ;;  %v2107_v39 = vld [vmem:[#allocation2 + $0x13a] sm:$0xff] }
 0x240   : > { %1320 = vmatmul.bf16.gmra.mxu3 %v4981_v0  ;;  %1956 = vmatmul.bf16.gmra.mxu1 %v4946_v63  ;;  %v2715_v63 = vpack.c.bf16 %v2687_v29, %v2686_v31  ;;  %v5153_v31 = vpop.f32.mrf.mxu2  ;;  %v2689_v29 = vld [vmem:[#allocation2 + $0x99] sm:$0xff] }
 0x241   : > { %5890 = vst [vmem:[#allocation47_spill] sm:$0xff] %v5153_v31  ;;  %v2110_v31 = vld [vmem:[#allocation2 + $0x15a] sm:$0xff] }
 0x243   : > { %v5130_v14 = vpop.f32.mrf.mxu3 }
 0x245   : > { %v5132_v43 = vpop.f32.mrf.mxu1 }
 0x246   : > { %5884 = vst [vmem:[#allocation41_spill] sm:$0xff] %v5132_v43  ;;  %v5147_v49 = vpop.f32.mrf.mxu0  ;;  %v2108_v43 = vld [vmem:[#allocation2 + $0x142] sm:$0xff] }
 0x247   : > { %5888 = vst [vmem:[#allocation45_spill] sm:$0xff] %v5147_v49  ;;  %v5155_v56 = vpack.c.bf16 %v2108_v43, %v2107_v39  ;;  %v4196_v39 = vld [vmem:[#allocation9 + $0x1a0] sm:$0xff] }
 0x248   : > { %2259 = vmatmul.bf16.gmra.mxu2 %v5134_v22  ;;  %v5164_v57 = vpop.f32.mrf.mxu2  ;;  %2498 = vmatpush.bf16.msra.mxu3 %v4196_v39 }
 0x249   : > { %5893 = vst [vmem:[#allocation50_spill] sm:$0xff] %v5164_v57  ;;  %v2690_v57 = vld [vmem:[#allocation2 + $0xa9] sm:$0xff] }
 0x24b   : > { %v5139_v9 = vpop.f32.mrf.mxu3 }
 0x24c   : > { %2816 = vmatmul.bf16.gmra.mxu0 %v2715_v63  ;;  %v2688_v63 = vld [vmem:[#allocation2 + $0x91] sm:$0xff] }
 0x24d   : > { %v5143_v61 = vpop.f32.mrf.mxu1 }
 0x24e   : > { %5887 = vst [vmem:[#allocation44_spill] sm:$0xff] %v5143_v61  ;;  %v2716_v61 = vpack.c.bf16 %v2689_v29, %v2688_v63 }
 0x250   : > { %1325 = vmatmul.bf16.gmra.mxu3 %v4994_v52  ;;  %1961 = vmatmul.bf16.gmra.mxu1 %v4965_v26  ;;  %v5160_v26 = vpop.f32.mrf.mxu0 }
 0x251   : > { %5891 = vst [vmem:[#allocation48_spill] sm:$0xff] %v5160_v26 }
 0x253   : > { %v5149_v10 = vpop.f32.mrf.mxu3 }
 0x255   : > { %v5151_v1 = vpop.f32.mrf.mxu1 }
 0x256   : > { %5889 = vst [vmem:[#allocation46_spill] sm:$0xff] %v5151_v1  ;;  %v2109_v1 = vld [vmem:[#allocation2 + $0x152] sm:$0xff] }
 0x257   : > { %v5173_v26 = vpack.c.bf16 %v2110_v31, %v2109_v1  ;;  %v4211_v1 = vld [vmem:[#allocation9 + $0x218] sm:$0xff] }
 0x258   : > { %2264 = vmatmul.bf16.gmra.mxu2 %v5155_v56  ;;  %v5171_v63 = vpop.f32.mrf.mxu0  ;;  %3095 = vmatpush.bf16.msra.mxu1 %v4211_v1 }
 0x259   : > { %5894 = vst [vmem:[#allocation51_spill] sm:$0xff] %v5171_v63  ;;  %v2111_v63 = vld [vmem:[#allocation2 + $0x16a] sm:$0xff] }
 0x25b   : > { %v5158_v24 = vpop.f32.mrf.mxu3 }
 0x25c   : > { %2821 = vmatmul.bf16.gmra.mxu0 %v2716_v61  ;;  %v2691_v61 = vld [vmem:[#allocation2 + $0xb1] sm:$0xff] }
 0x25d   : > { %v5162_v49 = vpop.f32.mrf.mxu1  ;;  %v2717_v39 = vpack.c.bf16 %v2691_v61, %v2690_v57  ;;  %v2693_v61 = vld [vmem:[#allocation2 + $0xc9] sm:$0xff] }
 0x25e   : > { %5892 = vst [vmem:[#allocation49_spill] sm:$0xff] %v5162_v49 }
 0x260   : > { %1330 = vmatmul.bf16.gmra.mxu3 %v5010_v15  ;;  %1966 = vmatmul.bf16.gmra.mxu1 %v4939_v35  ;;  %v5178_v35 = vpop.f32.mrf.mxu2 }
 0x261   : > { %5896 = vst [vmem:[#allocation53_spill] sm:$0xff] %v5178_v35 }
 0x263   : > { %v1073_v43 = vpop.f32.mrf.mxu3 }
 0x264   : > { %v5169_v29 = vadd.f32 %v1073_v43, %v5096_v7  ;;  %v5183_v7 = vpop.f32.mrf.mxu0 }
 0x265   : > { %v5175_v49 = vpop.f32.mrf.mxu1  ;;  %5897 = vst [vmem:[#allocation54_spill] sm:$0xff] %v5183_v7 }
 0x266   : > { %5895 = vst [vmem:[#allocation52_spill] sm:$0xff] %v5175_v49  ;;  %v2112_v49 = vld [vmem:[#allocation2 + $0x172] sm:$0xff] }
 0x268   : > { %2269 = vmatmul.bf16.gmra.mxu2 %v5173_v26  ;;  %v5189_v57 = vpop.f32.mrf.mxu2 }
 0x269   : > { %5899 = vst [vmem:[#allocation56_spill] sm:$0xff] %v5189_v57 }
 0x26b   : > { %v1075_v37 = vpop.f32.mrf.mxu3 }
 0x26c   : > { %v5181_v46 = vadd.f32 %v1075_v37, %v5105_v45  ;;  %2826 = vmatmul.bf16.gmra.mxu0 %v2717_v39  ;;  %v4210_v37 = vld [vmem:[#allocation9 + $0x210] sm:$0xff]  ;;  %v5194_v45 = vpack.c.bf16 %v2112_v49, %v2111_v63  ;;  %v5197_v7 = vpop.f32.mrf.mxu0  ;;  %v4195_v63 = vld [vmem:[#allocation9 + $0x198] sm:$0xff] }
 0x26d   : > { %v5187_v31 = vpop.f32.mrf.mxu1  ;;  %3096 = vmatpush.bf16.msra.mxu1 %v4210_v37  ;;  %v2692_v39 = vld [vmem:[#allocation2 + $0xc1] sm:$0xff]  ;;  %5900 = vst [vmem:[#allocation57_spill] sm:$0xff] %v5197_v7  ;;  %2499 = vmatpush.bf16.msra.mxu3 %v4195_v63 }
 0x26e   : > { %5898 = vst [vmem:[#allocation55_spill] sm:$0xff] %v5187_v31  ;;  %v2718_v1 = vpack.c.bf16 %v2693_v61, %v2692_v39  ;;  %v2113_v37 = vld [vmem:[#allocation2 + $0x182] sm:$0xff]  ;;  %v2114_v61 = vld [vmem:[#allocation2 + $0x18a] sm:$0xff] }
 0x270   : > { %1335 = vmatmul.bf16.gmra.mxu3 %v5025_v25  ;;  %1971 = vmatmul.bf16.gmra.mxu1 %v4956_v17  ;;  %v4209_v17 = vld [vmem:[#allocation9 + $0x208] sm:$0xff]  ;;  %v5204_v49 = vpop.f32.mrf.mxu2 }
 0x271   : > { %3097 = vmatpush.bf16.msra.mxu1 %v4209_v17 }
 0x273   : > { %v1078_v43 = vpop.f32.mrf.mxu3 }
 0x274   : > { %v5192_v42 = vadd.f32 %v1078_v43, %v5111_v6  ;;  %v4208_v6 = vld [vmem:[#allocation9 + $0x200] sm:$0xff]  ;;  %v5208_v17 = vpop.f32.mrf.mxu0 }
 0x275   : > { %v5199_v35 = vpop.f32.mrf.mxu1  ;;  %3098 = vmatpush.bf16.msra.mxu1 %v4208_v6  ;;  %5902 = vst [vmem:[#allocation59_spill] sm:$0xff] %v5208_v17 }
 0x276   : > { %5901 = vst [vmem:[#allocation58_spill] sm:$0xff] %v5199_v35 }
 0x278   : > { %2274 = vmatmul.bf16.gmra.mxu2 %v5194_v45  ;;  %v5217_v6 = vpop.f32.mrf.mxu2 }
 0x27b   : > { %v1080_v31 = vpop.f32.mrf.mxu3 }
 0x27c   : > { %v5202_v57 = vadd.f32 %v1080_v31, %v5120_v18  ;;  %2831 = vmatmul.bf16.gmra.mxu0 %v2718_v1  ;;  %v5215_v31 = vpack.c.bf16 %v2114_v61, %v2113_v37  ;;  %v2695_v1 = vld [vmem:[#allocation2 + $0xe1] sm:$0xff]  ;;  %v5223_v17 = vpop.f32.mrf.mxu0 }
 0x27d   : > { %v5213_v18 = vpop.f32.mrf.mxu1  ;;  %5904 = vst [vmem:[#allocation61_spill] sm:$0xff] %v5223_v17  ;;  %v4223_v61 = vld [vmem:[#allocation10 + $0x38] sm:$0xff] }
 0x27e   : > { %5903 = vst [vmem:[#allocation60_spill] sm:$0xff] %v5213_v18  ;;  %v2697_v18 = vld [vmem:[#allocation2 + $0xf9] sm:$0xff]  ;;  %3460 = vmatpush.bf16.msra.mxu2 %v4223_v61 }
 0x280   : > { %1340 = vmatmul.bf16.gmra.mxu3 %v5046_v23  ;;  %1976 = vmatmul.bf16.gmra.mxu1 %v4974_v38  ;;  %v2694_v38 = vld [vmem:[#allocation2 + $0xd9] sm:$0xff] }
 0x281   : > { %v2719_v7 = vpack.c.bf16 %v2695_v1, %v2694_v38 }
 0x283   : > { %v1083_v43 = vpop.f32.mrf.mxu3 }
 0x284   : > { %v5211_v39 = vadd.f32 %v1083_v43, %v5130_v14  ;;  %v5232_v1 = vpop.f32.mrf.mxu0 }
 0x285   : > { %v5225_v14 = vpop.f32.mrf.mxu1  ;;  %5905 = vst [vmem:[#allocation62_spill] sm:$0xff] %v5232_v1 }
 0x288   : > { %2279 = vmatmul.bf16.gmra.mxu2 %v5215_v31 }
 0x28b   : > { %v1085_v63 = vpop.f32.mrf.mxu3 }
 0x28c   : > { %v5221_v35 = vadd.f32 %v1085_v63, %v5139_v9  ;;  %2836 = vmatmul.bf16.gmra.mxu0 %v2719_v7  ;;  %v2696_v9 = vld [vmem:[#allocation2 + $0xf1] sm:$0xff] }
 0x28d   : > { %v5234_v38 = vpop.f32.mrf.mxu1  ;;  %v2720_v7 = vpack.c.bf16 %v2697_v18, %v2696_v9  ;;  %v2699_v18 = vld [vmem:[#allocation2 + $0x111] sm:$0xff]  ;;  %v2698_v9 = vld [vmem:[#allocation2 + $0x109] sm:$0xff] }
 0x28e   : > { %5906 = vst [vmem:[#allocation63_spill] sm:$0xff] %v5234_v38  ;;  %v2721_v38 = vpack.c.bf16 %v2699_v18, %v2698_v9  ;;  %v2700_v9 = vld [vmem:[#allocation2 + $0x121] sm:$0xff] }
 0x290   : > { %1345 = vmatmul.bf16.gmra.mxu3 %v5058_v55  ;;  %1981 = vmatmul.bf16.gmra.mxu1 %v5064_v13  ;;  %v4194_v13 = vld [vmem:[#allocation9 + $0x190] sm:$0xff] }
 0x291   : > { %2500 = vmatpush.bf16.msra.mxu3 %v4194_v13 }
 0x293   : > { %v1088_v43 = vpop.f32.mrf.mxu3 }
 0x294   : > { %v5230_v37 = vadd.f32 %v1088_v43, %v5149_v10  ;;  %v5241_v10 = vpop.f32.mrf.mxu0 }
 0x295   : > { %5907 = vst [vmem:[#allocation64_spill] sm:$0xff] %v5241_v10  ;;  %v5243_v1 = vpop.f32.mrf.mxu1  ;;  %v2701_v10 = vld [vmem:[#allocation2 + $0x129] sm:$0xff] }
 0x296   : > { %5908 = vst [vmem:[#allocation65_spill] sm:$0xff] %v5243_v1 }
 0x29b   : > { %v1090_v63 = vpop.f32.mrf.mxu3 }
 0x29c   : > { %v5237_v17 = vadd.f32 %v1090_v63, %v5158_v24  ;;  %2841 = vmatmul.bf16.gmra.mxu0 %v2720_v7  ;;  %v5250_v7 = vpop.f32.mrf.mxu0 }
 0x29d   : > { %5909 = vst [vmem:[#allocation66_spill] sm:$0xff] %v5250_v7  ;;  %v5252_v63 = vpop.f32.mrf.mxu1  ;;  %v2722_v7 = vpack.c.bf16 %v2701_v10, %v2700_v9  ;;  %v2702_v10 = vld [vmem:[#allocation2 + $0x139] sm:$0xff]  ;;  %v2703_v9 = vld [vmem:[#allocation2 + $0x141] sm:$0xff] }
 0x29e   : > { %5910 = vst [vmem:[#allocation67_spill] sm:$0xff] %v5252_v63 }
 0x2a0   : > { %1350 = vmatmul.bf16.gmra.mxu3 %v5075_v3  ;;  %3099 = vmatmul.bf16.vlgmr.msra.gmra.mxu1 %v4981_v0 }
 0x2a3   : > { %v1311_v43 = vpop.f32.mrf.mxu3 }
 0x2a4   : > { %v5246_v61 = vadd.f32 %v1311_v43, %v4893_v30  ;;  %v5259_v30 = vpop.f32.mrf.mxu0  ;;  %v4222_v43 = vld [vmem:[#allocation10 + $0x30] sm:$0xff] }
 0x2a5   : > { %5911 = vst [vmem:[#allocation68_spill] sm:$0xff] %v5259_v30  ;;  %v5261_v18 = vpop.f32.mrf.mxu1  ;;  %3461 = vmatpush.bf16.msra.mxu2 %v4222_v43 }
 0x2a6   : > { %5912 = vst [vmem:[#allocation69_spill] sm:$0xff] %v5261_v18  ;;  %v4220_v18 = vld [vmem:[#allocation10 + $0x20] sm:$0xff] }
 0x2ab   : > { %v5248_v24 = vpop.f32.mrf.mxu3 }
 0x2ac   : > { %2846 = vmatmul.bf16.gmra.mxu0 %v2721_v38  ;;  %v5266_v1 = vpop.f32.mrf.mxu0 }
 0x2ad   : > { %5913 = vst [vmem:[#allocation70_spill] sm:$0xff] %v5266_v1 }
 0x2b0   : > { %1355 = vmatmul.bf16.gmra.mxu3 %v5088_v44  ;;  %3104 = vmatmul.bf16.gmra.mxu1 %v4994_v52  ;;  %v5270_v52 = vpop.f32.mrf.mxu1 }
 0x2b1   : > { %5914 = vst [vmem:[#allocation71_spill] sm:$0xff] %v5270_v52  ;;  %v2705_v52 = vld [vmem:[#allocation2 + $0x159] sm:$0xff] }
 0x2b3   : > { %v1316_v0 = vpop.f32.mrf.mxu3 }
 0x2b4   : > { %v5257_v13 = vadd.f32 %v1316_v0, %v4922_v12  ;;  %v4193_v12 = vld [vmem:[#allocation9 + $0x188] sm:$0xff]  ;;  %v5275_v30 = vpop.f32.mrf.mxu0 }
 0x2b5   : > { %2501 = vmatpush.bf16.msra.mxu3 %v4193_v12 }
 0x2bb   : > { %v1318_v38 = vpop.f32.mrf.mxu3 }
 0x2bc   : > { %v5264_v63 = vadd.f32 %v1318_v38, %v4926_v28  ;;  %2851 = vmatmul.bf16.gmra.mxu0 %v2722_v7  ;;  %v2723_v28 = vpack.c.bf16 %v2703_v9, %v2702_v10  ;;  %v5277_v38 = vpop.f32.mrf.mxu1  ;;  %v5284_v12 = vpop.f32.mrf.mxu0  ;;  %v4221_v10 = vld [vmem:[#allocation10 + $0x28] sm:$0xff] }
 0x2bd   : > { %5915 = vst [vmem:[#allocation72_spill] sm:$0xff] %v5277_v38  ;;  %v2704_v9 = vld [vmem:[#allocation2 + $0x151] sm:$0xff]  ;;  %3462 = vmatpush.bf16.msra.mxu2 %v4221_v10 }
 0x2be   : > { %v2724_v38 = vpack.c.bf16 %v2705_v52, %v2704_v9  ;;  %v2706_v52 = vld [vmem:[#allocation2 + $0x169] sm:$0xff]  ;;  %v2707_v10 = vld [vmem:[#allocation2 + $0x171] sm:$0xff] }
 0x2c0   : > { %1360 = vmatmul.bf16.gmra.mxu3 %v5100_v4  ;;  %3109 = vmatmul.bf16.gmra.mxu1 %v5010_v15 }
 0x2c1   : > { %3463 = vmatpush.bf16.msra.mxu2 %v4220_v18 }
 0x2c3   : > { %v1321_v0 = vpop.f32.mrf.mxu3 }
 0x2c4   : > { %v5273_v43 = vadd.f32 %v1321_v0, %v4937_v50  ;;  %v5289_v0 = vpop.f32.mrf.mxu1 }
 0x2c5   : > { %5916 = vst [vmem:[#allocation73_spill] sm:$0xff] %v5289_v0 }
 0x2cb   : > { %v1323_v7 = vpop.f32.mrf.mxu3 }
 0x2cc   : > { %v5280_v1 = vadd.f32 %v1323_v7, %v4944_v62  ;;  %2856 = vmatmul.bf16.gmra.mxu0 %v2723_v28  ;;  %v5294_v7 = vpop.f32.mrf.mxu0 }
 0x2d0   : > { %1365 = vmatmul.bf16.gmra.mxu3 %v5117_v27  ;;  %3114 = vmatmul.bf16.gmra.mxu1 %v5025_v25  ;;  %v5296_v25 = vpop.f32.mrf.mxu1 }
 0x2d1   : > { %5917 = vst [vmem:[#allocation74_spill] sm:$0xff] %v5296_v25 }
 0x2d3   : > { %v1326_v15 = vpop.f32.mrf.mxu3 }
 0x2d4   : > { %v5287_v50 = vadd.f32 %v1326_v15, %v4954_v16  ;;  %v4192_v16 = vld [vmem:[#allocation9 + $0x180] sm:$0xff]  ;;  %v5303_v9 = vpop.f32.mrf.mxu0 }
 0x2d5   : > { %2502 = vmatpush.bf16.msra.mxu3 %v4192_v16 }
 0x2db   : > { %v1328_v62 = vpop.f32.mrf.mxu3 }
 0x2dc   : > { %v5292_v28 = vadd.f32 %v1328_v62, %v4961_v36  ;;  %2861 = vmatmul.bf16.gmra.mxu0 %v2724_v38  ;;  %v5305_v36 = vpop.f32.mrf.mxu1  ;;  %v2725_v38 = vpack.c.bf16 %v2707_v10, %v2706_v52 }
 0x2dd   : > { %5918 = vst [vmem:[#allocation75_spill] sm:$0xff] %v5305_v36  ;;  %v2708_v36 = vld [vmem:[#allocation2 + $0x181] sm:$0xff] }
 0x2de   : > { %v2726_v52 = vpack.c.bf16 %v5039_v59, %v2708_v36 }
 0x2e0   : > { %1370 = vmatmul.bf16.gmra.mxu3 %v5134_v22  ;;  %3119 = vmatmul.bf16.gmra.mxu1 %v5046_v23  ;;  %v5312_v23 = vpop.f32.mrf.mxu0 }
 0x2e3   : > { %v1331_v15 = vpop.f32.mrf.mxu3 }
 0x2e4   : > { %v5301_v0 = vadd.f32 %v1331_v15, %v4972_v53  ;;  %v5314_v16 = vpop.f32.mrf.mxu1 }
 0x2e5   : > { %5919 = vst [vmem:[#allocation76_spill] sm:$0xff] %v5314_v16 }
 0x2e8   : > { %v5320_v10 = vpop.f32.mrf.mxu0 }
 0x2eb   : > { %v1333_v62 = vpop.f32.mrf.mxu3 }
 0x2ec   : > { %v5308_v25 = vadd.f32 %v1333_v62, %v4979_v11  ;;  %2866 = vmatmul.bf16.gmra.mxu0 %v2725_v38 }
 0x2f0   : > { %1375 = vmatmul.bf16.gmra.mxu3 %v5155_v56  ;;  %3124 = vmatmul.bf16.gmra.mxu1 %v5058_v55  ;;  %v5325_v55 = vpop.f32.mrf.mxu1 }
 0x2f1   : > { %5920 = vst [vmem:[#allocation77_spill] sm:$0xff] %v5325_v55 }
 0x2f3   : > { %v1336_v53 = vpop.f32.mrf.mxu3 }
 0x2f4   : > { %v5317_v15 = vadd.f32 %v1336_v53, %v4987_v8 }
 0x2f8   : > { %v5332_v18 = vpop.f32.mrf.mxu1 }
 0x2f9   : > { %5921 = vst [vmem:[#allocation78_spill] sm:$0xff] %v5332_v18 }
 0x2fb   : > { %v1338_v11 = vpop.f32.mrf.mxu3 }
 0x2fc   : > { %v5323_v38 = vadd.f32 %v1338_v11, %v4992_v20  ;;  %2871 = vmatmul.bf16.gmra.mxu0 %v2726_v52  ;;  %v2383_v11 = vld [vmem:[#allocation2 + $0x38] sm:$0xff] }
 0x300   : > { %1380 = vmatmul.bf16.gmra.mxu3 %v5173_v26  ;;  %3129 = vmatmul.bf16.gmra.mxu1 %v5075_v3  ;;  %v5339_v20 = vpop.f32.mrf.mxu1  ;;  %v4219_v3 = vld [vmem:[#allocation10 + $0x18] sm:$0xff] }
 0x301   : > { %5922 = vst [vmem:[#allocation79_spill] sm:$0xff] %v5339_v20  ;;  %3464 = vmatpush.bf16.msra.mxu2 %v4219_v3  ;;  %v2385_v3 = vld [vmem:[#allocation2 + $0x50] sm:$0xff] }
 0x303   : > { %v1341_v8 = vpop.f32.mrf.mxu3 }
 0x304   : > { %v5330_v62 = vadd.f32 %v1341_v8, %v5002_v34 }
 0x308   : > { %v5344_v8 = vpop.f32.mrf.mxu1 }
 0x309   : > { %5923 = vst [vmem:[#allocation80_spill] sm:$0xff] %v5344_v8  ;;  %v2384_v8 = vld [vmem:[#allocation2 + $0x48] sm:$0xff] }
 0x30a   : > { %v2415_v16 = vpack.c.bf16 %v2385_v3, %v2384_v8  ;;  %v2389_v3 = vld [vmem:[#allocation2 + $0x80] sm:$0xff] }
 0x30b   : > { %v1343_v59 = vpop.f32.mrf.mxu3 }
 0x30c   : > { %v5335_v36 = vadd.f32 %v1343_v59, %v5008_v48  ;;  %v2382_v48 = vld [vmem:[#allocation2 + $0x30] sm:$0xff] }
 0x30d   : > { %v2414_v59 = vpack.c.bf16 %v2383_v11, %v2382_v48 }
 0x310   : > { %1385 = vmatmul.bf16.gmra.mxu3 %v5194_v45  ;;  %3134 = vmatmul.bf16.gmra.mxu1 %v5088_v44 }
 0x313   : > { %v1346_v53 = vpop.f32.mrf.mxu3 }
 0x314   : > { %v5342_v52 = vadd.f32 %v1346_v53, %v5017_v5  ;;  %v5353_v5 = vpop.f32.mrf.mxu1 }
 0x315   : > { %5924 = vst [vmem:[#allocation81_spill] sm:$0xff] %v5353_v5 }
 0x31b   : > { %v1348_v34 = vpop.f32.mrf.mxu3 }
 0x31c   : > { %v5347_v18 = vadd.f32 %v1348_v34, %v5023_v51  ;;  %v5358_v51 = vpop.f32.mrf.mxu1 }
 0x31d   : > { %5925 = vst [vmem:[#allocation82_spill] sm:$0xff] %v5358_v51  ;;  %v2393_v51 = vld [vmem:[#allocation2 + $0xb0] sm:$0xff] }
 0x320   : > { %2503 = vmatmul.bf16.vlgmr.msra.gmra.mxu3 %v2414_v59  ;;  %3139 = vmatmul.bf16.gmra.mxu1 %v5100_v4  ;;  %v2387_v59 = vld [vmem:[#allocation2 + $0x68] sm:$0xff] }
 0x323   : > { %v1351_v44 = vpop.f32.mrf.mxu3 }
 0x324   : > { %v5351_v20 = vadd.f32 %v1351_v44, %v5034_v32  ;;  %v4218_v32 = vld [vmem:[#allocation10 + $0x10] sm:$0xff]  ;;  %v5364_v11 = vpop.f32.mrf.mxu1 }
 0x325   : > { %3465 = vmatpush.bf16.msra.mxu2 %v4218_v32  ;;  %5926 = vst [vmem:[#allocation83_spill] sm:$0xff] %v5364_v11  ;;  %v2386_v44 = vld [vmem:[#allocation2 + $0x60] sm:$0xff]  ;;  %v5378_v32 = vpop.f32.mrf.mxu2  ;;  %v2390_v11 = vld [vmem:[#allocation2 + $0x90] sm:$0xff] }
 0x326   : > { %v2416_v8 = vpack.c.bf16 %v2387_v59, %v2386_v44 }
 0x32b   : > { %v1353_v53 = vpop.f32.mrf.mxu3 }
 0x32c   : > { %v5356_v55 = vadd.f32 %v1353_v53, %v5044_v21 }
 0x330   : > { %2508 = vmatmul.bf16.gmra.mxu3 %v2415_v16  ;;  %3144 = vmatmul.bf16.gmra.mxu1 %v5117_v27  ;;  %v5370_v27 = vpop.f32.mrf.mxu1 }
 0x331   : > { %5927 = vst [vmem:[#allocation84_spill] sm:$0xff] %v5370_v27 }
 0x333   : > { %v1356_v34 = vpop.f32.mrf.mxu3 }
 0x334   : > { %v5362_v4 = vadd.f32 %v1356_v34, %v5052_v47 }
 0x33b   : > { %v1358_v48 = vpop.f32.mrf.mxu3 }
 0x33c   : > { %v5367_v21 = vadd.f32 %v1358_v48, %v5056_v19  ;;  %v2388_v19 = vld [vmem:[#allocation2 + $0x78] sm:$0xff]  ;;  %v5380_v48 = vpop.f32.mrf.mxu1 }
 0x33d   : > { %v2417_v59 = vpack.c.bf16 %v2389_v3, %v2388_v19 }
 0x340   : > { %2513 = vmatmul.bf16.gmra.mxu3 %v2416_v8  ;;  %3149 = vmatmul.bf16.gmra.mxu1 %v5134_v22  ;;  %v5386_v8 = vpop.f32.mrf.mxu2 }
 0x343   : > { %v1361_v16 = vpop.f32.mrf.mxu3 }
 0x344   : > { %v5373_v47 = vadd.f32 %v1361_v16, %v5067_v40  ;;  %v4217_v40 = vld [vmem:[#allocation10 + $0x8] sm:$0xff]  ;;  %v5388_v16 = vpop.f32.mrf.mxu1 }
 0x345   : > { %3466 = vmatpush.bf16.msra.mxu2 %v4217_v40 }
 0x34b   : > { %v1363_v53 = vpop.f32.mrf.mxu3 }
 0x34c   : > { %v5376_v34 = vadd.f32 %v1363_v53, %v5073_v2  ;;  %v2391_v53 = vld [vmem:[#allocation2 + $0x98] sm:$0xff] }
 0x34d   : > { %v2418_v3 = vpack.c.bf16 %v2391_v53, %v2390_v11  ;;  %v2392_v11 = vld [vmem:[#allocation2 + $0xa8] sm:$0xff] }
 0x34e   : > { %5928 = vst [vmem:[#allocation85_spill] sm:$0xff] %v5376_v34 }
 0x350   : > { %2518 = vmatmul.bf16.gmra.mxu3 %v2417_v59  ;;  %3154 = vmatmul.bf16.gmra.mxu1 %v5155_v56  ;;  %v5394_v56 = vpop.f32.mrf.mxu2 }
 0x353   : > { %v1366_v22 = vpop.f32.mrf.mxu3 }
 0x354   : > { %v5384_v44 = vadd.f32 %v1366_v22, %v5080_v60  ;;  %v5396_v60 = vpop.f32.mrf.mxu1 }
 0x356   : > { %5929 = vst [vmem:[#allocation86_spill] sm:$0xff] %v5384_v44  ;;  %v5450_v44 = vpop.f32.mrf.mxu0 }
 0x358   : > { %v5401_v22 = vpop.f32.mrf.mxu2 }
 0x35b   : > { %v1368_v2 = vpop.f32.mrf.mxu3 }
 0x35c   : > { %v5391_v27 = vadd.f32 %v1368_v2, %v5086_v33  ;;  %v5403_v5 = vpop.f32.mrf.mxu1  ;;  %v2419_v2 = vpack.c.bf16 %v2393_v51, %v2392_v11 }
 0x35e   : > { %5930 = vst [vmem:[#allocation87_spill] sm:$0xff] %v5391_v27  ;;  %v2395_v27 = vld [vmem:[#allocation2 + $0xc8] sm:$0xff] }
 0x360   : > { %2523 = vmatmul.bf16.gmra.mxu3 %v2418_v3  ;;  %3159 = vmatmul.bf16.gmra.mxu1 %v5173_v26 }
 0x363   : > { %v1371_v19 = vpop.f32.mrf.mxu3 }
 0x364   : > { %v5399_v59 = vadd.f32 %v1371_v19, %v5169_v29  ;;  %v5412_v29 = vpop.f32.mrf.mxu2  ;;  %v5414_v3 = vpop.f32.mrf.mxu1  ;;  %v4216_v19 = vld [vmem:[#allocation10] sm:$0xff] }
 0x365   : > { %3467 = vmatpush.bf16.msra.mxu2 %v4216_v19 }
 0x366   : > { %5931 = vst [vmem:[#allocation88_spill] sm:$0xff] %v5399_v59 }
 0x36b   : > { %v1373_v40 = vpop.f32.mrf.mxu3 }
 0x36c   : > { %v5406_v33 = vadd.f32 %v1373_v40, %v5181_v46  ;;  %v2394_v40 = vld [vmem:[#allocation2 + $0xc0] sm:$0xff]  ;;  %v5419_v11 = vpop.f32.mrf.mxu2 }
 0x36d   : > { %v2420_v51 = vpack.c.bf16 %v2395_v27, %v2394_v40 }
 0x36e   : > { %5932 = vst [vmem:[#allocation89_spill] sm:$0xff] %v5406_v33 }
 0x370   : > { %2528 = vmatmul.bf16.gmra.mxu3 %v2419_v2  ;;  %3164 = vmatmul.bf16.gmra.mxu1 %v5194_v45  ;;  %v5421_v45 = vpop.f32.mrf.mxu1 }
 0x373   : > { %v1376_v26 = vpop.f32.mrf.mxu3 }
 0x374   : > { %v5410_v53 = vadd.f32 %v1376_v26, %v5192_v42  ;;  %v5427_v26 = vpop.f32.mrf.mxu2 }
 0x376   : > { %5933 = vst [vmem:[#allocation90_spill] sm:$0xff] %v5410_v53  ;;  %v2397_v53 = vld [vmem:[#allocation2 + $0xe0] sm:$0xff] }
 0x37b   : > { %v1378_v59 = vpop.f32.mrf.mxu3 }
 0x37c   : > { %v5417_v46 = vadd.f32 %v1378_v59, %v5202_v57  ;;  %v2396_v59 = vld [vmem:[#allocation2 + $0xd8] sm:$0xff]  ;;  %v5432_v40 = vpop.f32.mrf.mxu2 }
 0x37d   : > { %v2421_v27 = vpack.c.bf16 %v2397_v53, %v2396_v59  ;;  %v2398_v53 = vld [vmem:[#allocation2 + $0xf0] sm:$0xff] }
 0x37e   : > { %5934 = vst [vmem:[#allocation91_spill] sm:$0xff] %v5417_v46 }
 0x380   : > { %2533 = vmatmul.bf16.gmra.mxu3 %v2420_v51  ;;  %3169 = vmatmul.bf16.gmra.mxu1 %v5215_v31 }
 0x383   : > { %v1381_v42 = vpop.f32.mrf.mxu3 }
 0x384   : > { %v5425_v2 = vadd.f32 %v1381_v42, %v5211_v39  ;;  %v1721_v39 = vadd.f32 %v4968_v41, %v5246_v61  ;;  %v2399_v42 = vld [vmem:[#allocation2 + $0xf8] sm:$0xff]  ;;  %v5941_v41 = vld [vmem:[#allocation40_spill] sm:$0xff] }
 0x386   : > { %5935 = vst [vmem:[#allocation92_spill] sm:$0xff] %v5425_v2  ;;  %v1126_v2 = vadd.f32 %v4910_v54, %v4913_v58  ;;  %v5452_v58 = vpop.f32.mrf.mxu1 }
 0x388   : > { %v1424_v59 = vadd.f32 %v5248_v24, %v1126_v2  ;;  %v5943_v2 = vld [vmem:[#allocation18_spill] sm:$0xff] }
 0x38b   : > { %v1383_v19 = vpop.f32.mrf.mxu3 }
 0x38c   : > { %v5430_v57 = vadd.f32 %v1383_v19, %v5221_v35  ;;  %v5444_v19 = vpop.f32.mrf.mxu2 }
 0x38e   : > { %5936 = vst [vmem:[#allocation93_spill] sm:$0xff] %v5430_v57  ;;  %v5939_v57 = vld [vmem:[#allocation31_spill] sm:$0xff] }
 0x390   : > { %2538 = vmatmul.bf16.gmra.mxu3 %v2421_v27  ;;  %v2422_v27 = vpack.c.bf16 %v2399_v42, %v2398_v53 }
 0x393   : > { %v1386_v46 = vpop.f32.mrf.mxu3 }
 0x394   : > { %v5435_v51 = vadd.f32 %v1386_v46, %v5230_v37  ;;  %v2019_v37 = vadd.f32 %v5939_v57, %v1721_v39  ;;  %v5940_v46 = vld [vmem:[#allocation17_spill] sm:$0xff]  ;;  %v1723_v57 = vadd.f32 %v5943_v2, %v5257_v13  ;;  %v5944_v39 = vld [vmem:[#allocation43_spill] sm:$0xff] }
 0x396   : > { %5937 = vst [vmem:[#allocation94_spill] sm:$0xff] %v5435_v51  ;;  %v1722_v51 = vadd.f32 %v5940_v46, %v1424_v59  ;;  %v2317_v61 = vadd.f32 %v5941_v41, %v2019_v37  ;;  %v2401_v59 = vld [vmem:[#allocation2 + $0x110] sm:$0xff]  ;;  %v5467_v46 = vpop.f32.mrf.mxu0 }
 0x39b   : > { %v1388_v31 = vpop.f32.mrf.mxu3 }
 0x39c   : > { %v5442_v35 = vadd.f32 %v1388_v31, %v5237_v17  ;;  %v5942_v17 = vld [vmem:[#allocation33_spill] sm:$0xff] }
 0x39d   : > { %v2020_v31 = vadd.f32 %v5942_v17, %v1722_v51  ;;  %v2400_v51 = vld [vmem:[#allocation2 + $0x108] sm:$0xff] }
 0x39e   : > { %5938 = vst [vmem:[#allocation95_spill] sm:$0xff] %v5442_v35  ;;  %v5455_v35 = vpop.f32.mrf.mxu2  ;;  %v2423_v41 = vpack.c.bf16 %v2401_v59, %v2400_v51 }
 0x39f   : > { %v2318_v42 = vadd.f32 %v5944_v39, %v2020_v31 }
 0x3a0   : > { %2543 = vmatmul.bf16.gmra.mxu3 %v2422_v27 }
 0x3a3   : > { %v2504_v33 = vpop.f32.mrf.mxu3 }
 0x3a4   : > { %v2616_v54 = vadd.f32 %v2504_v33, %v2317_v61  ;;  %v5465_v33 = vld [vmem:[%s5848_s4] ss:$0 sm:$0xff] }
 0x3a5   : > { %v5945_v61 = vld [vmem:[#allocation35_spill] sm:$0xff] }
 0x3a6   : > { %v2914_v24 = vadd.f32 %v5275_v30, %v2616_v54  ;;  %v2021_v13 = vadd.f32 %v5945_v61, %v1723_v57  ;;  %v5471_v54 = vpop.f32.mrf.mxu1  ;;  %v5475_v31 = vpop.f32.mrf.mxu2  ;;  %v5948_v61 = vld [vmem:[#allocation37_spill] sm:$0xff] }
 0x3a8   : > { %v3212_v27 = vadd.f32 %v5380_v48, %v2914_v24  ;;  %v5946_v24 = vld [vmem:[#allocation19_spill] sm:$0xff] }
 0x3a9   : > { %v1724_v2 = vadd.f32 %v5946_v24, %v5264_v63 }
 0x3aa   : > { %v3312_v17 = vadd.f32 %v5465_v33, %v3212_v27  ;;  %v5482_v27 = vpop.f32.mrf.mxu0 }
 0x3ab   : > { %v2506_v53 = vpop.f32.mrf.mxu3  ;;  %v2022_v34 = vadd.f32 %v5948_v61, %v1724_v2  ;;  %v2402_v2 = vld [vmem:[#allocation2 + $0x120] sm:$0xff] }
 0x3ac   : > { %v2617_v37 = vadd.f32 %v2506_v53, %v2318_v42  ;;  %v5947_v42 = vld [vmem:[#allocation47_spill] sm:$0xff]  ;;  %v3344_v59 = vmax.f32 %v3312_v17, 0.0 }
 0x3ad   : > { %v2319_v53 = vadd.f32 %v5947_v42, %v2021_v13 }
 0x3ae   : > { %v2915_v30 = vadd.f32 %v5284_v12, %v2617_v37  ;;  %v5487_v63 = vpop.f32.mrf.mxu1  ;;  %v5490_v13 = vpop.f32.mrf.mxu2 }
 0x3b0   : > { %v3213_v48 = vadd.f32 %v5388_v16, %v2915_v30  ;;  %2548 = vmatmul.bf16.gmra.mxu3 %v2423_v41  ;;  %v5949_v30 = vld [vmem:[#allocation20_spill] sm:$0xff] }
 0x3b1   : > { %v1725_v41 = vadd.f32 %v5949_v30, %v5273_v43  ;;  %v5953_v30 = vld [vmem:[#allocation53_spill] sm:$0xff] }
 0x3b2   : > { %v3313_v39 = vadd.f32 %v5465_v33, %v3213_v48  ;;  %v5950_v48 = vld [vmem:[#allocation50_spill] sm:$0xff]  ;;  %v5499_v61 = vpop.f32.mrf.mxu0 }
 0x3b3   : > { %v2509_v12 = vpop.f32.mrf.mxu3  ;;  %v2320_v24 = vadd.f32 %v5950_v48, %v2022_v34  ;;  %v5952_v34 = vld [vmem:[#allocation21_spill] sm:$0xff] }
 0x3b4   : > { %v3345_v37 = vmax.f32 %v3313_v39, 0.0  ;;  %v2618_v57 = vadd.f32 %v2509_v12, %v2319_v53  ;;  %v2403_v39 = vld [vmem:[#allocation2 + $0x128] sm:$0xff] }
 0x3b6   : > { %v3376_v51 = vpack.c.bf16 %v3345_v37, %v3344_v59  ;;  %v2916_v16 = vadd.f32 %v5294_v7, %v2618_v57  ;;  %v2424_v59 = vpack.c.bf16 %v2403_v39, %v2402_v2  ;;  %v5951_v7 = vld [vmem:[#allocation38_spill] sm:$0xff]  ;;  %v5505_v39 = vpop.f32.mrf.mxu2 }
 0x3b7   : > { %v2023_v37 = vadd.f32 %v5951_v7, %v1725_v41 }
 0x3b8   : > { %3468 = vmatmul.bf16.vlgmr.msra.gmra.mxu2 %v3376_v51  ;;  %v3214_v42 = vadd.f32 %v5396_v60, %v2916_v16  ;;  %v1726_v51 = vadd.f32 %v5952_v34, %v5280_v1  ;;  %v5955_v1 = vld [vmem:[#allocation22_spill] sm:$0xff]  ;;  %v2405_v34 = vld [vmem:[#allocation2 + $0x140] sm:$0xff] }
 0x3b9   : > { %v2321_v48 = vadd.f32 %v5953_v30, %v2023_v37 }
 0x3ba   : > { %v3314_v43 = vadd.f32 %v5465_v33, %v3214_v42  ;;  %v5512_v30 = vpop.f32.mrf.mxu0 }
 0x3bb   : > { %v2511_v17 = vpop.f32.mrf.mxu3 }
 0x3bc   : > { %v2619_v53 = vadd.f32 %v2511_v17, %v2320_v24  ;;  %v5503_v24 = vpop.f32.mrf.mxu1  ;;  %v3346_v17 = vmax.f32 %v3314_v43, 0.0 }
 0x3be   : > { %v2917_v12 = vadd.f32 %v5303_v9, %v2619_v53  ;;  %v5954_v53 = vld [vmem:[#allocation41_spill] sm:$0xff] }
 0x3bf   : > { %v2024_v42 = vadd.f32 %v5954_v53, %v1726_v51 }
 0x3c0   : > { %v3215_v57 = vadd.f32 %v5403_v5, %v2917_v12  ;;  %2553 = vmatmul.bf16.gmra.mxu3 %v2424_v59  ;;  %v1727_v12 = vadd.f32 %v5955_v1, %v5287_v50  ;;  %v5956_v59 = vld [vmem:[#allocation56_spill] sm:$0xff] }
 0x3c1   : > { %v2322_v7 = vadd.f32 %v5956_v59, %v2024_v42 }
 0x3c2   : > { %v3315_v60 = vadd.f32 %v5465_v33, %v3215_v57  ;;  %v2404_v57 = vld [vmem:[#allocation2 + $0x138] sm:$0xff] }
 0x3c3   : > { %v2514_v16 = vpop.f32.mrf.mxu3 }
 0x3c4   : > { %v2620_v9 = vadd.f32 %v2514_v16, %v2321_v48  ;;  %v3347_v41 = vmax.f32 %v3315_v60, 0.0  ;;  %v5515_v60 = vpop.f32.mrf.mxu1  ;;  %v2425_v16 = vpack.c.bf16 %v2405_v34, %v2404_v57 }
 0x3c6   : > { %v3377_v5 = vpack.c.bf16 %v3347_v41, %v3346_v17  ;;  %v2918_v2 = vadd.f32 %v5312_v23, %v2620_v9  ;;  %v5957_v23 = vld [vmem:[#allocation44_spill] sm:$0xff]  ;;  %v5519_v17 = vpop.f32.mrf.mxu2 }
 0x3c7   : > { %v2025_v9 = vadd.f32 %v5957_v23, %v1727_v12  ;;  %v2407_v23 = vld [vmem:[#allocation2 + $0x158] sm:$0xff] }
 0x3c8   : > { %3473 = vmatmul.bf16.gmra.mxu2 %v3377_v5  ;;  %v3216_v43 = vadd.f32 %v5414_v3, %v2918_v2  ;;  %v5958_v5 = vld [vmem:[#allocation23_spill] sm:$0xff] }
 0x3c9   : > { %v1728_v53 = vadd.f32 %v5958_v5, %v5292_v28  ;;  %v2323_v3 = vadd.f32 %v5204_v49, %v2025_v9  ;;  %v5960_v49 = vld [vmem:[#allocation24_spill] sm:$0xff] }
 0x3ca   : > { %v3316_v41 = vadd.f32 %v5465_v33, %v3216_v43  ;;  %v1729_v28 = vadd.f32 %v5960_v49, %v5301_v0 }
 0x3cb   : > { %v2516_v37 = vpop.f32.mrf.mxu3 }
 0x3cc   : > { %v2621_v48 = vadd.f32 %v2516_v37, %v2322_v7  ;;  %v5527_v7 = vpop.f32.mrf.mxu0  ;;  %v5959_v37 = vld [vmem:[#allocation46_spill] sm:$0xff] }
 0x3cd   : > { %v2026_v57 = vadd.f32 %v5959_v37, %v1728_v53  ;;  %v5961_v53 = vld [vmem:[#allocation49_spill] sm:$0xff] }
 0x3ce   : > { %v2919_v51 = vadd.f32 %v5320_v10, %v2621_v48  ;;  %v3348_v10 = vmax.f32 %v3316_v41, 0.0  ;;  %v5533_v43 = vpop.f32.mrf.mxu2 }
 0x3cf   : > { %v2324_v48 = vadd.f32 %v5217_v6, %v2026_v57  ;;  %v5962_v6 = vld [vmem:[#allocation25_spill] sm:$0xff] }
 0x3d0   : > { %v3217_v50 = vadd.f32 %v5421_v45, %v2919_v51  ;;  %2558 = vmatmul.bf16.gmra.mxu3 %v2425_v16  ;;  %v5530_v45 = vpop.f32.mrf.mxu1  ;;  %v2406_v16 = vld [vmem:[#allocation2 + $0x150] sm:$0xff] }
 0x3d1   : > { %v2426_v5 = vpack.c.bf16 %v2407_v23, %v2406_v16  ;;  %v2408_v23 = vld [vmem:[#allocation2 + $0x168] sm:$0xff] }
 0x3d2   : > { %v3317_v42 = vadd.f32 %v5465_v33, %v3217_v50 }
 0x3d3   : > { %v2519_v2 = vpop.f32.mrf.mxu3 }
 0x3d4   : > { %v2622_v1 = vadd.f32 %v2519_v2, %v2323_v3  ;;  %v3349_v59 = vmax.f32 %v3317_v42, 0.0  ;;  %v2027_v3 = vadd.f32 %v5961_v53, %v1729_v28  ;;  %v1730_v2 = vadd.f32 %v5962_v6, %v5308_v25  ;;  %v5964_v25 = vld [vmem:[#allocation26_spill] sm:$0xff]  ;;  %v2711_v6 = vld [vmem:[#allocation2 + $0x1a1] sm:$0xff] }
 0x3d6   : > { %v3378_v12 = vpack.c.bf16 %v3349_v59, %v3348_v10  ;;  %v2920_v34 = vadd.f32 %v5450_v44, %v2622_v1  ;;  %v5541_v44 = vpop.f32.mrf.mxu0 }
 0x3d8   : > { %3478 = vmatmul.bf16.gmra.mxu2 %v3378_v12  ;;  %v3218_v9 = vadd.f32 %v5452_v58, %v2920_v34  ;;  %v5547_v1 = vpop.f32.mrf.mxu1  ;;  %v2325_v58 = vadd.f32 %v5378_v32, %v2027_v3 }
 0x3da   : > { %v3318_v0 = vadd.f32 %v5465_v33, %v3218_v9  ;;  %v2409_v9 = vld [vmem:[#allocation2 + $0x170] sm:$0xff] }
 0x3db   : > { %v2521_v51 = vpop.f32.mrf.mxu3  ;;  %v2427_v3 = vpack.c.bf16 %v2409_v9, %v2408_v23 }
 0x3dc   : > { %v2623_v50 = vadd.f32 %v2521_v51, %v2324_v48  ;;  %v3350_v37 = vmax.f32 %v3318_v0, 0.0  ;;  %v1731_v48 = vadd.f32 %v5964_v25, %v5317_v15  ;;  %v2710_v15 = vld [vmem:[#allocation2 + $0x199] sm:$0xff] }
 0x3de   : > { %v2921_v41 = vadd.f32 %v5467_v46, %v2623_v50  ;;  %v5551_v46 = vpop.f32.mrf.mxu2  ;;  %v5557_v51 = vpop.f32.mrf.mxu0 }
 0x3e0   : > { %v3219_v42 = vadd.f32 %v5471_v54, %v2921_v41  ;;  %2563 = vmatmul.bf16.gmra.mxu3 %v2426_v5  ;;  %v5963_v54 = vld [vmem:[#allocation52_spill] sm:$0xff]  ;;  %v5560_v50 = vpop.f32.mrf.mxu1 }
 0x3e1   : > { %v2028_v49 = vadd.f32 %v5963_v54, %v1730_v2 }
 0x3e2   : > { %v3319_v10 = vadd.f32 %v5465_v33, %v3219_v42  ;;  %v5965_v42 = vld [vmem:[#allocation55_spill] sm:$0xff] }
 0x3e3   : > { %v2524_v59 = vpop.f32.mrf.mxu3  ;;  %v2326_v32 = vadd.f32 %v5386_v8, %v2028_v49  ;;  %v2029_v0 = vadd.f32 %v5965_v42, %v1731_v48 }
 0x3e4   : > { %v2624_v12 = vadd.f32 %v2524_v59, %v2325_v58  ;;  %v3351_v57 = vmax.f32 %v3319_v10, 0.0  ;;  %v2727_v58 = vpack.c.bf16 %v2711_v6, %v2710_v15  ;;  %v3008_v10 = vld [vmem:[#allocation2 + $0x19a] sm:$0xff]  ;;  %v3009_v59 = vld [vmem:[#allocation2 + $0x1a2] sm:$0xff] }
 0x3e6   : > { %v3379_v34 = vpack.c.bf16 %v3351_v57, %v3350_v37  ;;  %v2922_v28 = vadd.f32 %v5482_v27, %v2624_v12  ;;  %v5563_v53 = vpop.f32.mrf.mxu2  ;;  %v3025_v12 = vpack.c.bf16 %v3009_v59, %v3008_v10  ;;  %v2327_v57 = vadd.f32 %v5394_v56, %v2029_v0  ;;  %2876 = vmatmul.bf16.gmra.mxu0 %v2727_v58  ;;  %v5573_v54 = vpop.f32.mrf.mxu0  ;;  %v5968_v56 = vld [vmem:[#allocation28_spill] sm:$0xff] }
 0x3e7   : > { %v1733_v9 = vadd.f32 %v5968_v56, %v5330_v62 }
 0x3e8   : > { %3483 = vmatmul.bf16.gmra.mxu2 %v3379_v34  ;;  %v3220_v41 = vadd.f32 %v5487_v63, %v2922_v28  ;;  %v5966_v63 = vld [vmem:[#allocation27_spill] sm:$0xff]  ;;  %3174 = vmatmul.bf16.gmra.mxu1 %v3025_v12  ;;  %v5575_v25 = vpop.f32.mrf.mxu1 }
 0x3e9   : > { %v1732_v37 = vadd.f32 %v5966_v63, %v5323_v38 }
 0x3ea   : > { %v3320_v8 = vadd.f32 %v5465_v33, %v3220_v41 }
 0x3eb   : > { %v2526_v16 = vpop.f32.mrf.mxu3 }
 0x3ec   : > { %v2625_v5 = vadd.f32 %v2526_v16, %v2326_v32  ;;  %v3352_v49 = vmax.f32 %v3320_v8, 0.0  ;;  %v5967_v32 = vld [vmem:[#allocation58_spill] sm:$0xff]  ;;  %v5969_v8 = vld [vmem:[#allocation60_spill] sm:$0xff] }
 0x3ed   : > { %v2030_v16 = vadd.f32 %v5967_v32, %v1732_v37  ;;  %v2031_v58 = vadd.f32 %v5969_v8, %v1733_v9  ;;  %v4336_v9 = vld [vmem:[#allocation2] sm:$0xff] }
 0x3ee   : > { %v2923_v27 = vadd.f32 %v5499_v61, %v2625_v5  ;;  %v5578_v23 = vpop.f32.mrf.mxu2  ;;  %v2839_v15 = vpop.f32.mrf.mxu0 }
 0x3ef   : > { %v2328_v41 = vadd.f32 %v5401_v22, %v2030_v16  ;;  %v5970_v22 = vld [vmem:[#allocation29_spill] sm:$0xff] }
 0x3f0   : > { %v3221_v2 = vadd.f32 %v5503_v24, %v2923_v27  ;;  %2568 = vmatmul.bf16.gmra.mxu3 %v2427_v3  ;;  %v2410_v27 = vld [vmem:[#allocation2 + $0x180] sm:$0xff]  ;;  %v2411_v3 = vld [vmem:[#allocation2 + $0x188] sm:$0xff]  ;;  %v3137_v10 = vpop.f32.mrf.mxu1  ;;  %v1734_v12 = vadd.f32 %v5970_v22, %v5335_v36 }
 0x3f2   : > { %v3321_v61 = vadd.f32 %v5465_v33, %v3221_v2  ;;  %v2428_v2 = vpack.c.bf16 %v2411_v3, %v2410_v27  ;;  %v5973_v3 = vld [vmem:[#allocation32_spill] sm:$0xff] }
 0x3f3   : > { %v2529_v34 = vpop.f32.mrf.mxu3 }
 0x3f4   : > { %v2626_v24 = vadd.f32 %v2529_v34, %v2327_v57  ;;  %v3353_v28 = vmax.f32 %v3321_v61, 0.0 }
 0x3f6   : > { %v3380_v48 = vpack.c.bf16 %v3353_v28, %v3352_v49  ;;  %v2924_v38 = vadd.f32 %v5512_v30, %v2626_v24  ;;  %v5589_v59 = vpop.f32.mrf.mxu2  ;;  %v2032_v24 = vadd.f32 %v5225_v14, %v1734_v12  ;;  %v5971_v28 = vld [vmem:[#allocation30_spill] sm:$0xff] }
 0x3f8   : > { %3488 = vmatmul.bf16.gmra.mxu2 %v3380_v48  ;;  %v3222_v42 = vadd.f32 %v5515_v60, %v2924_v38  ;;  %v2329_v60 = vadd.f32 %v5412_v29, %v2031_v58  ;;  %v1735_v48 = vadd.f32 %v5971_v28, %v5342_v52  ;;  %v3140_v32 = vpop.f32.mrf.mxu1  ;;  %v2330_v36 = vadd.f32 %v5419_v11, %v2032_v24  ;;  %v5976_v24 = vld [vmem:[#allocation67_spill] sm:$0xff] }
 0x3f9   : > { %v1736_v11 = vadd.f32 %v5973_v3, %v5347_v18  ;;  %v5975_v18 = vld [vmem:[#allocation34_spill] sm:$0xff] }
 0x3fa   : > { %v3322_v62 = vadd.f32 %v5465_v33, %v3222_v42 }
 0x3fb   : > { %v2531_v5 = vpop.f32.mrf.mxu3 }
 0x3fc   : > { %v2627_v0 = vadd.f32 %v2531_v5, %v2328_v41  ;;  %v3354_v57 = vmax.f32 %v3322_v62, 0.0  ;;  %v2429_v41 = vpack.c.bf16 %v4336_v9, %v4336_v9  ;;  %v5972_v5 = vld [vmem:[#allocation63_spill] sm:$0xff] }
 0x3fd   : > { %v2033_v27 = vadd.f32 %v5972_v5, %v1735_v48 }
 0x3fe   : > { %v2925_v6 = vadd.f32 %v5527_v7, %v2627_v0  ;;  %v5600_v29 = vpop.f32.mrf.mxu2 }
 0x3ff   : > { %v2331_v0 = vadd.f32 %v5427_v26, %v2033_v27 }
 0x400   : > { %v3223_v30 = vadd.f32 %v5530_v45, %v2925_v6  ;;  %2573 = vmatmul.bf16.gmra.mxu3 %v2428_v2  ;;  %v2842_v45 = vpop.f32.mrf.mxu0  ;;  %v3142_v2 = vpop.f32.mrf.mxu1 }
 0x402   : > { %v3323_v63 = vadd.f32 %v5465_v33, %v3223_v30 }
 0x403   : > { %v2534_v37 = vpop.f32.mrf.mxu3 }
 0x404   : > { %v2628_v7 = vadd.f32 %v2534_v37, %v2329_v60  ;;  %v3355_v61 = vmax.f32 %v3323_v63, 0.0  ;;  %v1737_v60 = vadd.f32 %v5975_v18, %v5351_v20 }
 0x406   : > { %v3381_v34 = vpack.c.bf16 %v3355_v61, %v3354_v57  ;;  %v2926_v49 = vadd.f32 %v5541_v44, %v2628_v7  ;;  %v5611_v30 = vpop.f32.mrf.mxu2 }
 0x408   : > { %3493 = vmatmul.bf16.gmra.mxu2 %v3381_v34  ;;  %v3224_v38 = vadd.f32 %v5547_v1, %v2926_v49  ;;  %v2844_v42 = vpop.f32.mrf.mxu0  ;;  %v3145_v61 = vpop.f32.mrf.mxu1  ;;  %v2035_v49 = vadd.f32 %v5976_v24, %v1737_v60 }
 0x40a   : > { %v3324_v52 = vadd.f32 %v5465_v33, %v3224_v38  ;;  %v2333_v20 = vadd.f32 %v5444_v19, %v2035_v49 }
 0x40b   : > { %v2536_v16 = vpop.f32.mrf.mxu3 }
 0x40c   : > { %v2629_v56 = vadd.f32 %v2536_v16, %v2330_v36  ;;  %v3356_v58 = vmax.f32 %v3324_v52, 0.0  ;;  %v5977_v36 = vld [vmem:[#allocation36_spill] sm:$0xff]  ;;  %v5979_v52 = vld [vmem:[#allocation39_spill] sm:$0xff] }
 0x40d   : > { %v1738_v16 = vadd.f32 %v5977_v36, %v5356_v55  ;;  %v1739_v55 = vadd.f32 %v5979_v52, %v5362_v4 }
 0x40e   : > { %v2927_v14 = vadd.f32 %v5557_v51, %v2629_v56  ;;  %v5620_v28 = vpop.f32.mrf.mxu2 }
 0x410   : > { %v3225_v44 = vadd.f32 %v5560_v50, %v2927_v14  ;;  %2578 = vmatmul.bf16.gmra.mxu3 %v2429_v41  ;;  %v5974_v50 = vld [vmem:[#allocation65_spill] sm:$0xff]  ;;  %v2847_v37 = vpop.f32.mrf.mxu0  ;;  %v3147_v27 = vpop.f32.mrf.mxu1 }
 0x411   : > { %v2034_v22 = vadd.f32 %v5974_v50, %v1736_v11  ;;  %v5978_v14 = vld [vmem:[#allocation69_spill] sm:$0xff] }
 0x412   : > { %v3325_v1 = vadd.f32 %v5465_v33, %v3225_v44  ;;  %v2036_v5 = vadd.f32 %v5978_v14, %v1738_v16  ;;  %v5985_v14 = vld [vmem:[#allocation85_spill] sm:$0xff] }
 0x413   : > { %v2539_v6 = vpop.f32.mrf.mxu3  ;;  %v2332_v26 = vadd.f32 %v5432_v40, %v2034_v22 }
 0x414   : > { %v2630_v8 = vadd.f32 %v2539_v6, %v2331_v0  ;;  %v3357_v51 = vmax.f32 %v3325_v1, 0.0  ;;  %v2334_v19 = vadd.f32 %v5455_v35, %v2036_v5  ;;  %v5980_v6 = vld [vmem:[#allocation71_spill] sm:$0xff]  ;;  %v5986_v5 = vld [vmem:[#allocation48_spill] sm:$0xff] }
 0x416   : > { %v3382_v62 = vpack.c.bf16 %v3357_v51, %v3356_v58  ;;  %v2928_v12 = vadd.f32 %v5573_v54, %v2630_v8  ;;  %v2037_v8 = vadd.f32 %v5980_v6, %v1739_v55 }
 0x418   : > { %3498 = vmatmul.bf16.gmra.mxu2 %v3382_v62  ;;  %v3226_v7 = vadd.f32 %v5575_v25, %v2928_v12  ;;  %v2849_v41 = vpop.f32.mrf.mxu0  ;;  %v3150_v22 = vpop.f32.mrf.mxu1  ;;  %v2335_v12 = vadd.f32 %v5475_v31, %v2037_v8 }
 0x41a   : > { %v3326_v54 = vadd.f32 %v5465_v33, %v3226_v7 }
 0x41b   : > { %v2541_v63 = vpop.f32.mrf.mxu3 }
 0x41c   : > { %v2631_v57 = vadd.f32 %v2541_v63, %v2332_v26  ;;  %v3358_v25 = vmax.f32 %v3326_v54, 0.0  ;;  %v5982_v63 = vld [vmem:[#allocation72_spill] sm:$0xff] }
 0x41e   : > { %v2929_v34 = vadd.f32 %v2839_v15, %v2631_v57  ;;  %v5983_v57 = vld [vmem:[#allocation45_spill] sm:$0xff] }
 0x420   : > { %v3227_v48 = vadd.f32 %v3137_v10, %v2929_v34  ;;  %v5628_v10 = vpop.f32.mrf.mxu2  ;;  %v2852_v58 = vpop.f32.mrf.mxu0  ;;  %v1741_v34 = vadd.f32 %v5983_v57, %v5373_v47  ;;  %v4339_v57 = vld [vmem:[%s4733_s15 + $0x10] sm:$0xff] }
 0x421   : > { %v3152_v54 = vpop.f32.mrf.mxu1 }
 0x422   : > { %v3327_v40 = vadd.f32 %v5465_v33, %v3227_v48 }
 0x423   : > { %v2544_v38 = vpop.f32.mrf.mxu3 }
 0x424   : > { %v2632_v56 = vadd.f32 %v2544_v38, %v2333_v20  ;;  %v3359_v9 = vmax.f32 %v3327_v40, 0.0  ;;  %v4337_v40 = vld [vmem:[%s4733_s15] sm:$0xff] }
 0x426   : > { %v3383_v15 = vpack.c.bf16 %v3359_v9, %v3358_v25  ;;  %v2930_v44 = vadd.f32 %v2842_v45, %v2632_v56  ;;  %v5981_v45 = vld [vmem:[#allocation42_spill] sm:$0xff]  ;;  %v5984_v56 = vld [vmem:[#allocation73_spill] sm:$0xff] }
 0x427   : > { %v1740_v50 = vadd.f32 %v5981_v45, %v5367_v21  ;;  %v5645_v21 = vld [vmem:[%s5850_s6] ss:$0 sm:$0xff]  ;;  %v2039_v25 = vadd.f32 %v5984_v56, %v1741_v34 }
 0x428   : > { %3503 = vmatmul.bf16.gmra.mxu2 %v3383_v15  ;;  %v3228_v11 = vadd.f32 %v3140_v32, %v2930_v44  ;;  %v5639_v18 = vpop.f32.mrf.mxu2  ;;  %v2854_v31 = vpop.f32.mrf.mxu0 }
 0x42a   : > { %v3328_v62 = vadd.f32 %v5465_v33, %v3228_v11 }
 0x42b   : > { %v2546_v3 = vpop.f32.mrf.mxu3 }
 0x42c   : > { %v2633_v0 = vadd.f32 %v2546_v3, %v2334_v19  ;;  %v3360_v60 = vmax.f32 %v3328_v62, 0.0 }
 0x42e   : > { %v2931_v1 = vadd.f32 %v2844_v42, %v2633_v0  ;;  %v3155_v0 = vpop.f32.mrf.mxu1 }
 0x430   : > { %v3229_v51 = vadd.f32 %v3142_v2, %v2931_v1  ;;  %v2038_v2 = vadd.f32 %v5982_v63, %v1740_v50  ;;  %v4338_v1 = vld [vmem:[%s4733_s15 + $0x8] sm:$0xff] }
 0x431   : > { %v5988_v50 = vld [vmem:[#allocation86_spill] sm:$0xff] }
 0x432   : > { %v3329_v4 = vadd.f32 %v5465_v33, %v3229_v51  ;;  %v2336_v24 = vadd.f32 %v5490_v13, %v2038_v2  ;;  %v1742_v13 = vadd.f32 %v5986_v5, %v5985_v14  ;;  %v5987_v51 = vld [vmem:[#allocation74_spill] sm:$0xff]  ;;  %v5993_v5 = vld [vmem:[#allocation76_spill] sm:$0xff] }
 0x433   : > { %v2549_v35 = vpop.f32.mrf.mxu3 }
 0x434   : > { %v2634_v32 = vadd.f32 %v2549_v35, %v2335_v12  ;;  %v3361_v42 = vmax.f32 %v3329_v4, 0.0  ;;  %v2040_v62 = vadd.f32 %v5987_v51, %v1742_v13  ;;  %v5989_v12 = vld [vmem:[#allocation51_spill] sm:$0xff] }
 0x435   : > { %v1743_v4 = vadd.f32 %v5989_v12, %v5988_v50 }
 0x436   : > { %v3384_v26 = vpack.c.bf16 %v3361_v42, %v3360_v60  ;;  %v2932_v7 = vadd.f32 %v2847_v37, %v2634_v32  ;;  %v2338_v35 = vadd.f32 %v5519_v17, %v2040_v62  ;;  %v5991_v17 = vld [vmem:[#allocation87_spill] sm:$0xff] }
 0x438   : > { %3508 = vmatmul.bf16.gmra.mxu2 %v3384_v26  ;;  %v3230_v36 = vadd.f32 %v3145_v61, %v2932_v7  ;;  %v2337_v61 = vadd.f32 %v5505_v39, %v2039_v25 }
 0x43a   : > { %v3330_v47 = vadd.f32 %v5465_v33, %v3230_v36 }
 0x43b   : > { %v2551_v49 = vpop.f32.mrf.mxu3  ;;  %v3469_v48 = vpop.f32.mrf.mxu2 }
 0x43c   : > { %v2635_v16 = vadd.f32 %v2551_v49, %v2336_v24  ;;  %v3470_v37 = vadd.f32 %v5645_v21, %v3469_v48  ;;  %v3362_v3 = vmax.f32 %v3330_v47, 0.0  ;;  %v3157_v49 = vpop.f32.mrf.mxu1 }
 0x43e   : > { %v2933_v20 = vadd.f32 %v2849_v41, %v2635_v16  ;;  %v3549_v38 = vadd.f32 %v4337_v40, %v3470_v37  ;;  %v5992_v37 = vld [vmem:[#allocation54_spill] sm:$0xff] }
 0x440   : > { %v3231_v9 = vadd.f32 %v3147_v27, %v2933_v20  ;;  %v3581_v15 = vmax.f32 %v3549_v38, 0.0  ;;  %v2857_v27 = vpop.f32.mrf.mxu0  ;;  %v1744_v20 = vadd.f32 %v5992_v37, %v5991_v17 }
 0x442   : > { %3613 = vst [vmem:[%s5658_s23] sm:$0xff] %v3581_v15  ;;  %v3331_v41 = vadd.f32 %v5465_v33, %v3231_v9  ;;  %v2042_v13 = vadd.f32 %v5993_v5, %v1744_v20  ;;  %v4343_v5 = vld [vmem:[%s4733_s15 + $0x30] sm:$0xff] }
 0x443   : > { %v2554_v44 = vpop.f32.mrf.mxu3  ;;  %v3471_v52 = vpop.f32.mrf.mxu2 }
 0x444   : > { %v2636_v55 = vadd.f32 %v2554_v44, %v2337_v61  ;;  %v3472_v19 = vadd.f32 %v5645_v21, %v3471_v52  ;;  %v3363_v11 = vmax.f32 %v3331_v41, 0.0  ;;  %v5995_v52 = vld [vmem:[#allocation57_spill] sm:$0xff] }
 0x446   : > { %v3550_v6 = vadd.f32 %v4338_v1, %v3472_v19  ;;  %v3385_v8 = vpack.c.bf16 %v3363_v11, %v3362_v3  ;;  %v2934_v45 = vadd.f32 %v2852_v58, %v2636_v55  ;;  %v5990_v58 = vld [vmem:[#allocation75_spill] sm:$0xff]  ;;  %v3160_v19 = vpop.f32.mrf.mxu1  ;;  %v2340_v3 = vadd.f32 %v5551_v46, %v2042_v13 }
 0x447   : > { %v2041_v24 = vadd.f32 %v5990_v58, %v1743_v4 }
 0x448   : > { %v3582_v39 = vmax.f32 %v3550_v6, 0.0  ;;  %3513 = vmatmul.bf16.gmra.mxu2 %v3385_v8  ;;  %v3232_v42 = vadd.f32 %v3150_v22, %v2934_v45  ;;  %v2859_v2 = vpop.f32.mrf.mxu0  ;;  %v4341_v45 = vld [vmem:[%s4733_s15 + $0x20] sm:$0xff] }
 0x449   : > { %v2339_v22 = vadd.f32 %v5533_v43, %v2041_v24  ;;  %v5994_v43 = vld [vmem:[#allocation88_spill] sm:$0xff] }
 0x44a   : > { %3614 = vst [vmem:[%s5658_s23 + $0x8] sm:$0xff] %v3582_v39  ;;  %v3332_v16 = vadd.f32 %v5465_v33, %v3232_v42  ;;  %v1745_v55 = vadd.f32 %v5995_v52, %v5994_v43  ;;  %v5998_v42 = vld [vmem:[#allocation59_spill] sm:$0xff] }
 0x44b   : > { %v2556_v32 = vpop.f32.mrf.mxu3  ;;  %v3474_v60 = vpop.f32.mrf.mxu2 }
 0x44c   : > { %v2637_v26 = vadd.f32 %v2556_v32, %v2338_v35  ;;  %v3475_v63 = vadd.f32 %v5645_v21, %v3474_v60  ;;  %v3364_v9 = vmax.f32 %v3332_v16, 0.0  ;;  %v5997_v60 = vld [vmem:[#allocation89_spill] sm:$0xff]  ;;  %v5999_v16 = vld [vmem:[#allocation78_spill] sm:$0xff] }
 0x44d   : > { %v1746_v46 = vadd.f32 %v5998_v42, %v5997_v60  ;;  %v6006_v42 = vld [vmem:[#allocation92_spill] sm:$0xff] }
 0x44e   : > { %v2935_v7 = vadd.f32 %v2854_v31, %v2637_v26  ;;  %v3551_v34 = vadd.f32 %v4339_v57, %v3475_v63 }
 0x44f   : > { %v2044_v17 = vadd.f32 %v5999_v16, %v1746_v46  ;;  %v6007_v46 = vld [vmem:[#allocation64_spill] sm:$0xff] }
 0x450   : > { %v3233_v48 = vadd.f32 %v3152_v54, %v2935_v7  ;;  %v3583_v36 = vmax.f32 %v3551_v34, 0.0  ;;  %v4340_v54 = vld [vmem:[%s4733_s15 + $0x18] sm:$0xff]  ;;  %v2862_v61 = vpop.f32.mrf.mxu0  ;;  %v3162_v7 = vpop.f32.mrf.mxu1 }
 0x452   : > { %3615 = vst [vmem:[%s5658_s23 + $0x10] sm:$0xff] %v3583_v36  ;;  %v3333_v40 = vadd.f32 %v5465_v33, %v3233_v48 }
 0x453   : > { %v2559_v38 = vpop.f32.mrf.mxu3  ;;  %v3476_v31 = vpop.f32.mrf.mxu2 }
 0x454   : > { %v2638_v56 = vadd.f32 %v2559_v38, %v2339_v22  ;;  %v3477_v25 = vadd.f32 %v5645_v21, %v3476_v31  ;;  %v3365_v15 = vmax.f32 %v3333_v40, 0.0  ;;  %v6001_v22 = vld [vmem:[#allocation61_spill] sm:$0xff]  ;;  %v2342_v38 = vadd.f32 %v5578_v23, %v2044_v17  ;;  %v6003_v23 = vld [vmem:[#allocation91_spill] sm:$0xff] }
 0x456   : > { %v3552_v47 = vadd.f32 %v4340_v54, %v3477_v25  ;;  %v3386_v14 = vpack.c.bf16 %v3365_v15, %v3364_v9  ;;  %v2936_v41 = vadd.f32 %v2857_v27, %v2638_v56  ;;  %v5996_v27 = vld [vmem:[#allocation77_spill] sm:$0xff] }
 0x457   : > { %v2043_v50 = vadd.f32 %v5996_v27, %v1745_v55  ;;  %v6004_v55 = vld [vmem:[#allocation62_spill] sm:$0xff]  ;;  %v4344_v27 = vld [vmem:[%s4733_s15 + $0x38] sm:$0xff] }
 0x458   : > { %v3584_v44 = vmax.f32 %v3552_v47, 0.0  ;;  %3518 = vmatmul.bf16.gmra.mxu2 %v3386_v14  ;;  %v3234_v6 = vadd.f32 %v3155_v0, %v2936_v41  ;;  %v2864_v32 = vpop.f32.mrf.mxu0  ;;  %v3165_v47 = vpop.f32.mrf.mxu1 }
 0x459   : > { %v2341_v0 = vadd.f32 %v5563_v53, %v2043_v50  ;;  %v6000_v53 = vld [vmem:[#allocation90_spill] sm:$0xff] }
 0x45a   : > { %3616 = vst [vmem:[%s5658_s23 + $0x18] sm:$0xff] %v3584_v44  ;;  %v3334_v35 = vadd.f32 %v5465_v33, %v3234_v6  ;;  %v1747_v40 = vadd.f32 %v6001_v22, %v6000_v53  ;;  %v6009_v53 = vld [vmem:[#allocation93_spill] sm:$0xff] }
 0x45b   : > { %v2561_v11 = vpop.f32.mrf.mxu3  ;;  %v3479_v1 = vpop.f32.mrf.mxu2 }
 0x45c   : > { %v2639_v8 = vadd.f32 %v2561_v11, %v2340_v3  ;;  %v3480_v51 = vadd.f32 %v5645_v21, %v3479_v1  ;;  %v3366_v58 = vmax.f32 %v3334_v35, 0.0  ;;  %v1748_v3 = vadd.f32 %v6004_v55, %v6003_v23  ;;  %v6013_v23 = vld [vmem:[#allocation68_spill] sm:$0xff] }
 0x45e   : > { %v2937_v62 = vadd.f32 %v2859_v2, %v2639_v8  ;;  %v3553_v39 = vadd.f32 %v4341_v45, %v3480_v51 }
 0x460   : > { %v3235_v12 = vadd.f32 %v3157_v49, %v2937_v62  ;;  %v3585_v4 = vmax.f32 %v3553_v39, 0.0  ;;  %v4342_v49 = vld [vmem:[%s4733_s15 + $0x28] sm:$0xff]  ;;  %v2867_v25 = vpop.f32.mrf.mxu0 }
 0x462   : > { %3617 = vst [vmem:[%s5658_s23 + $0x20] sm:$0xff] %v3585_v4  ;;  %v3335_v26 = vadd.f32 %v5465_v33, %v3235_v12  ;;  %v6005_v4 = vld [vmem:[#allocation80_spill] sm:$0xff] }
 0x463   : > { %v2564_v63 = vpop.f32.mrf.mxu3  ;;  %v3481_v2 = vpop.f32.mrf.mxu2  ;;  %v2046_v35 = vadd.f32 %v6005_v4, %v1748_v3 }
 0x464   : > { %v2640_v57 = vadd.f32 %v2564_v63, %v2341_v0  ;;  %v3482_v34 = vadd.f32 %v5645_v21, %v3481_v2  ;;  %v3367_v24 = vmax.f32 %v3335_v26, 0.0  ;;  %v1749_v0 = vadd.f32 %v6007_v46, %v6006_v42 }
 0x465   : > { %v2344_v26 = vadd.f32 %v5600_v29, %v2046_v35  ;;  %v6010_v29 = vld [vmem:[#allocation66_spill] sm:$0xff] }
 0x466   : > { %v3554_v48 = vadd.f32 %v4342_v49, %v3482_v34  ;;  %v3387_v36 = vpack.c.bf16 %v3367_v24, %v3366_v58  ;;  %v2938_v37 = vadd.f32 %v2862_v61, %v2640_v57  ;;  %v6002_v61 = vld [vmem:[#allocation79_spill] sm:$0xff]  ;;  %v4345_v24 = vld [vmem:[%s4733_s15 + $0x40] sm:$0xff]  ;;  %v1750_v22 = vadd.f32 %v6010_v29, %v6009_v53 }
 0x467   : > { %v2045_v41 = vadd.f32 %v6002_v61, %v1747_v40  ;;  %v6011_v61 = vld [vmem:[#allocation82_spill] sm:$0xff] }
 0x468   : > { %v3586_v20 = vmax.f32 %v3554_v48, 0.0  ;;  %3523 = vmatmul.bf16.gmra.mxu2 %v3387_v36  ;;  %v3236_v9 = vadd.f32 %v3160_v19, %v2938_v37  ;;  %v2869_v39 = vpop.f32.mrf.mxu0  ;;  %v6008_v48 = vld [vmem:[#allocation81_spill] sm:$0xff] }
 0x469   : > { %v2343_v19 = vadd.f32 %v5589_v59, %v2045_v41  ;;  %v2047_v36 = vadd.f32 %v6008_v48, %v1749_v0  ;;  %v2048_v41 = vadd.f32 %v6011_v61, %v1750_v22  ;;  %v6017_v48 = vld [vmem:[#allocation84_spill] sm:$0xff]  ;;  %v4350_v61 = vld [vmem:[%s4733_s15 + $0x68] sm:$0xff] }
 0x46a   : > { %3618 = vst [vmem:[%s5658_s23 + $0x28] sm:$0xff] %v3586_v20  ;;  %v3336_v52 = vadd.f32 %v5465_v33, %v3236_v9 }
 0x46b   : > { %v2566_v31 = vpop.f32.mrf.mxu3  ;;  %v3484_v56 = vpop.f32.mrf.mxu2  ;;  %v2346_v3 = vadd.f32 %v5620_v28, %v2048_v41 }
 0x46c   : > { %v2641_v15 = vadd.f32 %v2566_v31, %v2342_v38  ;;  %v3485_v54 = vadd.f32 %v5645_v21, %v3484_v56  ;;  %v3368_v62 = vmax.f32 %v3336_v52, 0.0  ;;  %v2345_v38 = vadd.f32 %v5611_v30, %v2047_v36  ;;  %v6012_v52 = vld [vmem:[#allocation94_spill] sm:$0xff] }
 0x46d   : > { %v1751_v55 = vadd.f32 %v6013_v23, %v6012_v52 }
 0x46e   : > { %v2939_v14 = vadd.f32 %v2864_v32, %v2641_v15  ;;  %v3555_v13 = vadd.f32 %v4343_v5, %v3485_v54  ;;  %v3167_v32 = vpop.f32.mrf.mxu1 }
 0x470   : > { %v3237_v44 = vadd.f32 %v3162_v7, %v2939_v14  ;;  %v3587_v43 = vmax.f32 %v3555_v13, 0.0  ;;  %v2872_v16 = vpop.f32.mrf.mxu0  ;;  %v4346_v14 = vld [vmem:[%s4733_s15 + $0x48] sm:$0xff] }
 0x472   : > { %3619 = vst [vmem:[%s5658_s23 + $0x30] sm:$0xff] %v3587_v43  ;;  %v3337_v11 = vadd.f32 %v5465_v33, %v3237_v44 }
 0x473   : > { %v2569_v1 = vpop.f32.mrf.mxu3  ;;  %v3486_v6 = vpop.f32.mrf.mxu2 }
 0x474   : > { %v2642_v8 = vadd.f32 %v2569_v1, %v2343_v19  ;;  %v3487_v51 = vadd.f32 %v5645_v21, %v3486_v6  ;;  %v3369_v45 = vmax.f32 %v3337_v11, 0.0 }
 0x476   : > { %v3556_v50 = vadd.f32 %v4344_v27, %v3487_v51  ;;  %v3388_v12 = vpack.c.bf16 %v3369_v45, %v3368_v62  ;;  %v2940_v60 = vadd.f32 %v2867_v25, %v2642_v8  ;;  %v3170_v40 = vpop.f32.mrf.mxu1  ;;  %v4347_v45 = vld [vmem:[%s4733_s15 + $0x50] sm:$0xff] }
 0x477   : > { %v6014_v27 = vld [vmem:[#allocation83_spill] sm:$0xff] }
 0x478   : > { %v3588_v59 = vmax.f32 %v3556_v50, 0.0  ;;  %3528 = vmatmul.bf16.gmra.mxu2 %v3388_v12  ;;  %v3238_v7 = vadd.f32 %v3165_v47, %v2940_v60  ;;  %v2874_v30 = vpop.f32.mrf.mxu0  ;;  %v2049_v50 = vadd.f32 %v6014_v27, %v1751_v55  ;;  %v6016_v60 = vld [vmem:[#allocation70_spill] sm:$0xff] }
 0x47a   : > { %3620 = vst [vmem:[%s5658_s23 + $0x38] sm:$0xff] %v3588_v59  ;;  %v3338_v20 = vadd.f32 %v5465_v33, %v3238_v7  ;;  %v2347_v42 = vadd.f32 %v5628_v10, %v2049_v50 }
 0x47b   : > { %v2571_v63 = vpop.f32.mrf.mxu3  ;;  %v3489_v2 = vpop.f32.mrf.mxu2 }
 0x47c   : > { %v2643_v57 = vadd.f32 %v2571_v63, %v2344_v26  ;;  %v3490_v34 = vadd.f32 %v5645_v21, %v3489_v2  ;;  %v3370_v54 = vmax.f32 %v3338_v20, 0.0 }
 0x47e   : > { %v2941_v58 = vadd.f32 %v2869_v39, %v2643_v57  ;;  %v3557_v49 = vadd.f32 %v4345_v24, %v3490_v34  ;;  %v3172_v51 = vpop.f32.mrf.mxu1 }
 0x480   : > { %v3239_v17 = vadd.f32 %v3167_v32, %v2941_v58  ;;  %v3589_v37 = vmax.f32 %v3557_v49, 0.0  ;;  %v6015_v32 = vld [vmem:[#allocation95_spill] sm:$0xff]  ;;  %v2877_v59 = vpop.f32.mrf.mxu0  ;;  %v4348_v58 = vld [vmem:[%s4733_s15 + $0x58] sm:$0xff] }
 0x481   : > { %v1752_v28 = vadd.f32 %v6016_v60, %v6015_v32 }
 0x482   : > { %3621 = vst [vmem:[%s5658_s23 + $0x40] sm:$0xff] %v3589_v37  ;;  %v3339_v31 = vadd.f32 %v5465_v33, %v3239_v17 }
 0x483   : > { %v2574_v56 = vpop.f32.mrf.mxu3  ;;  %v3491_v25 = vpop.f32.mrf.mxu2  ;;  %v2050_v36 = vadd.f32 %v6017_v48, %v1752_v28  ;;  %v4355_v28 = vld [vmem:[%s4733_s15 + $0x90] sm:$0xff] }
 0x484   : > { %v2644_v9 = vadd.f32 %v2574_v56, %v2345_v38  ;;  %v3492_v15 = vadd.f32 %v5645_v21, %v3491_v25  ;;  %v3371_v47 = vmax.f32 %v3339_v31, 0.0  ;;  %v4349_v31 = vld [vmem:[%s4733_s15 + $0x60] sm:$0xff] }
 0x485   : > { %v2348_v10 = vadd.f32 %v5639_v18, %v2050_v36  ;;  %v4358_v36 = vld [vmem:[%s4733_s15 + $0xa8] sm:$0xff] }
 0x486   : > { %v3558_v5 = vadd.f32 %v4346_v14, %v3492_v15  ;;  %v3389_v13 = vpack.c.bf16 %v3371_v47, %v3370_v54  ;;  %v2942_v44 = vadd.f32 %v2872_v16, %v2644_v9  ;;  %v3175_v34 = vpop.f32.mrf.mxu1 }
 0x488   : > { %v3590_v43 = vmax.f32 %v3558_v5, 0.0  ;;  %3533 = vmatmul.bf16.gmra.mxu2 %v3389_v13  ;;  %v3240_v1 = vadd.f32 %v3170_v40, %v2942_v44  ;;  %v2879_v40 = vpop.f32.mrf.mxu0 }
 0x48a   : > { %3622 = vst [vmem:[%s5658_s23 + $0x48] sm:$0xff] %v3590_v43  ;;  %v3340_v35 = vadd.f32 %v5465_v33, %v3240_v1 }
 0x48b   : > { %v2576_v19 = vpop.f32.mrf.mxu3  ;;  %v3494_v11 = vpop.f32.mrf.mxu2 }
 0x48c   : > { %v2645_v6 = vadd.f32 %v2576_v19, %v2346_v3  ;;  %v3495_v8 = vadd.f32 %v5645_v21, %v3494_v11  ;;  %v3372_v7 = vmax.f32 %v3340_v35, 0.0  ;;  %v4352_v11 = vld [vmem:[%s4733_s15 + $0x78] sm:$0xff] }
 0x48e   : > { %v2943_v62 = vadd.f32 %v2874_v30, %v2645_v6  ;;  %v3559_v39 = vadd.f32 %v4347_v45, %v3495_v8  ;;  %v3177_v25 = vpop.f32.mrf.mxu1 }
 0x490   : > { %v3241_v12 = vadd.f32 %v3172_v51, %v2943_v62  ;;  %v3591_v4 = vmax.f32 %v3559_v39, 0.0  ;;  %v4353_v62 = vld [vmem:[%s4733_s15 + $0x80] sm:$0xff] }
 0x492   : > { %3623 = vst [vmem:[%s5658_s23 + $0x50] sm:$0xff] %v3591_v4  ;;  %v3341_v46 = vadd.f32 %v5465_v33, %v3241_v12  ;;  %v4354_v12 = vld [vmem:[%s4733_s15 + $0x88] sm:$0xff] }
 0x493   : > { %v2579_v0 = vpop.f32.mrf.mxu3  ;;  %v3496_v26 = vpop.f32.mrf.mxu2 }
 0x494   : > { %v2646_v63 = vadd.f32 %v2579_v0, %v2347_v42  ;;  %v3497_v2 = vadd.f32 %v5645_v21, %v3496_v26  ;;  %v3373_v57 = vmax.f32 %v3341_v46, 0.0  ;;  %v4356_v26 = vld [vmem:[%s4733_s15 + $0x98] sm:$0xff] }
 0x496   : > { %v3560_v24 = vadd.f32 %v4348_v58, %v3497_v2  ;;  %v3390_v49 = vpack.c.bf16 %v3373_v57, %v3372_v7  ;;  %v2944_v16 = vadd.f32 %v2877_v59, %v2646_v63 }
 0x498   : > { %v3592_v17 = vmax.f32 %v3560_v24, 0.0  ;;  %3538 = vmatmul.bf16.gmra.mxu2 %v3390_v49  ;;  %v3242_v53 = vadd.f32 %v3175_v34, %v2944_v16  ;;  %v4357_v34 = vld [vmem:[%s4733_s15 + $0xa0] sm:$0xff] }
 0x49a   : > { %3624 = vst [vmem:[%s5658_s23 + $0x58] sm:$0xff] %v3592_v17  ;;  %v3342_v54 = vadd.f32 %v5465_v33, %v3242_v53 }
 0x49b   : > { %v2581_v37 = vpop.f32.mrf.mxu3  ;;  %v3499_v20 = vpop.f32.mrf.mxu2 }
 0x49c   : > { %v2647_v29 = vadd.f32 %v2581_v37, %v2348_v10  ;;  %v3500_v22 = vadd.f32 %v5645_v21, %v3499_v20  ;;  %v3374_v5 = vmax.f32 %v3342_v54, 0.0  ;;  %v4359_v20 = vld [vmem:[%s4733_s15 + $0xb0] sm:$0xff] }
 0x49e   : > { %v2945_v38 = vadd.f32 %v2879_v40, %v2647_v29  ;;  %v3561_v56 = vadd.f32 %v4349_v31, %v3500_v22 }
 0x4a0   : > { %v3243_v9 = vadd.f32 %v3177_v25, %v2945_v38  ;;  %v3593_v15 = vmax.f32 %v3561_v56, 0.0  ;;  %v4360_v38 = vld [vmem:[%s4733_s15 + $0xb8] sm:$0xff] }
 0x4a2   : > { %3625 = vst [vmem:[%s5658_s23 + $0x60] sm:$0xff] %v3593_v15  ;;  %v3343_v18 = vadd.f32 %v5465_v33, %v3243_v9  ;;  %v4351_v33 = vld [vmem:[%s4733_s15 + $0x70] sm:$0xff]  ;;  %v4361_v15 = vld [vmem:[%s4733_s15 + $0xc0] sm:$0xff] }
 0x4a3   : > { %v3501_v47 = vpop.f32.mrf.mxu2 }
 0x4a4   : > { %v3502_v14 = vadd.f32 %v5645_v21, %v3501_v47  ;;  %v3375_v13 = vmax.f32 %v3343_v18, 0.0 }
 0x4a6   : > { %v3562_v41 = vadd.f32 %v4350_v61, %v3502_v14  ;;  %v3391_v44 = vpack.c.bf16 %v3375_v13, %v3374_v5  ;;  %v4362_v5 = vld [vmem:[%s4733_s15 + $0xc8] sm:$0xff] }
 0x4a8   : > { %v3594_v43 = vmax.f32 %v3562_v41, 0.0  ;;  %3543 = vmatmul.bf16.gmra.mxu2 %v3391_v44 }
 0x4aa   : > { %3626 = vst [vmem:[%s5658_s23 + $0x68] sm:$0xff] %v3594_v43  ;;  %v4363_v43 = vld [vmem:[%s4733_s15 + $0xd0] sm:$0xff] }
 0x4ab   : > { %v3504_v30 = vpop.f32.mrf.mxu2 }
 0x4ac   : > { %v3505_v52 = vadd.f32 %v5645_v21, %v3504_v30 }
 0x4ae   : > { %v3563_v23 = vadd.f32 %v4351_v33, %v3505_v52 }
 0x4b0   : > { %v3595_v55 = vmax.f32 %v3563_v23, 0.0 }
 0x4b2   : > { %3627 = vst [vmem:[%s5658_s23 + $0x70] sm:$0xff] %v3595_v55  ;;  %v4364_v55 = vld [vmem:[%s4733_s15 + $0xd8] sm:$0xff] }
 0x4b3   : > { %v3506_v3 = vpop.f32.mrf.mxu2 }
 0x4b4   : > { %v3507_v19 = vadd.f32 %v5645_v21, %v3506_v3 }
 0x4b6   : > { %v3564_v1 = vadd.f32 %v4352_v11, %v3507_v19 }
 0x4b8   : > { %v3596_v6 = vmax.f32 %v3564_v1, 0.0 }
 0x4ba   : > { %3628 = vst [vmem:[%s5658_s23 + $0x78] sm:$0xff] %v3596_v6  ;;  %v4365_v6 = vld [vmem:[%s4733_s15 + $0xe0] sm:$0xff] }
 0x4bb   : > { %v3509_v8 = vpop.f32.mrf.mxu2 }
 0x4bc   : > { %v3510_v51 = vadd.f32 %v5645_v21, %v3509_v8 }
 0x4be   : > { %v3565_v45 = vadd.f32 %v4353_v62, %v3510_v51 }
 0x4c0   : > { %v3597_v39 = vmax.f32 %v3565_v45, 0.0 }
 0x4c2   : > { %3629 = vst [vmem:[%s5658_s23 + $0x80] sm:$0xff] %v3597_v39  ;;  %v4366_v39 = vld [vmem:[%s4733_s15 + $0xe8] sm:$0xff] }
 0x4c3   : > { %v3511_v27 = vpop.f32.mrf.mxu2 }
 0x4c4   : > { %v3512_v50 = vadd.f32 %v5645_v21, %v3511_v27 }
 0x4c6   : > { %v3566_v4 = vadd.f32 %v4354_v12, %v3512_v50 }
 0x4c8   : > { %v3598_v35 = vmax.f32 %v3566_v4, 0.0 }
 0x4ca   : > { %3630 = vst [vmem:[%s5658_s23 + $0x88] sm:$0xff] %v3598_v35  ;;  %v4367_v35 = vld [vmem:[%s4733_s15 + $0xf0] sm:$0xff] }
 0x4cb   : > { %v3514_v32 = vpop.f32.mrf.mxu2 }
 0x4cc   : > { %v3515_v60 = vadd.f32 %v5645_v21, %v3514_v32 }
 0x4ce   : > { %v3567_v59 = vadd.f32 %v4355_v28, %v3515_v60 }
 0x4d0   : > { %v3599_v42 = vmax.f32 %v3567_v59, 0.0 }
 0x4d2   : > { %3631 = vst [vmem:[%s5658_s23 + $0x90] sm:$0xff] %v3599_v42  ;;  %v4368_v42 = vld [vmem:[%s4733_s15 + $0xf8] sm:$0xff] }
 0x4d3   : > { %v3516_v46 = vpop.f32.mrf.mxu2 }
 0x4d4   : > { %v3517_v0 = vadd.f32 %v5645_v21, %v3516_v46 }
 0x4d6   : > { %v3568_v63 = vadd.f32 %v4356_v26, %v3517_v0 }
 0x4d8   : > { %v3600_v2 = vmax.f32 %v3568_v63, 0.0 }
 0x4da   : > { %3632 = vst [vmem:[%s5658_s23 + $0x98] sm:$0xff] %v3600_v2 }
 0x4db   : > { %v3519_v7 = vpop.f32.mrf.mxu2 }
 0x4dc   : > { %v3520_v57 = vadd.f32 %v5645_v21, %v3519_v7 }
 0x4de   : > { %v3569_v58 = vadd.f32 %v4357_v34, %v3520_v57 }
 0x4e0   : > { %v3601_v24 = vmax.f32 %v3569_v58, 0.0 }
 0x4e2   : > { %3633 = vst [vmem:[%s5658_s23 + $0xa0] sm:$0xff] %v3601_v24 }
 0x4e3   : > { %v3521_v49 = vpop.f32.mrf.mxu2 }
 0x4e4   : > { %v3522_v48 = vadd.f32 %v5645_v21, %v3521_v49 }
 0x4e6   : > { %v3570_v16 = vadd.f32 %v4358_v36, %v3522_v48 }
 0x4e8   : > { %v3602_v17 = vmax.f32 %v3570_v16, 0.0 }
 0x4ea   : > { %3634 = vst [vmem:[%s5658_s23 + $0xa8] sm:$0xff] %v3602_v17 }
 0x4eb   : > { %v3524_v10 = vpop.f32.mrf.mxu2 }
 0x4ec   : > { %v3525_v37 = vadd.f32 %v5645_v21, %v3524_v10 }
 0x4ee   : > { %v3571_v53 = vadd.f32 %v4359_v20, %v3525_v37 }
 0x4f0   : > { %v3603_v29 = vmax.f32 %v3571_v53, 0.0 }
 0x4f2   : > { %3635 = vst [vmem:[%s5658_s23 + $0xb0] sm:$0xff] %v3603_v29 }
 0x4f3   : > { %v3526_v22 = vpop.f32.mrf.mxu2 }
 0x4f4   : > { %v3527_v40 = vadd.f32 %v5645_v21, %v3526_v22 }
 0x4f6   : > { %v3572_v31 = vadd.f32 %v4360_v38, %v3527_v40 }
 0x4f8   : > { %v3604_v56 = vmax.f32 %v3572_v31, 0.0 }
 0x4fa   : > { %3636 = vst [vmem:[%s5658_s23 + $0xb8] sm:$0xff] %v3604_v56 }
 0x4fb   : > { %v3529_v25 = vpop.f32.mrf.mxu2 }
 0x4fc   : > { %v3530_v9 = vadd.f32 %v5645_v21, %v3529_v25 }
 0x4fe   : > { %v3573_v54 = vadd.f32 %v4361_v15, %v3530_v9 }
 0x500   : > { %v3605_v18 = vmax.f32 %v3573_v54, 0.0 }
 0x502   : > { %3637 = vst [vmem:[%s5658_s23 + $0xc0] sm:$0xff] %v3605_v18 }
 0x503   : > { %v3531_v47 = vpop.f32.mrf.mxu2 }
 0x504   : > { %v3532_v14 = vadd.f32 %v5645_v21, %v3531_v47 }
 0x506   : > { %v3574_v13 = vadd.f32 %v4362_v5, %v3532_v14 }
 0x508   : > { %v3606_v61 = vmax.f32 %v3574_v13, 0.0 }
 0x50a   : > { %3638 = vst [vmem:[%s5658_s23 + $0xc8] sm:$0xff] %v3606_v61 }
 0x50b   : > { %v3534_v41 = vpop.f32.mrf.mxu2 }
 0x50c   : > { %v3535_v44 = vadd.f32 %v5645_v21, %v3534_v41 }
 0x50e   : > { %v3575_v30 = vadd.f32 %v4363_v43, %v3535_v44 }
 0x510   : > { %v3607_v52 = vmax.f32 %v3575_v30, 0.0 }
 0x512   : > { %3639 = vst [vmem:[%s5658_s23 + $0xd0] sm:$0xff] %v3607_v52 }
 0x513   : > { %v3536_v33 = vpop.f32.mrf.mxu2 }
 0x514   : > { %v3537_v23 = vadd.f32 %v5645_v21, %v3536_v33 }
 0x516   : > { %v3576_v3 = vadd.f32 %v4364_v55, %v3537_v23 }
 0x518   : > { %v3608_v19 = vmax.f32 %v3576_v3, 0.0 }
 0x51a   : > { %3640 = vst [vmem:[%s5658_s23 + $0xd8] sm:$0xff] %v3608_v19 }
 0x51b   : > { %v3539_v11 = vpop.f32.mrf.mxu2 }
 0x51c   : > { %v3540_v1 = vadd.f32 %v5645_v21, %v3539_v11 }
 0x51e   : > { %v3577_v8 = vadd.f32 %v4365_v6, %v3540_v1 }
 0x520   : > { %v3609_v51 = vmax.f32 %v3577_v8, 0.0 }
 0x522   : > { %3641 = vst [vmem:[%s5658_s23 + $0xe0] sm:$0xff] %v3609_v51 }
 0x523   : > { %v3541_v62 = vpop.f32.mrf.mxu2 }
 0x524   : > { %v3542_v45 = vadd.f32 %v5645_v21, %v3541_v62 }
 0x526   : > { %v3578_v27 = vadd.f32 %v4366_v39, %v3542_v45 }
 0x528   : > { %v3610_v50 = vmax.f32 %v3578_v27, 0.0 }
 0x52a   : > { %3642 = vst [vmem:[%s5658_s23 + $0xe8] sm:$0xff] %v3610_v50 }
 0x52b   : > { %v3544_v12 = vpop.f32.mrf.mxu2 }
 0x52c   : > { %v3545_v4 = vadd.f32 %v5645_v21, %v3544_v12 }
 0x52e   : > { %v3579_v32 = vadd.f32 %v4367_v35, %v3545_v4 }
 0x530   : > { %v3611_v60 = vmax.f32 %v3579_v32, 0.0 }
 0x532   : > { %3643 = vst [vmem:[%s5658_s23 + $0xf0] sm:$0xff] %v3611_v60 }
 0x533   : > { %v3546_v28 = vpop.f32.mrf.mxu2 }
 0x534   : > { %v3547_v59 = vadd.f32 %v5645_v21, %v3546_v28 }
 0x536   : > { %v3580_v46 = vadd.f32 %v4368_v42, %v3547_v59 }
 0x538   : > { %v3612_v0 = vmax.f32 %v3580_v46, 0.0 }
 0x53a   : > { %3644 = vst [vmem:[%s5658_s23 + $0xf8] sm:$0xff] %v3612_v0 }
 0x53b   : > { %4516 = shalt.err (!%p4513_p10)
}
 0x53c   : > { %s4574_s22 = smov 128   ;;  %s4575_s15 = smov 8  }
 0x53d   : > { %4263 = dma.vmem_to_hbm [thread:$0]  (%p4699_p7), %s3659_s16, 4096, %s3661_s1, %s3646_s30, %s4574_s22, %s4574_s22, %s4575_s15  }
 0x53e PF: > { %s3675_s23 = sand.u32 1, %s4551_s24   ;;  %p6018_p12 = scmp.ge.s32.totalorder %s4563_s27, 2 }
 0x53f   : > { %s3676_s20 = scalar_lea.sflag [#allocation6], %s3675_s23 }
 0x540   : > { %p4280_p13 = pnand %p6018_p12, %p4651_p6 }
 0x542   : > { %p4281_p0 = pneg %p4280_p13 }
 0x544   : > { %4546 = dma.done.wait (%p4281_p0), %s3676_s20, 4096  }
 0x545   : > { %4548 = vsyncadd (%p4281_p0), %s3676_s20, 4294963200  ;;  %p22_p3 = scmp.ge.s32.totalorder %s4683_s11, 4   ;;  %s6019_s24 = smov %s4555_s25 }
 0x546   : > { %s6020_s25 = smov %s4559_s26  ;;  %s6021_s26 = smov %s4695_s17 }
 0x547   : > { %s6022_s27 = smov %s4683_s11  ;;  %24 = sbr.rel (!%p22_p3) target bundleno = 9 (0x9), region = 116 }
 0x54c   :  { %3682 = vsyncpa [#allocation5], 1 }
 0x54d   :  { %3684 = vsyncpa [#allocation5 + $0x1], 1 }
 0x54e   :  { %3685 = vsyncpa [#allocation8], 1 }
 0x54f   :  { %3686 = vsyncpa [#allocation11], 1 }
 0x550   :  { %3687 = vsyncpa [#allocation6], 1 }
 0x551   :  { %3689 = vsyncpa [#allocation6 + $0x1], 1 }

</bundles_post_ra>
